<compile_context>
chip_gen: v6e
topology: v6e:2x2x1
jax: 0.10.0
libtpu: 0.0.40
codegen_flags: <defaults>
</compile_context>

<pallas_src>
import functools

import jax
import jax.numpy as jnp
from jax.experimental import pallas as pl
from jax.experimental.pallas import tpu as pltpu

_VMEM_LIMIT = 32 * 1024 * 1024  # explicit scoped-VMEM budget, safe on v5e/v6e/v7x


# --------------------------------------------------------------------------
# In-kernel helpers
# --------------------------------------------------------------------------
def _im2col_3x3(x):
    """(B, H, W, C) -> (B*H*W, 9*C) slab, zero 'SAME' pad, tap order (dy, dx, c)."""
    B, H, W, C = x.shape
    zrow = jnp.zeros((B, 1, W, C), x.dtype)
    zcol = jnp.zeros((B, H + 2, 1, C), x.dtype)
    xp = jnp.concatenate([zrow, x, zrow], axis=1)        # (B, H+2, W,   C)
    xp = jnp.concatenate([zcol, xp, zcol], axis=2)       # (B, H+2, W+2, C)
    taps = [xp[:, dy:dy + H, dx:dx + W, :] for dy in range(3) for dx in range(3)]
    return jnp.concatenate(taps, axis=-1).reshape(B * H * W, 9 * C)


# --------------------------------------------------------------------------
# Fused kernel: start conv + n_res ResBlocks + policy/value head convs
# --------------------------------------------------------------------------
def _fused_resnet_kernel(x_ref,
                         ws_ref, ss_ref, bs_ref,          # start conv (resident)
                         w1_ref, s1_ref, b1_ref,          # resblock conv1 (streamed)
                         w2_ref, s2_ref, b2_ref,          # resblock conv2 (streamed)
                         wp_ref, sp_ref, bp_ref,          # policy head conv (resident)
                         wv_ref, sv_ref, bv_ref,          # value head conv (resident)
                         pol_ref, val_ref,                # head conv outputs
                         act_ref,                         # VMEM-resident activation
                         *, n_res, H, W, C, B):
    r = pl.program_id(1)
    last = pl.num_programs(1) - 1
    M = B * H * W

    def conv_bn(x_bhwc, w_ref, s, b):
        # conv3x3 'SAME' + folded BN as ONE MXU matmul, bf16 in / f32 acc.
        slab = _im2col_3x3(x_bhwc).astype(w_ref.dtype)
        acc = jnp.dot(slab, w_ref[...], preferred_element_type=jnp.float32)
        return acc * s + b                                # (M, Cout) f32 epilogue

    # ---- start block (conv + BN + ReLU): once per batch tile ---------------
    @pl.when(r == 0)
    def _start():
        y = conv_bn(x_ref[...].astype(jnp.float32), ws_ref, ss_ref[...], bs_ref[...])
        act_ref[...] = jnp.maximum(y, 0.0).reshape(B, H, W, C)

    # ---- residual block r (weights for block r streamed via the grid) ------
    if n_res > 0:
        x = act_ref[...]                                  # f32 resident activation
        h1 = jnp.maximum(conv_bn(x, w1_ref, s1_ref[...], b1_ref[...]), 0.0)
        z2 = conv_bn(h1.reshape(B, H, W, C), w2_ref, s2_ref[...], b2_ref[...])
        out = jnp.maximum(z2 + x.reshape(M, C), 0.0)      # residual add + ReLU
        act_ref[...] = out.reshape(B, H, W, C)

    # ---- policy / value head convs: once per batch tile, shared im2col -----
    @pl.when(r == last)
    def _heads():
        slab = _im2col_3x3(act_ref[...]).astype(wp_ref.dtype)
        p = jnp.dot(slab, wp_ref[...], preferred_element_type=jnp.float32)
        p = jnp.maximum(p * sp_ref[...] + bp_ref[...], 0.0)
        pol_ref[...] = p.reshape(B, H * W, p.shape[-1]).astype(pol_ref.dtype)

        v = jnp.dot(slab, wv_ref[...], preferred_element_type=jnp.float32)
        v = jnp.maximum(v * sv_ref[...] + bv_ref[...], 0.0)
        val_ref[...] = v.reshape(B, H * W, v.shape[-1]).astype(val_ref.dtype)


# --------------------------------------------------------------------------
# One-time parameter preparation (hoisted out of the serving path)
# --------------------------------------------------------------------------
def _fold_bn(conv_bias, gamma, beta, mean, var, eps=1e-5):
    scale = gamma / jnp.sqrt(var + eps)
    bias = (conv_bias - mean) * scale + beta
    return (scale.reshape(1, -1).astype(jnp.float32),
            bias.reshape(1, -1).astype(jnp.float32))


def _conv_pack(p):
    cin, cout = p["w"].shape[2], p["w"].shape[3]
    w2d = p["w"].reshape(9 * cin, cout).astype(jnp.bfloat16)   # fused-K weight
    s, b = _fold_bn(p["conv_b"], p["gamma"], p["beta"], p["mean"], p["var"])
    return w2d, s, b


def prepare_params(params, rows, cols):
    """Fold BN, reshape/cast conv weights, stack resblock weights, permute FC rows."""
    ws, ss, bs = _conv_pack(params["start"])
    C = ws.shape[1]
    n_res = len(params["blocks"])

    if n_res > 0:
        c1 = [_conv_pack(b["c1"]) for b in params["blocks"]]
        c2 = [_conv_pack(b["c2"]) for b in params["blocks"]]
        res = tuple(jnp.stack([t[i] for t in cs])
                    for cs in (c1, c2) for i in range(3))       # rw1,rs1,rb1,rw2,rs2,rb2
    else:
        zw = jnp.zeros((1, 9 * C, C), jnp.bfloat16)
        zv = jnp.zeros((1, 1, C), jnp.float32)
        res = (zw, zv, zv, zw, zv, zv)

    def fc_pack(fc, cout):
        a = fc["w"].shape[1]
        # PyTorch flatten of NCHW is (c, h, w)-major; kernel emits (h, w, c)-major,
        # so permute the FC weight rows once here.
        w = fc["w"].reshape(cout, rows, cols, a).transpose(1, 2, 0, 3)
        w = w.reshape(rows * cols * cout, a).astype(jnp.bfloat16)
        return w, fc["b"].reshape(1, a).astype(jnp.float32)

    packed = {
        "start": (ws, ss, bs),
        "res": res,
        "policy_conv": _conv_pack(params["policy_conv"]),
        "value_conv": _conv_pack(params["value_conv"]),
        "policy_fc": fc_pack(params["policy_fc"], 32),
        "value_fc": fc_pack(params["value_fc"], 3),
    }
    return packed, n_res


# --------------------------------------------------------------------------
# Pallas wrapper
# --------------------------------------------------------------------------
def _fused_backbone(x_nhwc, packed, n_res):
    N, H, W, CIN = x_nhwc.shape
    ws, ss, bs = packed["start"]
    rw1, rs1, rb1, rw2, rs2, rb2 = packed["res"]
    pw, ps, pb = packed["policy_conv"]
    vw, vs, vb = packed["value_conv"]
    C = ws.shape[1]
    PC = pw.shape[1]          # 32
    VC = vw.shape[1]          # 3
    hw = H * W

    # Batch tile: target M = bt*H*W >= 256 MXU rows without over-padding tiny batches.
    bt = min(max(1, -(-256 // hw)), 8)
    bt = min(bt, max(1, int(pl.next_power_of_2(N))))
    n_pad = -(-N // bt) * bt
    nb = n_pad // bt
    if n_pad != N:
        x_nhwc = jnp.pad(x_nhwc, ((0, n_pad - N), (0, 0), (0, 0), (0, 0)))

    n_steps = max(n_res, 1)

    def _const_spec(arr):
        nd = arr.ndim
        return pl.BlockSpec(arr.shape, lambda i, r, nd=nd: (0,) * nd)

    res_w_spec = pl.BlockSpec((None, 9 * C, C), lambda i, r: (r, 0, 0))
    res_v_spec = pl.BlockSpec((None, 1, C), lambda i, r: (r, 0, 0))

    kernel = functools.partial(_fused_resnet_kernel,
                               n_res=n_res, H=H, W=W, C=C, B=bt)

    p_act, v_act = pl.pallas_call(
        kernel,
        out_shape=(jax.ShapeDtypeStruct((nb, bt, hw, PC), jnp.bfloat16),
                   jax.ShapeDtypeStruct((nb, bt, hw, VC), jnp.bfloat16)),
        grid=(nb, n_steps),
        in_specs=[
            pl.BlockSpec((bt, H, W, CIN), lambda i, r: (i, 0, 0, 0)),   # input tile
            _const_spec(ws), _const_spec(ss), _const_spec(bs),          # start conv
            res_w_spec, res_v_spec, res_v_spec,                          # res conv1
            res_w_spec, res_v_spec, res_v_spec,                          # res conv2
            _const_spec(pw), _const_spec(ps), _const_spec(pb),          # policy conv
            _const_spec(vw), _const_spec(vs), _const_spec(vb),          # value conv
        ],
        out_specs=(pl.BlockSpec((None, bt, hw, PC), lambda i, r: (i, 0, 0, 0)),
                   pl.BlockSpec((None, bt, hw, VC), lambda i, r: (i, 0, 0, 0))),
        scratch_shapes=[pltpu.VMEM((bt, H, W, C), jnp.float32)],
        compiler_params=pltpu.CompilerParams(
            dimension_semantics=("parallel", "arbitrary"),
            vmem_limit_bytes=_VMEM_LIMIT),
    )(x_nhwc, ws, ss, bs, rw1, rs1, rb1, rw2, rs2, rb2, pw, ps, pb, vw, vs, vb)

    return p_act.reshape(n_pad, hw * PC), v_act.reshape(n_pad, hw * VC)


@functools.partial(jax.jit, static_argnames=("n_res",))
def resnet_forward_pallas(x_nchw, packed, n_res):
    N = x_nchw.shape[0]
    # Single NCHW->NHWC transpose of the 3-channel input; everything else stays NHWC.
    x = jnp.transpose(x_nchw, (0, 2, 3, 1)).astype(jnp.float32)
    p_flat, v_flat = _fused_backbone(x, packed, n_res)
    p_flat, v_flat = p_flat[:N], v_flat[:N]

    # Tiny head FC matmuls (M = batch) on the kernel's bf16, already-flattened
    # outputs; weights were row-permuted once in prepare_params, so no transpose.
    pfw, pfb = packed["policy_fc"]
    vfw, vfb = packed["value_fc"]
    policy = jnp.dot(p_flat, pfw, preferred_element_type=jnp.float32) + pfb
    value = jnp.tanh(jnp.dot(v_flat, vfw, preferred_element_type=jnp.float32) + vfb)
    return policy, value


# --------------------------------------------------------------------------
# Pure-JAX reference (eval-mode BN; same bf16-matmul / f32-accumulate recipe)
# --------------------------------------------------------------------------
def resnet_forward_reference(x_nchw, params):
    dn = ("NHWC", "HWIO", "NHWC")

    def conv_bn(x, p, relu):
        s, b = _fold_bn(p["conv_b"], p["gamma"], p["beta"], p["mean"], p["var"])
        y = jax.lax.conv_general_dilated(
            x.astype(jnp.bfloat16), p["w"].astype(jnp.bfloat16), (1, 1), "SAME",
            dimension_numbers=dn, preferred_element_type=jnp.float32)
        y = y * s.reshape(1, 1, 1, -1) + b.reshape(1, 1, 1, -1)
        return jnp.maximum(y, 0.0) if relu else y

    def lin(x, w, b):
        return jnp.dot(x.astype(jnp.bfloat16), w.astype(jnp.bfloat16),
                       preferred_element_type=jnp.float32) + b.reshape(1, -1)

    N = x_nchw.shape[0]
    x = jnp.transpose(x_nchw, (0, 2, 3, 1)).astype(jnp.float32)
    x = conv_bn(x, params["start"], True)
    for blk in params["blocks"]:
        h = conv_bn(x, blk["c1"], True)
        h = conv_bn(h, blk["c2"], False)
        x = jnp.maximum(h + x, 0.0)

    p = conv_bn(x, params["policy_conv"], True)
    p_flat = jnp.transpose(p, (0, 3, 1, 2)).reshape(N, -1)       # NCHW flatten
    policy = lin(p_flat, params["policy_fc"]["w"], params["policy_fc"]["b"])

    v = conv_bn(x, params["value_conv"], True)
    v_flat = jnp.transpose(v, (0, 3, 1, 2)).reshape(N, -1)
    value = jnp.tanh(lin(v_flat, params["value_fc"]["w"], params["value_fc"]["b"]))
    return policy, value


# --------------------------------------------------------------------------
# Parameters
# --------------------------------------------------------------------------
def _make_conv_bn_params(key, cin, cout):
    ks = jax.random.split(key, 6)
    return {
        "w": 0.1 * jax.random.normal(ks[0], (3, 3, cin, cout), jnp.float32),  # HWIO
        "conv_b": 0.05 * jax.random.normal(ks[1], (cout,), jnp.float32),
        "gamma": 1.0 + 0.1 * jax.random.normal(ks[2], (cout,), jnp.float32),
        "beta": 0.1 * jax.random.normal(ks[3], (cout,), jnp.float32),
        "mean": 0.1 * jax.random.normal(ks[4], (cout,), jnp.float32),
        "var": jnp.abs(1.0 + 0.1 * jax.random.normal(ks[5], (cout,), jnp.float32)),
    }


def make_params(key, channels, n_res, rows, cols, action_size):
    keys = jax.random.split(key, 7 + 2 * n_res)
    params = {
        "start": _make_conv_bn_params(keys[0], 3, channels),
        "blocks": [
            {"c1": _make_conv_bn_params(keys[1 + 2 * i], channels, channels),
             "c2": _make_conv_bn_params(keys[2 + 2 * i], channels, channels)}
            for i in range(n_res)
        ],
        "policy_conv": _make_conv_bn_params(keys[1 + 2 * n_res], channels, 32),
        "value_conv": _make_conv_bn_params(keys[2 + 2 * n_res], channels, 3),
    }
    fp = 32 * rows * cols
    fv = 3 * rows * cols
    params["policy_fc"] = {
        "w": (fp ** -0.5) * jax.random.normal(keys[3 + 2 * n_res], (fp, action_size),
                                              jnp.float32),
        "b": 0.05 * jax.random.normal(keys[4 + 2 * n_res], (action_size,), jnp.float32),
    }
    params["value_fc"] = {
        "w": (fv ** -0.5) * jax.random.normal(keys[5 + 2 * n_res], (fv, 1), jnp.float32),
        "b": jnp.zeros((1,), jnp.float32),
    }
    return params


# --------------------------------------------------------------------------
# Self-test
# --------------------------------------------------------------------------
if __name__ == "__main__":
    batch, rows, cols = 2, 8, 8
    channels, n_res = 16, 2
    action_size = rows * cols + 1

    key = jax.random.PRNGKey(0)
    kx, kp = jax.random.split(key)
    x = jax.random.normal(kx, (batch, 3, rows, cols), jnp.float32)
    params = make_params(kp, channels, n_res, rows, cols, action_size)

    # One-time weight prep (BN fold, reshape, bf16 cast, FC-row permutation).
    packed, n_res_packed = prepare_params(params, rows, cols)

    policy, value = jax.block_until_ready(
        resnet_forward_pallas(x, packed, n_res=n_res_packed))
    policy_ref, value_ref = jax.block_until_ready(resnet_forward_reference(x, params))

    assert policy.shape == (batch, action_size)
    assert value.shape == (batch, 1)
    perr = float(jnp.max(jnp.abs(policy - policy_ref)))
    verr = float(jnp.max(jnp.abs(value - value_ref)))
    assert jnp.allclose(policy, policy_ref, atol=2e-2, rtol=2e-2), perr
    assert jnp.allclose(value, value_ref, atol=2e-2, rtol=2e-2), verr

    print("KERNEL_OK")
</pallas_src>

<mosaic_0001>
module attributes {stable_mosaic.version = 11 : i64} {
  func.func @_fused_resnet_kernel(%arg0: i32, %arg1: i32, %arg2: memref<2x8x8x3xf32, #tpu.memory_space<vmem>>, %arg3: memref<27x16xbf16, #tpu.memory_space<vmem>>, %arg4: memref<1x16xf32, #tpu.memory_space<vmem>>, %arg5: memref<1x16xf32, #tpu.memory_space<vmem>>, %arg6: memref<1x144x16xbf16, #tpu.memory_space<vmem>>, %arg7: memref<1x1x16xf32, #tpu.memory_space<vmem>>, %arg8: memref<1x1x16xf32, #tpu.memory_space<vmem>>, %arg9: memref<1x144x16xbf16, #tpu.memory_space<vmem>>, %arg10: memref<1x1x16xf32, #tpu.memory_space<vmem>>, %arg11: memref<1x1x16xf32, #tpu.memory_space<vmem>>, %arg12: memref<144x32xbf16, #tpu.memory_space<vmem>>, %arg13: memref<1x32xf32, #tpu.memory_space<vmem>>, %arg14: memref<1x32xf32, #tpu.memory_space<vmem>>, %arg15: memref<144x3xbf16, #tpu.memory_space<vmem>>, %arg16: memref<1x3xf32, #tpu.memory_space<vmem>>, %arg17: memref<1x3xf32, #tpu.memory_space<vmem>>, %arg18: memref<1x2x64x32xbf16, #tpu.memory_space<vmem>>, %arg19: memref<1x2x64x3xbf16, #tpu.memory_space<vmem>>, %arg20: memref<2x8x8x16xf32, #tpu.memory_space<vmem>>) attributes {dimension_semantics = [#tpu.dimension_semantics<parallel>, #tpu.dimension_semantics<arbitrary>], iteration_bounds = array<i64: 1, 2>, scalar_prefetch = 0 : i64, scratch_operands = 1 : i64, tpu.core_type = #tpu.core_type<tc>, window_params = [{transform_indices = @transform_0, window_bounds = array<i64: 2, 8, 8, 3>}, {pipeline_mode = #tpu.pipeline_mode<synchronous>, transform_indices = @transform_1, window_bounds = array<i64: 27, 16>}, {pipeline_mode = #tpu.pipeline_mode<synchronous>, transform_indices = @transform_2, window_bounds = array<i64: 1, 16>}, {pipeline_mode = #tpu.pipeline_mode<synchronous>, transform_indices = @transform_3, window_bounds = array<i64: 1, 16>}, {transform_indices = @transform_4, window_bounds = array<i64: 1, 144, 16>}, {transform_indices = @transform_5, window_bounds = array<i64: 1, 1, 16>}, {transform_indices = @transform_6, window_bounds = array<i64: 1, 1, 16>}, {transform_indices = @transform_7, window_bounds = array<i64: 1, 144, 16>}, {transform_indices = @transform_8, window_bounds = array<i64: 1, 1, 16>}, {transform_indices = @transform_9, window_bounds = array<i64: 1, 1, 16>}, {pipeline_mode = #tpu.pipeline_mode<synchronous>, transform_indices = @transform_10, window_bounds = array<i64: 144, 32>}, {pipeline_mode = #tpu.pipeline_mode<synchronous>, transform_indices = @transform_11, window_bounds = array<i64: 1, 32>}, {pipeline_mode = #tpu.pipeline_mode<synchronous>, transform_indices = @transform_12, window_bounds = array<i64: 1, 32>}, {pipeline_mode = #tpu.pipeline_mode<synchronous>, transform_indices = @transform_13, window_bounds = array<i64: 144, 3>}, {pipeline_mode = #tpu.pipeline_mode<synchronous>, transform_indices = @transform_14, window_bounds = array<i64: 1, 3>}, {pipeline_mode = #tpu.pipeline_mode<synchronous>, transform_indices = @transform_15, window_bounds = array<i64: 1, 3>}, {transform_indices = @transform_16, window_bounds = array<i64: 1, 2, 64, 32>}, {transform_indices = @transform_17, window_bounds = array<i64: 1, 2, 64, 3>}]} {
    %c0_i32 = arith.constant 0 : i32
    %0 = arith.cmpi eq, %arg1, %c0_i32 : i32
    %1 = arith.extui %0 : i1 to i32
    %c0_i32_0 = arith.constant 0 : i32
    %2 = arith.cmpi ne, %1, %c0_i32_0 : i32
    scf.if %2 {
      %c0_34 = arith.constant 0 : index
      %c0_35 = arith.constant 0 : index
      %c0_36 = arith.constant 0 : index
      %c0_37 = arith.constant 0 : index
      %70 = vector.load %arg2[%c0_34, %c0_35, %c0_36, %c0_37] : memref<2x8x8x3xf32, #tpu.memory_space<vmem>>, vector<2x8x8x3xf32>
      %c0_38 = arith.constant 0 : index
      %c0_39 = arith.constant 0 : index
      %71 = vector.load %arg4[%c0_38, %c0_39] : memref<1x16xf32, #tpu.memory_space<vmem>>, vector<1x16xf32>
      %c0_40 = arith.constant 0 : index
      %c0_41 = arith.constant 0 : index
      %72 = vector.load %arg5[%c0_40, %c0_41] : memref<1x16xf32, #tpu.memory_space<vmem>>, vector<1x16xf32>
      %cst_42 = arith.constant 0.000000e+00 : f32
      %73 = vector.broadcast %cst_42 : f32 to vector<2x1x8x3xf32>
      %cst_43 = arith.constant 0.000000e+00 : f32
      %74 = vector.broadcast %cst_43 : f32 to vector<2x10x1x3xf32>
      %75 = tpu.concatenate %73, %70, %73 in 1 : vector<2x1x8x3xf32>, vector<2x8x8x3xf32>, vector<2x1x8x3xf32> -> vector<2x10x8x3xf32>
      %76 = tpu.concatenate %74, %75, %74 in 2 : vector<2x10x1x3xf32>, vector<2x10x8x3xf32>, vector<2x10x1x3xf32> -> vector<2x10x10x3xf32>
      %77 = vector.extract_strided_slice %76 {offsets = [0, 0, 0, 0], sizes = [2, 8, 8, 3], strides = [1, 1, 1, 1]} : vector<2x10x10x3xf32> to vector<2x8x8x3xf32>
      %78 = vector.extract_strided_slice %76 {offsets = [0, 0, 1, 0], sizes = [2, 8, 8, 3], strides = [1, 1, 1, 1]} : vector<2x10x10x3xf32> to vector<2x8x8x3xf32>
      %79 = vector.extract_strided_slice %76 {offsets = [0, 0, 2, 0], sizes = [2, 8, 8, 3], strides = [1, 1, 1, 1]} : vector<2x10x10x3xf32> to vector<2x8x8x3xf32>
      %80 = vector.extract_strided_slice %76 {offsets = [0, 1, 0, 0], sizes = [2, 8, 8, 3], strides = [1, 1, 1, 1]} : vector<2x10x10x3xf32> to vector<2x8x8x3xf32>
      %81 = vector.extract_strided_slice %76 {offsets = [0, 1, 1, 0], sizes = [2, 8, 8, 3], strides = [1, 1, 1, 1]} : vector<2x10x10x3xf32> to vector<2x8x8x3xf32>
      %82 = vector.extract_strided_slice %76 {offsets = [0, 1, 2, 0], sizes = [2, 8, 8, 3], strides = [1, 1, 1, 1]} : vector<2x10x10x3xf32> to vector<2x8x8x3xf32>
      %83 = vector.extract_strided_slice %76 {offsets = [0, 2, 0, 0], sizes = [2, 8, 8, 3], strides = [1, 1, 1, 1]} : vector<2x10x10x3xf32> to vector<2x8x8x3xf32>
      %84 = vector.extract_strided_slice %76 {offsets = [0, 2, 1, 0], sizes = [2, 8, 8, 3], strides = [1, 1, 1, 1]} : vector<2x10x10x3xf32> to vector<2x8x8x3xf32>
      %85 = vector.extract_strided_slice %76 {offsets = [0, 2, 2, 0], sizes = [2, 8, 8, 3], strides = [1, 1, 1, 1]} : vector<2x10x10x3xf32> to vector<2x8x8x3xf32>
      %86 = tpu.concatenate %77, %78, %79, %80, %81, %82, %83, %84, %85 in 3 : vector<2x8x8x3xf32>, vector<2x8x8x3xf32>, vector<2x8x8x3xf32>, vector<2x8x8x3xf32>, vector<2x8x8x3xf32>, vector<2x8x8x3xf32>, vector<2x8x8x3xf32>, vector<2x8x8x3xf32>, vector<2x8x8x3xf32> -> vector<2x8x8x27xf32>
      %87 = vector.shape_cast %86 : vector<2x8x8x27xf32> to vector<128x27xf32>
      %88 = arith.truncf %87 : vector<128x27xf32> to vector<128x27xbf16>
      %c0_44 = arith.constant 0 : index
      %c0_45 = arith.constant 0 : index
      %89 = vector.load %arg3[%c0_44, %c0_45] : memref<27x16xbf16, #tpu.memory_space<vmem>>, vector<27x16xbf16>
      %cst_46 = arith.constant dense<0.000000e+00> : vector<128x16xf32>
      %90 = tpu.matmul %88, %89, %cst_46 {dimension_numbers = #tpu.dot_dimension_numbers<[1], [0], [0], [1], [0, 0, 1, 1], [], []>} : vector<128x27xbf16>, vector<27x16xbf16>, vector<128x16xf32> -> vector<128x16xf32>
      %91 = vector.broadcast %71 : vector<1x16xf32> to vector<128x16xf32>
      %92 = arith.mulf %90, %91 : vector<128x16xf32>
      %93 = vector.broadcast %72 : vector<1x16xf32> to vector<128x16xf32>
      %94 = arith.addf %92, %93 : vector<128x16xf32>
      %cst_47 = arith.constant 0.000000e+00 : f32
      %95 = vector.broadcast %cst_47 : f32 to vector<128x16xf32>
      %96 = arith.maximumf %94, %95 : vector<128x16xf32>
      %97 = vector.shape_cast %96 : vector<128x16xf32> to vector<2x8x8x16xf32>
      %c0_48 = arith.constant 0 : index
      %c0_49 = arith.constant 0 : index
      %c0_50 = arith.constant 0 : index
      %c0_51 = arith.constant 0 : index
      %98 = vector.load %arg20[%c0_48, %c0_49, %c0_50, %c0_51] : memref<2x8x8x16xf32, #tpu.memory_space<vmem>>, vector<2x8x8x16xf32>
      tpu.vector_store %arg20[%c0_48, %c0_49, %c0_50, %c0_51], %97 {strides = array<i32>} : memref<2x8x8x16xf32, #tpu.memory_space<vmem>>, vector<2x8x8x16xf32>,
    } else {
    }
    %c0 = arith.constant 0 : index
    %c0_1 = arith.constant 0 : index
    %c0_2 = arith.constant 0 : index
    %c0_3 = arith.constant 0 : index
    %3 = vector.load %arg20[%c0, %c0_1, %c0_2, %c0_3] : memref<2x8x8x16xf32, #tpu.memory_space<vmem>>, vector<2x8x8x16xf32>
    %c0_4 = arith.constant 0 : index
    %c0_5 = arith.constant 0 : index
    %c0_6 = arith.constant 0 : index
    %4 = vector.load %arg7[%c0_4, %c0_5, %c0_6] : memref<1x1x16xf32, #tpu.memory_space<vmem>>, vector<1x1x16xf32>
    %5 = vector.shape_cast %4 : vector<1x1x16xf32> to vector<1x16xf32>
    %c0_7 = arith.constant 0 : index
    %c0_8 = arith.constant 0 : index
    %c0_9 = arith.constant 0 : index
    %6 = vector.load %arg8[%c0_7, %c0_8, %c0_9] : memref<1x1x16xf32, #tpu.memory_space<vmem>>, vector<1x1x16xf32>
    %7 = vector.shape_cast %6 : vector<1x1x16xf32> to vector<1x16xf32>
    %cst = arith.constant 0.000000e+00 : f32
    %8 = vector.broadcast %cst : f32 to vector<2x1x8x16xf32>
    %cst_10 = arith.constant 0.000000e+00 : f32
    %9 = vector.broadcast %cst_10 : f32 to vector<2x10x1x16xf32>
    %10 = tpu.concatenate %8, %3, %8 in 1 : vector<2x1x8x16xf32>, vector<2x8x8x16xf32>, vector<2x1x8x16xf32> -> vector<2x10x8x16xf32>
    %11 = tpu.concatenate %9, %10, %9 in 2 : vector<2x10x1x16xf32>, vector<2x10x8x16xf32>, vector<2x10x1x16xf32> -> vector<2x10x10x16xf32>
    %12 = vector.extract_strided_slice %11 {offsets = [0, 0, 0, 0], sizes = [2, 8, 8, 16], strides = [1, 1, 1, 1]} : vector<2x10x10x16xf32> to vector<2x8x8x16xf32>
    %13 = vector.extract_strided_slice %11 {offsets = [0, 0, 1, 0], sizes = [2, 8, 8, 16], strides = [1, 1, 1, 1]} : vector<2x10x10x16xf32> to vector<2x8x8x16xf32>
    %14 = vector.extract_strided_slice %11 {offsets = [0, 0, 2, 0], sizes = [2, 8, 8, 16], strides = [1, 1, 1, 1]} : vector<2x10x10x16xf32> to vector<2x8x8x16xf32>
    %15 = vector.extract_strided_slice %11 {offsets = [0, 1, 0, 0], sizes = [2, 8, 8, 16], strides = [1, 1, 1, 1]} : vector<2x10x10x16xf32> to vector<2x8x8x16xf32>
    %16 = vector.extract_strided_slice %11 {offsets = [0, 1, 1, 0], sizes = [2, 8, 8, 16], strides = [1, 1, 1, 1]} : vector<2x10x10x16xf32> to vector<2x8x8x16xf32>
    %17 = vector.extract_strided_slice %11 {offsets = [0, 1, 2, 0], sizes = [2, 8, 8, 16], strides = [1, 1, 1, 1]} : vector<2x10x10x16xf32> to vector<2x8x8x16xf32>
    %18 = vector.extract_strided_slice %11 {offsets = [0, 2, 0, 0], sizes = [2, 8, 8, 16], strides = [1, 1, 1, 1]} : vector<2x10x10x16xf32> to vector<2x8x8x16xf32>
    %19 = vector.extract_strided_slice %11 {offsets = [0, 2, 1, 0], sizes = [2, 8, 8, 16], strides = [1, 1, 1, 1]} : vector<2x10x10x16xf32> to vector<2x8x8x16xf32>
    %20 = vector.extract_strided_slice %11 {offsets = [0, 2, 2, 0], sizes = [2, 8, 8, 16], strides = [1, 1, 1, 1]} : vector<2x10x10x16xf32> to vector<2x8x8x16xf32>
    %21 = tpu.concatenate %12, %13, %14, %15, %16, %17, %18, %19, %20 in 3 : vector<2x8x8x16xf32>, vector<2x8x8x16xf32>, vector<2x8x8x16xf32>, vector<2x8x8x16xf32>, vector<2x8x8x16xf32>, vector<2x8x8x16xf32>, vector<2x8x8x16xf32>, vector<2x8x8x16xf32>, vector<2x8x8x16xf32> -> vector<2x8x8x144xf32>
    %22 = vector.shape_cast %21 : vector<2x8x8x144xf32> to vector<128x144xf32>
    %23 = arith.truncf %22 : vector<128x144xf32> to vector<128x144xbf16>
    %c0_11 = arith.constant 0 : index
    %c0_12 = arith.constant 0 : index
    %c0_13 = arith.constant 0 : index
    %24 = vector.load %arg6[%c0_11, %c0_12, %c0_13] : memref<1x144x16xbf16, #tpu.memory_space<vmem>>, vector<1x144x16xbf16>
    %25 = vector.shape_cast %24 : vector<1x144x16xbf16> to vector<144x16xbf16>
    %cst_14 = arith.constant dense<0.000000e+00> : vector<128x16xf32>
    %26 = tpu.matmul %23, %25, %cst_14 {dimension_numbers = #tpu.dot_dimension_numbers<[1], [0], [0], [1], [0, 0, 1, 1], [], []>} : vector<128x144xbf16>, vector<144x16xbf16>, vector<128x16xf32> -> vector<128x16xf32>
    %27 = vector.broadcast %5 : vector<1x16xf32> to vector<128x16xf32>
    %28 = arith.mulf %26, %27 : vector<128x16xf32>
    %29 = vector.broadcast %7 : vector<1x16xf32> to vector<128x16xf32>
    %30 = arith.addf %28, %29 : vector<128x16xf32>
    %cst_15 = arith.constant 0.000000e+00 : f32
    %31 = vector.broadcast %cst_15 : f32 to vector<128x16xf32>
    %32 = arith.maximumf %30, %31 : vector<128x16xf32>
    %33 = vector.shape_cast %32 : vector<128x16xf32> to vector<2x8x8x16xf32>
    %c0_16 = arith.constant 0 : index
    %c0_17 = arith.constant 0 : index
    %c0_18 = arith.constant 0 : index
    %34 = vector.load %arg10[%c0_16, %c0_17, %c0_18] : memref<1x1x16xf32, #tpu.memory_space<vmem>>, vector<1x1x16xf32>
    %35 = vector.shape_cast %34 : vector<1x1x16xf32> to vector<1x16xf32>
    %c0_19 = arith.constant 0 : index
    %c0_20 = arith.constant 0 : index
    %c0_21 = arith.constant 0 : index
    %36 = vector.load %arg11[%c0_19, %c0_20, %c0_21] : memref<1x1x16xf32, #tpu.memory_space<vmem>>, vector<1x1x16xf32>
    %37 = vector.shape_cast %36 : vector<1x1x16xf32> to vector<1x16xf32>
    %cst_22 = arith.constant 0.000000e+00 : f32
    %38 = vector.broadcast %cst_22 : f32 to vector<2x1x8x16xf32>
    %cst_23 = arith.constant 0.000000e+00 : f32
    %39 = vector.broadcast %cst_23 : f32 to vector<2x10x1x16xf32>
    %40 = tpu.concatenate %38, %33, %38 in 1 : vector<2x1x8x16xf32>, vector<2x8x8x16xf32>, vector<2x1x8x16xf32> -> vector<2x10x8x16xf32>
    %41 = tpu.concatenate %39, %40, %39 in 2 : vector<2x10x1x16xf32>, vector<2x10x8x16xf32>, vector<2x10x1x16xf32> -> vector<2x10x10x16xf32>
    %42 = vector.extract_strided_slice %41 {offsets = [0, 0, 0, 0], sizes = [2, 8, 8, 16], strides = [1, 1, 1, 1]} : vector<2x10x10x16xf32> to vector<2x8x8x16xf32>
    %43 = vector.extract_strided_slice %41 {offsets = [0, 0, 1, 0], sizes = [2, 8, 8, 16], strides = [1, 1, 1, 1]} : vector<2x10x10x16xf32> to vector<2x8x8x16xf32>
    %44 = vector.extract_strided_slice %41 {offsets = [0, 0, 2, 0], sizes = [2, 8, 8, 16], strides = [1, 1, 1, 1]} : vector<2x10x10x16xf32> to vector<2x8x8x16xf32>
    %45 = vector.extract_strided_slice %41 {offsets = [0, 1, 0, 0], sizes = [2, 8, 8, 16], strides = [1, 1, 1, 1]} : vector<2x10x10x16xf32> to vector<2x8x8x16xf32>
    %46 = vector.extract_strided_slice %41 {offsets = [0, 1, 1, 0], sizes = [2, 8, 8, 16], strides = [1, 1, 1, 1]} : vector<2x10x10x16xf32> to vector<2x8x8x16xf32>
    %47 = vector.extract_strided_slice %41 {offsets = [0, 1, 2, 0], sizes = [2, 8, 8, 16], strides = [1, 1, 1, 1]} : vector<2x10x10x16xf32> to vector<2x8x8x16xf32>
    %48 = vector.extract_strided_slice %41 {offsets = [0, 2, 0, 0], sizes = [2, 8, 8, 16], strides = [1, 1, 1, 1]} : vector<2x10x10x16xf32> to vector<2x8x8x16xf32>
    %49 = vector.extract_strided_slice %41 {offsets = [0, 2, 1, 0], sizes = [2, 8, 8, 16], strides = [1, 1, 1, 1]} : vector<2x10x10x16xf32> to vector<2x8x8x16xf32>
    %50 = vector.extract_strided_slice %41 {offsets = [0, 2, 2, 0], sizes = [2, 8, 8, 16], strides = [1, 1, 1, 1]} : vector<2x10x10x16xf32> to vector<2x8x8x16xf32>
    %51 = tpu.concatenate %42, %43, %44, %45, %46, %47, %48, %49, %50 in 3 : vector<2x8x8x16xf32>, vector<2x8x8x16xf32>, vector<2x8x8x16xf32>, vector<2x8x8x16xf32>, vector<2x8x8x16xf32>, vector<2x8x8x16xf32>, vector<2x8x8x16xf32>, vector<2x8x8x16xf32>, vector<2x8x8x16xf32> -> vector<2x8x8x144xf32>
    %52 = vector.shape_cast %51 : vector<2x8x8x144xf32> to vector<128x144xf32>
    %53 = arith.truncf %52 : vector<128x144xf32> to vector<128x144xbf16>
    %c0_24 = arith.constant 0 : index
    %c0_25 = arith.constant 0 : index
    %c0_26 = arith.constant 0 : index
    %54 = vector.load %arg9[%c0_24, %c0_25, %c0_26] : memref<1x144x16xbf16, #tpu.memory_space<vmem>>, vector<1x144x16xbf16>
    %55 = vector.shape_cast %54 : vector<1x144x16xbf16> to vector<144x16xbf16>
    %cst_27 = arith.constant dense<0.000000e+00> : vector<128x16xf32>
    %56 = tpu.matmul %53, %55, %cst_27 {dimension_numbers = #tpu.dot_dimension_numbers<[1], [0], [0], [1], [0, 0, 1, 1], [], []>} : vector<128x144xbf16>, vector<144x16xbf16>, vector<128x16xf32> -> vector<128x16xf32>
    %57 = vector.broadcast %35 : vector<1x16xf32> to vector<128x16xf32>
    %58 = arith.mulf %56, %57 : vector<128x16xf32>
    %59 = vector.broadcast %37 : vector<1x16xf32> to vector<128x16xf32>
    %60 = arith.addf %58, %59 : vector<128x16xf32>
    %61 = vector.shape_cast %3 : vector<2x8x8x16xf32> to vector<128x16xf32>
    %62 = arith.addf %60, %61 : vector<128x16xf32>
    %cst_28 = arith.constant 0.000000e+00 : f32
    %63 = vector.broadcast %cst_28 : f32 to vector<128x16xf32>
    %64 = arith.maximumf %62, %63 : vector<128x16xf32>
    %65 = vector.shape_cast %64 : vector<128x16xf32> to vector<2x8x8x16xf32>
    %c0_29 = arith.constant 0 : index
    %c0_30 = arith.constant 0 : index
    %c0_31 = arith.constant 0 : index
    %c0_32 = arith.constant 0 : index
    %66 = vector.load %arg20[%c0_29, %c0_30, %c0_31, %c0_32] : memref<2x8x8x16xf32, #tpu.memory_space<vmem>>, vector<2x8x8x16xf32>
    tpu.vector_store %arg20[%c0_29, %c0_30, %c0_31, %c0_32], %65 {strides = array<i32>} : memref<2x8x8x16xf32, #tpu.memory_space<vmem>>, vector<2x8x8x16xf32>,
    %c1_i32 = arith.constant 1 : i32
    %67 = arith.cmpi eq, %arg1, %c1_i32 : i32
    %68 = arith.extui %67 : i1 to i32
    %c0_i32_33 = arith.constant 0 : i32
    %69 = arith.cmpi ne, %68, %c0_i32_33 : i32
    scf.if %69 {
      %c0_34 = arith.constant 0 : index
      %c0_35 = arith.constant 0 : index
      %c0_36 = arith.constant 0 : index
      %c0_37 = arith.constant 0 : index
      %70 = vector.load %arg20[%c0_34, %c0_35, %c0_36, %c0_37] : memref<2x8x8x16xf32, #tpu.memory_space<vmem>>, vector<2x8x8x16xf32>
      %cst_38 = arith.constant 0.000000e+00 : f32
      %71 = vector.broadcast %cst_38 : f32 to vector<2x1x8x16xf32>
      %cst_39 = arith.constant 0.000000e+00 : f32
      %72 = vector.broadcast %cst_39 : f32 to vector<2x10x1x16xf32>
      %73 = tpu.concatenate %71, %70, %71 in 1 : vector<2x1x8x16xf32>, vector<2x8x8x16xf32>, vector<2x1x8x16xf32> -> vector<2x10x8x16xf32>
      %74 = tpu.concatenate %72, %73, %72 in 2 : vector<2x10x1x16xf32>, vector<2x10x8x16xf32>, vector<2x10x1x16xf32> -> vector<2x10x10x16xf32>
      %75 = vector.extract_strided_slice %74 {offsets = [0, 0, 0, 0], sizes = [2, 8, 8, 16], strides = [1, 1, 1, 1]} : vector<2x10x10x16xf32> to vector<2x8x8x16xf32>
      %76 = vector.extract_strided_slice %74 {offsets = [0, 0, 1, 0], sizes = [2, 8, 8, 16], strides = [1, 1, 1, 1]} : vector<2x10x10x16xf32> to vector<2x8x8x16xf32>
      %77 = vector.extract_strided_slice %74 {offsets = [0, 0, 2, 0], sizes = [2, 8, 8, 16], strides = [1, 1, 1, 1]} : vector<2x10x10x16xf32> to vector<2x8x8x16xf32>
      %78 = vector.extract_strided_slice %74 {offsets = [0, 1, 0, 0], sizes = [2, 8, 8, 16], strides = [1, 1, 1, 1]} : vector<2x10x10x16xf32> to vector<2x8x8x16xf32>
      %79 = vector.extract_strided_slice %74 {offsets = [0, 1, 1, 0], sizes = [2, 8, 8, 16], strides = [1, 1, 1, 1]} : vector<2x10x10x16xf32> to vector<2x8x8x16xf32>
      %80 = vector.extract_strided_slice %74 {offsets = [0, 1, 2, 0], sizes = [2, 8, 8, 16], strides = [1, 1, 1, 1]} : vector<2x10x10x16xf32> to vector<2x8x8x16xf32>
      %81 = vector.extract_strided_slice %74 {offsets = [0, 2, 0, 0], sizes = [2, 8, 8, 16], strides = [1, 1, 1, 1]} : vector<2x10x10x16xf32> to vector<2x8x8x16xf32>
      %82 = vector.extract_strided_slice %74 {offsets = [0, 2, 1, 0], sizes = [2, 8, 8, 16], strides = [1, 1, 1, 1]} : vector<2x10x10x16xf32> to vector<2x8x8x16xf32>
      %83 = vector.extract_strided_slice %74 {offsets = [0, 2, 2, 0], sizes = [2, 8, 8, 16], strides = [1, 1, 1, 1]} : vector<2x10x10x16xf32> to vector<2x8x8x16xf32>
      %84 = tpu.concatenate %75, %76, %77, %78, %79, %80, %81, %82, %83 in 3 : vector<2x8x8x16xf32>, vector<2x8x8x16xf32>, vector<2x8x8x16xf32>, vector<2x8x8x16xf32>, vector<2x8x8x16xf32>, vector<2x8x8x16xf32>, vector<2x8x8x16xf32>, vector<2x8x8x16xf32>, vector<2x8x8x16xf32> -> vector<2x8x8x144xf32>
      %85 = vector.shape_cast %84 : vector<2x8x8x144xf32> to vector<128x144xf32>
      %86 = arith.truncf %85 : vector<128x144xf32> to vector<128x144xbf16>
      %c0_40 = arith.constant 0 : index
      %c0_41 = arith.constant 0 : index
      %87 = vector.load %arg12[%c0_40, %c0_41] : memref<144x32xbf16, #tpu.memory_space<vmem>>, vector<144x32xbf16>
      %cst_42 = arith.constant dense<0.000000e+00> : vector<128x32xf32>
      %88 = tpu.matmul %86, %87, %cst_42 {dimension_numbers = #tpu.dot_dimension_numbers<[1], [0], [0], [1], [0, 0, 1, 1], [], []>} : vector<128x144xbf16>, vector<144x32xbf16>, vector<128x32xf32> -> vector<128x32xf32>
      %c0_43 = arith.constant 0 : index
      %c0_44 = arith.constant 0 : index
      %89 = vector.load %arg13[%c0_43, %c0_44] : memref<1x32xf32, #tpu.memory_space<vmem>>, vector<1x32xf32>
      %90 = vector.broadcast %89 : vector<1x32xf32> to vector<128x32xf32>
      %91 = arith.mulf %88, %90 : vector<128x32xf32>
      %c0_45 = arith.constant 0 : index
      %c0_46 = arith.constant 0 : index
      %92 = vector.load %arg14[%c0_45, %c0_46] : memref<1x32xf32, #tpu.memory_space<vmem>>, vector<1x32xf32>
      %93 = vector.broadcast %92 : vector<1x32xf32> to vector<128x32xf32>
      %94 = arith.addf %91, %93 : vector<128x32xf32>
      %cst_47 = arith.constant 0.000000e+00 : f32
      %95 = vector.broadcast %cst_47 : f32 to vector<128x32xf32>
      %96 = arith.maximumf %94, %95 : vector<128x32xf32>
      %97 = vector.shape_cast %96 : vector<128x32xf32> to vector<2x64x32xf32>
      %98 = arith.truncf %97 : vector<2x64x32xf32> to vector<2x64x32xbf16>
      %c0_48 = arith.constant 0 : index
      %c0_49 = arith.constant 0 : index
      %c0_50 = arith.constant 0 : index
      %c0_51 = arith.constant 0 : index
      %99 = vector.load %arg18[%c0_48, %c0_49, %c0_50, %c0_51] : memref<1x2x64x32xbf16, #tpu.memory_space<vmem>>, vector<1x2x64x32xbf16>
      %100 = vector.shape_cast %99 : vector<1x2x64x32xbf16> to vector<2x64x32xbf16>
      %101 = vector.shape_cast %98 : vector<2x64x32xbf16> to vector<1x2x64x32xbf16>
      tpu.vector_store %arg18[%c0_48, %c0_49, %c0_50, %c0_51], %101 {strides = array<i32>} : memref<1x2x64x32xbf16, #tpu.memory_space<vmem>>, vector<1x2x64x32xbf16>,
      %c0_52 = arith.constant 0 : index
      %c0_53 = arith.constant 0 : index
      %102 = vector.load %arg15[%c0_52, %c0_53] : memref<144x3xbf16, #tpu.memory_space<vmem>>, vector<144x3xbf16>
      %cst_54 = arith.constant dense<0.000000e+00> : vector<128x3xf32>
      %103 = tpu.matmul %86, %102, %cst_54 {dimension_numbers = #tpu.dot_dimension_numbers<[1], [0], [0], [1], [0, 0, 1, 1], [], []>} : vector<128x144xbf16>, vector<144x3xbf16>, vector<128x3xf32> -> vector<128x3xf32>
      %c0_55 = arith.constant 0 : index
      %c0_56 = arith.constant 0 : index
      %104 = vector.load %arg16[%c0_55, %c0_56] : memref<1x3xf32, #tpu.memory_space<vmem>>, vector<1x3xf32>
      %105 = vector.broadcast %104 : vector<1x3xf32> to vector<128x3xf32>
      %106 = arith.mulf %103, %105 : vector<128x3xf32>
      %c0_57 = arith.constant 0 : index
      %c0_58 = arith.constant 0 : index
      %107 = vector.load %arg17[%c0_57, %c0_58] : memref<1x3xf32, #tpu.memory_space<vmem>>, vector<1x3xf32>
      %108 = vector.broadcast %107 : vector<1x3xf32> to vector<128x3xf32>
      %109 = arith.addf %106, %108 : vector<128x3xf32>
      %cst_59 = arith.constant 0.000000e+00 : f32
      %110 = vector.broadcast %cst_59 : f32 to vector<128x3xf32>
      %111 = arith.maximumf %109, %110 : vector<128x3xf32>
      %112 = vector.shape_cast %111 : vector<128x3xf32> to vector<2x64x3xf32>
      %113 = arith.truncf %112 : vector<2x64x3xf32> to vector<2x64x3xbf16>
      %c0_60 = arith.constant 0 : index
      %c0_61 = arith.constant 0 : index
      %c0_62 = arith.constant 0 : index
      %c0_63 = arith.constant 0 : index
      %114 = vector.load %arg19[%c0_60, %c0_61, %c0_62, %c0_63] : memref<1x2x64x3xbf16, #tpu.memory_space<vmem>>, vector<1x2x64x3xbf16>
      %115 = vector.shape_cast %114 : vector<1x2x64x3xbf16> to vector<2x64x3xbf16>
      %116 = vector.shape_cast %113 : vector<2x64x3xbf16> to vector<1x2x64x3xbf16>
      tpu.vector_store %arg19[%c0_60, %c0_61, %c0_62, %c0_63], %116 {strides = array<i32>} : memref<1x2x64x3xbf16, #tpu.memory_space<vmem>>, vector<1x2x64x3xbf16>,
    } else {
    }
    return
  }
  func.func @transform_0(%arg0: i32, %arg1: i32) -> (i32, i32, i32, i32) {
    %c0_i32 = arith.constant 0 : i32
    %c0_i32_0 = arith.constant 0 : i32
    %c0_i32_1 = arith.constant 0 : i32
    %c0_i32_2 = arith.constant 0 : i32
    return %arg0, %c0_i32, %c0_i32_0, %c0_i32_1 : i32, i32, i32, i32
  }
  func.func @transform_1(%arg0: i32, %arg1: i32) -> (i32, i32) {
    %c0_i32 = arith.constant 0 : i32
    %c0_i32_0 = arith.constant 0 : i32
    %c0_i32_1 = arith.constant 0 : i32
    return %c0_i32, %c0_i32_0 : i32, i32
  }
  func.func @transform_2(%arg0: i32, %arg1: i32) -> (i32, i32) {
    %c0_i32 = arith.constant 0 : i32
    %c0_i32_0 = arith.constant 0 : i32
    %c0_i32_1 = arith.constant 0 : i32
    return %c0_i32, %c0_i32_0 : i32, i32
  }
  func.func @transform_3(%arg0: i32, %arg1: i32) -> (i32, i32) {
    %c0_i32 = arith.constant 0 : i32
    %c0_i32_0 = arith.constant 0 : i32
    %c0_i32_1 = arith.constant 0 : i32
    return %c0_i32, %c0_i32_0 : i32, i32
  }
  func.func @transform_4(%arg0: i32, %arg1: i32) -> (i32, i32, i32) {
    %c0_i32 = arith.constant 0 : i32
    %c0_i32_0 = arith.constant 0 : i32
    %c0_i32_1 = arith.constant 0 : i32
    return %arg1, %c0_i32, %c0_i32_0 : i32, i32, i32
  }
  func.func @transform_5(%arg0: i32, %arg1: i32) -> (i32, i32, i32) {
    %c0_i32 = arith.constant 0 : i32
    %c0_i32_0 = arith.constant 0 : i32
    %c0_i32_1 = arith.constant 0 : i32
    return %arg1, %c0_i32, %c0_i32_0 : i32, i32, i32
  }
  func.func @transform_6(%arg0: i32, %arg1: i32) -> (i32, i32, i32) {
    %c0_i32 = arith.constant 0 : i32
    %c0_i32_0 = arith.constant 0 : i32
    %c0_i32_1 = arith.constant 0 : i32
    return %arg1, %c0_i32, %c0_i32_0 : i32, i32, i32
  }
  func.func @transform_7(%arg0: i32, %arg1: i32) -> (i32, i32, i32) {
    %c0_i32 = arith.constant 0 : i32
    %c0_i32_0 = arith.constant 0 : i32
    %c0_i32_1 = arith.constant 0 : i32
    return %arg1, %c0_i32, %c0_i32_0 : i32, i32, i32
  }
  func.func @transform_8(%arg0: i32, %arg1: i32) -> (i32, i32, i32) {
    %c0_i32 = arith.constant 0 : i32
    %c0_i32_0 = arith.constant 0 : i32
    %c0_i32_1 = arith.constant 0 : i32
    return %arg1, %c0_i32, %c0_i32_0 : i32, i32, i32
  }
  func.func @transform_9(%arg0: i32, %arg1: i32) -> (i32, i32, i32) {
    %c0_i32 = arith.constant 0 : i32
    %c0_i32_0 = arith.constant 0 : i32
    %c0_i32_1 = arith.constant 0 : i32
    return %arg1, %c0_i32, %c0_i32_0 : i32, i32, i32
  }
  func.func @transform_10(%arg0: i32, %arg1: i32) -> (i32, i32) {
    %c0_i32 = arith.constant 0 : i32
    %c0_i32_0 = arith.constant 0 : i32
    %c0_i32_1 = arith.constant 0 : i32
    return %c0_i32, %c0_i32_0 : i32, i32
  }
  func.func @transform_11(%arg0: i32, %arg1: i32) -> (i32, i32) {
    %c0_i32 = arith.constant 0 : i32
    %c0_i32_0 = arith.constant 0 : i32
    %c0_i32_1 = arith.constant 0 : i32
    return %c0_i32, %c0_i32_0 : i32, i32
  }
  func.func @transform_12(%arg0: i32, %arg1: i32) -> (i32, i32) {
    %c0_i32 = arith.constant 0 : i32
    %c0_i32_0 = arith.constant 0 : i32
    %c0_i32_1 = arith.constant 0 : i32
    return %c0_i32, %c0_i32_0 : i32, i32
  }
  func.func @transform_13(%arg0: i32, %arg1: i32) -> (i32, i32) {
    %c0_i32 = arith.constant 0 : i32
    %c0_i32_0 = arith.constant 0 : i32
    %c0_i32_1 = arith.constant 0 : i32
    return %c0_i32, %c0_i32_0 : i32, i32
  }
  func.func @transform_14(%arg0: i32, %arg1: i32) -> (i32, i32) {
    %c0_i32 = arith.constant 0 : i32
    %c0_i32_0 = arith.constant 0 : i32
    %c0_i32_1 = arith.constant 0 : i32
    return %c0_i32, %c0_i32_0 : i32, i32
  }
  func.func @transform_15(%arg0: i32, %arg1: i32) -> (i32, i32) {
    %c0_i32 = arith.constant 0 : i32
    %c0_i32_0 = arith.constant 0 : i32
    %c0_i32_1 = arith.constant 0 : i32
    return %c0_i32, %c0_i32_0 : i32, i32
  }
  func.func @transform_16(%arg0: i32, %arg1: i32) -> (i32, i32, i32, i32) {
    %c0_i32 = arith.constant 0 : i32
    %c0_i32_0 = arith.constant 0 : i32
    %c0_i32_1 = arith.constant 0 : i32
    %c0_i32_2 = arith.constant 0 : i32
    return %arg0, %c0_i32, %c0_i32_0, %c0_i32_1 : i32, i32, i32, i32
  }
  func.func @transform_17(%arg0: i32, %arg1: i32) -> (i32, i32, i32, i32) {
    %c0_i32 = arith.constant 0 : i32
    %c0_i32_0 = arith.constant 0 : i32
    %c0_i32_1 = arith.constant 0 : i32
    %c0_i32_2 = arith.constant 0 : i32
    return %arg0, %c0_i32, %c0_i32_0, %c0_i32_1 : i32, i32, i32, i32
  }
}

</mosaic_0001>

<bundles_post_ra>
// kernel: resnet_forward_pallas.1
= control target key start
LH: loop header
LB: loop body
LE: loop exit
PB: predicated region body
PF: predicated region fallthrough
CT: control target
= control target key end

     0   :  { %s6546_s24 = smov 0   ;;  %s6548_s25 = smov 0   ;;  %s9161_s0 = inlined_call_operand.vmem [shape: f32[2,8,8,3], index: 0, kind: input, shape index: {}]   ;;  %s9162_s1 = inlined_call_operand.vmem [shape: bf16[27,16], index: 1, kind: input, shape index: {}]   ;;  %s9163_s2 = inlined_call_operand.vmem [shape: f32[1,16], index: 2, kind: input, shape index: {}]   ;;  %s9164_s3 = inlined_call_operand.vmem [shape: f32[1,16], index: 3, kind: input, shape index: {}]   ;;  %s9165_s4 = inlined_call_operand.vmem [shape: bf16[2,144,16], index: 4, kind: input, shape index: {}]   ;;  %s9166_s5 = inlined_call_operand.vmem [shape: f32[2,1,16], index: 5, kind: input, shape index: {}]   ;;  %s9167_s6 = inlined_call_operand.vmem [shape: f32[2,1,16], index: 6, kind: input, shape index: {}]   ;;  %s9168_s7 = inlined_call_operand.vmem [shape: bf16[2,144,16], index: 7, kind: input, shape index: {}]   ;;  %s9169_s8 = inlined_call_operand.vmem [shape: f32[2,1,16], index: 8, kind: input, shape index: {}]   ;;  %s9170_s9 = inlined_call_operand.vmem [shape: f32[2,1,16], index: 9, kind: input, shape index: {}]   ;;  %s9171_s10 = inlined_call_operand.vmem [shape: bf16[144,32], index: 10, kind: input, shape index: {}]   ;;  %s9172_s11 = inlined_call_operand.vmem [shape: f32[1,32], index: 11, kind: input, shape index: {}]   ;;  %s9173_s12 = inlined_call_operand.vmem [shape: f32[1,32], index: 12, kind: input, shape index: {}]   ;;  %s9174_s13 = inlined_call_operand.vmem [shape: bf16[144,3], index: 13, kind: input, shape index: {}]   ;;  %s9175_s14 = inlined_call_operand.vmem [shape: f32[1,3], index: 14, kind: input, shape index: {}]   ;;  %s9176_s15 = inlined_call_operand.vmem [shape: f32[1,3], index: 15, kind: input, shape index: {}]   ;;  %s9177_s16 = inlined_call_operand.vmem [shape: bf16[1,2,64,32], index: 16, kind: output, shape index: {0}]   ;;  %s9178_s17 = inlined_call_operand.vmem [shape: bf16[1,2,64,3], index: 17, kind: output, shape index: {1}]  }
   0x1   :  { %9185 = sst [smem:[#allocation6_spill]] %s9161_s0  ;;  %s6550_s26 = smov 0  }
   0x2   :  { %9186 = sst [smem:[#allocation7_spill]] %s9162_s1 }
   0x3   :  { %9187 = sst [smem:[#allocation8_spill]] %s9176_s15 }
   0x4   :  { %9188 = sst [smem:[#allocation9_spill]] %s9177_s16 }
   0x5   :  { %9189 = sst [smem:[#allocation10_spill]] %s9178_s17 }
   0x6 LB: > { %9190 = sst [smem:[#allocation3_spill]] %s6423_s25  ;;  %s37_s27 = sadd.s32 1, %s6423_s25  ;;  %s6427_s26 = sphi %s6550_s26, %s28_s26   ;;  %s6423_s25 = sphi %s6548_s25, %s9210_s25   ;;  %s6419_s24 = sphi %s6546_s24, %s9209_s24  }
   0x7   : > { %9191 = sst [smem:[#allocation4_spill]] %s6427_s26  ;;  %p5049_p0 = scmp.ge.s32.totalorder %s6427_s26, 1 }
   0x8   : > { %p38_p1 = scmp.ge.s32.totalorder %s37_s27, 2  ;;  %p556_p2 = scmp.lt.s32.totalorder %s6427_s26, 3 }
   0xa   : > { %s9212_s27 = smov (%p38_p1, %s37_s27), 0  ;;  %p557_p3 = pnand %p5049_p0, %p556_p2 }
   0xb   : > { %9192 = sst [smem:[#allocation5_spill]] %s9212_s27  ;;  %p643_p4 = scmp.lt.s32.totalorder (!%p557_p3), %s6419_s24, 1 }
   0xc   : > { %560 = sbr.rel (%p557_p3) target bundleno = 1717 (0x6b5), region = 84  ;;  %p5052_p5 = scmp.ne.s32.totalorder (!%p557_p3), %s6419_s24, 0 }
  0x11   : > { %s6568_s28 = scalar_select %p643_p4, %s6419_s24, 1 }
  0x12   : > { %679 = sbr.rel (%p5052_p5) target bundleno = 490 (0x1ea), region = 88  ;;  %s9193_s21 = sld [smem:[#allocation6_spill]] (!%p5052_p5) }
  0x13   : > { %s5244_s29 = smul.u32 72, %s6568_s28  ;;  %s653_s20 = scalar_lea.vmem %s9167_s6, %s6568_s28 }
  0x14   : > { %s6430_s27 = smov (!%p5052_p5), 3   ;;  %s6431_s30 = smov (!%p5052_p5), 6  }
  0x15   : > { %s6586_s26 = scalar_lea.vmem %s9165_s4, %s5244_s29  ;;  %s6591_s15 = scalar_lea.vmem %s9168_s7, %s5244_s29 }
  0x16   : > { %s6432_s22 = smov (!%p5052_p5), 9   ;;  %s6433_s1 = smov (!%p5052_p5), 12  }
  0x17   : > { %vm749_vm0 = vcmask 1040384   ;;  %vm814_vm1 = vcmask 1046528   ;;  %v6429_v7 = vmov 0.0   ;;  %vm905_vm2 = vcmask 1045504   ;;  %s6434_s25 = smov 15   ;;  %s6435_s16 = smov 18  }
  0x18   : > { %v682_v0 = vld [vmem:[%s9193_s21 + $0x10] sm:$0xff]  ;;  %v689_v1 = vld [vmem:[%s9193_s21 + $0x48] sm:$0xff]  ;;  %v687_v2 = vld [vmem:[%s9193_s21 + $0x38] sm:$0xff]  ;;  %v715_v8 = vrot.slane %v6429_v7, 7  ;;  %vm1473_vm3 = vcmask 1044480   ;;  %s9194_s0 = sld [smem:[#allocation7_spill]] }
  0x19   : > { %v718_v3 = vrot.slane %v682_v0, 7  ;;  %v725_v4 = vrot.slane %v689_v1, 7  ;;  %v680_v5 = vld [vmem:[%s9193_s21] sm:$0xff]  ;;  %v681_v6 = vld [vmem:[%s9193_s21 + $0x8] sm:$0xff]  ;;  %v723_v9 = vrot.slane %v687_v2, 7  ;;  %v683_v35 = vld [vmem:[%s9193_s21 + $0x18] sm:$0xff] }
  0x1a   : > { %v716_v10 = vrot.slane %v680_v5, 7  ;;  %v717_v11 = vrot.slane %v681_v6, 7  ;;  %v6632_v22 = vsel %vm749_vm0, 0.0, %v715_v8  ;;  %v6641_v25 = vsel %vm749_vm0, %v715_v8, 0.0  ;;  %v690_v36 = vld [vmem:[%s9193_s21 + $0x50] sm:$0xff]  ;;  %v688_v41 = vld [vmem:[%s9193_s21 + $0x40] sm:$0xff] }
  0x1b   : > { %v6614_v12 = vsel %vm749_vm0, 0.0, %v718_v3  ;;  %v6617_v13 = vsel %vm749_vm0, 0.0, %v725_v4  ;;  %v6620_v14 = vsel %vm749_vm0, %v718_v3, 0.0  ;;  %v6623_v15 = vsel %vm749_vm0, %v725_v4, 0.0  ;;  %s6437_s19 = smov 21   ;;  %s6438_s17 = smov 24  }
  0x1c   : > { %v824_v16 = vrot.slane %v6614_v12, 1  ;;  %v825_v17 = vrot.slane %v6620_v14, 1  ;;  %v842_v18 = vrot.slane %v6617_v13, 1  ;;  %v843_v19 = vrot.slane %v6623_v15, 1 }
  0x1d   : > { %v916_v20 = vrot.slane %v6620_v14, 2  ;;  %v934_v21 = vrot.slane %v6623_v15, 2  ;;  %v6644_v26 = vsel %vm749_vm0, %v723_v9, 0.0  ;;  %v6649_v28 = vsel %vm749_vm0, 0.0, %v723_v9 }
  0x1e   : > { %v6635_v23 = vsel %vm814_vm1, %v824_v16, %v825_v17  ;;  %v6638_v24 = vsel %vm814_vm1, %v842_v18, %v843_v19  ;;  %v815_v29 = vrot.slane %v6632_v22, 1  ;;  %v816_v30 = vrot.slane %v6641_v25, 1 }
  0x1f   : > { %v5306_v27 = vpack.i.bf16 %v6638_v24, %v6635_v23  ;;  %v1048_v31 = vrot.slane %v6649_v28, 1  ;;  %v1049_v32 = vrot.slane %v6644_v26, 1  ;;  %v6656_v33 = vsel %vm749_vm0, 0.0, %v716_v10 }
  0x20   : > { %v6659_v34 = vsel %vm749_vm0, 0.0, %v717_v11  ;;  %v6669_v37 = vsel %vm814_vm1, %v815_v29, %v816_v30  ;;  %v768_v38 = vsel %vm749_vm0, %v716_v10, 0.0  ;;  %v769_v39 = vsel %vm749_vm0, %v717_v11, 0.0 }
  0x21   : > { %5307 = vrot.lane.b32.xlu1 %v5306_v27, %s6430_s27  ;;  %v818_v40 = vrot.slane %v6656_v33, 1  ;;  %v6678_v42 = vsel %vm814_vm1, %v1048_v31, %v1049_v32  ;;  %v819_v43 = vrot.slane %v768_v38, 1  ;;  %v821_v44 = vrot.slane %v6659_v34, 1 }
  0x22   : > { %v822_v45 = vrot.slane %v769_v39, 1  ;;  %v907_v46 = vrot.slane %v6641_v25, 2  ;;  %v719_v48 = vrot.slane %v683_v35, 7  ;;  %v726_v49 = vrot.slane %v690_v36, 7 }
  0x23   : > { %v6685_v50 = vsel %vm814_vm1, %v818_v40, %v819_v43  ;;  %v910_v52 = vrot.slane %v768_v38, 2  ;;  %v724_v53 = vrot.slane %v688_v41, 7  ;;  %v912_v3 = vrot.slane %v6659_v34, 2  ;;  %v691_v41 = vld [vmem:[%s9193_s21 + $0x58] sm:$0xff] }
  0x24   : > { %v6688_v51 = vsel %vm814_vm1, %v821_v44, %v822_v45  ;;  %v5296_v54 = vpack.i.bf16 %v6685_v50, %v6669_v37  ;;  %v6693_v55 = vsel %vm749_vm0, 0.0, %v719_v48  ;;  %v6696_v56 = vsel %vm749_vm0, 0.0, %v726_v49 }
  0x25   : > { %v771_v57 = vsel %vm749_vm0, %v719_v48, 0.0  ;;  %v778_v58 = vsel %vm749_vm0, %v726_v49, 0.0  ;;  %v827_v59 = vrot.slane %v6693_v55, 1  ;;  %v845_v60 = vrot.slane %v6696_v56, 1 }
  0x26   : > { %5297 = vrot.lane.b32.xlu0 %v5296_v54, %s6430_s27  ;;  %v828_v61 = vrot.slane %v771_v57, 1  ;;  %v846_v62 = vrot.slane %v778_v58, 1  ;;  %v6704_v63 = vsel %vm749_vm0, 0.0, %v724_v53  ;;  %v776_v0 = vsel %vm749_vm0, %v724_v53, 0.0  ;;  %v694_v54 = vld [vmem:[%s9193_s21 + $0x70] sm:$0xff] }
  0x27   : > { %v839_v1 = vrot.slane %v6704_v63, 1  ;;  %v840_v2 = vrot.slane %v776_v0, 1  ;;  %v913_v4 = vrot.slane %v769_v39, 2  ;;  %v930_v7 = vrot.slane %v6704_v63, 2 }
  0x28   : > { %v6710_v5 = vsel %vm814_vm1, %v827_v59, %v828_v61  ;;  %v6713_v6 = vsel %vm814_vm1, %v845_v60, %v846_v62  ;;  %v931_v8 = vrot.slane %v776_v0, 2  ;;  %v906_v16 = vrot.slane %v6632_v22, 2 }
  0x29   : > { %v5311_v9 = vpack.i.bf16 %v6710_v5, %v6713_v6  ;;  %v6719_v10 = vsel %vm814_vm1, %v839_v1, %v840_v2  ;;  %v6722_v11 = vsel %vm905_vm2, %v912_v3, %v913_v4  ;;  %v909_v19 = vrot.slane %v6656_v33, 2 }
  0x2a   : > { %v5301_v17 = vpack.i.bf16 %v6688_v51, %v6719_v10  ;;  %v6728_v18 = vsel %vm905_vm2, %v930_v7, %v931_v8  ;;  %v918_v25 = vrot.slane %v6693_v55, 2  ;;  %v6736_v29 = vsel %vm905_vm2, %v906_v16, %v907_v46  ;;  %v686_v7 = vld [vmem:[%s9193_s21 + $0x30] sm:$0xff]  ;;  %v693_v8 = vld [vmem:[%s9193_s21 + $0x68] sm:$0xff] }
  0x2b   : > { %5312 = vrot.lane.b32.xlu1 %v5311_v9, %s6430_s27  ;;  %v5321_v27 = vpack.i.bf16 %v6722_v11, %v6728_v18  ;;  %v919_v30 = vrot.slane %v771_v57, 2  ;;  %v936_v31 = vrot.slane %v6696_v56, 2  ;;  %v6741_v32 = vsel %vm905_vm2, %v909_v19, %v910_v52  ;;  %v685_v52 = vld [vmem:[%s9193_s21 + $0x28] sm:$0xff] }
  0x2c   : > { %5302 = vrot.lane.b32.xlu0 %v5301_v17, %s6430_s27  ;;  %v937_v35 = vrot.slane %v778_v58, 2  ;;  %v915_v36 = vrot.slane %v6614_v12, 2  ;;  %v933_v38 = vrot.slane %v6617_v13, 2  ;;  %v5316_v39 = vpack.i.bf16 %v6741_v32, %v6736_v29 }
  0x2d   : > { %v6748_v40 = vsel %vm905_vm2, %v918_v25, %v919_v30  ;;  %v727_v14 = vrot.slane %v691_v41, 7  ;;  %v5341_v15 = vpack.i.bf16 %v6617_v13, %v6704_v63  ;;  %v5346_v57 = vpack.i.bf16 %v6693_v55, %v6614_v12 }
  0x2e   : > { %v6754_v43 = vsel %vm905_vm2, %v936_v31, %v937_v35  ;;  %v6759_v44 = vsel %vm905_vm2, %v915_v36, %v916_v20  ;;  %v6764_v45 = vsel %vm905_vm2, %v933_v38, %v934_v21  ;;  %v5336_v20 = vpack.i.bf16 %v6659_v34, %v6656_v33 }
  0x2f   : > { %5322 = vrot.lane.b32.xlu1 %v5321_v27, %s6431_s30  ;;  %v5331_v46 = vpack.i.bf16 %v6748_v40, %v6754_v43  ;;  %v5326_v48 = vpack.i.bf16 %v6764_v45, %v6759_v44  ;;  %v6779_v21 = vsel %vm749_vm0, 0.0, %v727_v14  ;;  %v779_v49 = vsel %vm749_vm0, %v727_v14, 0.0 }
  0x30   : > { %5317 = vrot.lane.b32.xlu0 %v5316_v39, %s6431_s30  ;;  %v5351_v53 = vpack.i.bf16 %v6779_v21, %v6696_v56  ;;  %v848_v58 = vrot.slane %v6779_v21, 1  ;;  %v849_v59 = vrot.slane %v779_v49, 1  ;;  %v721_v60 = vrot.slane %v685_v52, 7 }
  0x31   : > { %v730_v0 = vrot.slane %v694_v54, 7  ;;  %v5356_v1 = vpack.i.bf16 %v6688_v51, %v6685_v50  ;;  %v5361_v2 = vpack.i.bf16 %v6638_v24, %v6719_v10  ;;  %v5366_v9 = vpack.i.bf16 %v6710_v5, %v6635_v23 }
  0x32   : > { %v6796_v61 = vsel %vm749_vm0, 0.0, %v721_v60  ;;  %v773_v62 = vsel %vm749_vm0, %v721_v60, 0.0  ;;  %v6813_v50 = vsel %vm814_vm1, %v848_v58, %v849_v59  ;;  %v5381_v17 = vpack.i.bf16 %v6764_v45, %v6728_v18  ;;  %v695_v60 = vld [vmem:[%s9193_s21 + $0x78] sm:$0xff] }
  0x33   : > { %5332 = vrot.lane.b32.xlu1 %v5331_v46, %s6431_s30  ;;  %v833_v3 = vrot.slane %v6796_v61, 1  ;;  %v834_v4 = vrot.slane %v773_v62, 1  ;;  %v6818_v10 = vsel %vm749_vm0, 0.0, %v730_v0  ;;  %v782_v16 = vsel %vm749_vm0, %v730_v0, 0.0  ;;  %v692_v0 = vld [vmem:[%s9193_s21 + $0x60] sm:$0xff] }
  0x34   : > { %5327 = vrot.lane.b32.xlu0 %v5326_v48, %s6431_s30  ;;  %v939_v19 = vrot.slane %v6779_v21, 2  ;;  %v857_v27 = vrot.slane %v6818_v10, 1  ;;  %v940_v30 = vrot.slane %v779_v49, 2  ;;  %v858_v31 = vrot.slane %v782_v16, 1 }
  0x35   : > { %v6825_v25 = vsel %vm814_vm1, %v833_v3, %v834_v4  ;;  %v722_v35 = vrot.slane %v686_v7, 7  ;;  %v729_v36 = vrot.slane %v693_v8, 7  ;;  %v5371_v38 = vpack.i.bf16 %v6813_v50, %v6713_v6 }
  0x36   : > { %v924_v39 = vrot.slane %v6796_v61, 2  ;;  %v925_v18 = vrot.slane %v773_v62, 2  ;;  %v948_v41 = vrot.slane %v6818_v10, 2  ;;  %v6835_v46 = vsel %vm814_vm1, %v857_v27, %v858_v31 }
  0x37   : > { %5342 = vrot.lane.b32.xlu1 %v5341_v15, %s6432_s22  ;;  %v6838_v48 = vsel %vm749_vm0, 0.0, %v722_v35  ;;  %v6841_v14 = vsel %vm749_vm0, 0.0, %v729_v36  ;;  %v774_v15 = vsel %vm749_vm0, %v722_v35, 0.0  ;;  %v949_v58 = vrot.slane %v782_v16, 2 }
  0x38   : > { %5337 = vrot.lane.b32.xlu0 %v5336_v20, %s6432_s22  ;;  %v781_v20 = vsel %vm749_vm0, %v729_v36, 0.0  ;;  %v836_v49 = vrot.slane %v6838_v48, 1  ;;  %v837_v52 = vrot.slane %v774_v15, 1  ;;  %v927_v59 = vrot.slane %v6838_v48, 2 }
  0x39   : > { %v855_v54 = vrot.slane %v781_v20, 1  ;;  %v6856_v62 = vsel %vm905_vm2, %v939_v19, %v940_v30  ;;  %v945_v3 = vrot.slane %v6841_v14, 2  ;;  %v5376_v4 = vpack.i.bf16 %v6722_v11, %v6741_v32  ;;  %v684_v19 = vld [vmem:[%s9193_s21 + $0x20] sm:$0xff] }
  0x3a   : > { %v6872_v8 = vsel %vm905_vm2, %v948_v41, %v949_v58  ;;  %v946_v16 = vrot.slane %v781_v20, 2  ;;  %v5391_v32 = vpack.i.bf16 %v6856_v62, %v6754_v43  ;;  %v728_v31 = vrot.slane %v692_v0, 7 }
  0x3b   : > { %5352 = vrot.lane.b32.xlu1 %v5351_v53, %s6432_s22  ;;  %v854_v53 = vrot.slane %v6841_v14, 1  ;;  %v5386_v41 = vpack.i.bf16 %v6748_v40, %v6759_v44  ;;  %v5396_v58 = vpack.i.bf16 %v6614_v12, %v6659_v34  ;;  %v6436_v47 = vmov 65535  }
  0x3c   : > { %5347 = vrot.lane.b32.xlu0 %v5346_v57, %s6432_s22  ;;  %v6848_v57 = vsel %vm905_vm2, %v924_v39, %v925_v18  ;;  %v6885_v35 = vsel %vm905_vm2, %v945_v3, %v946_v16  ;;  %v6912_v0 = vsel %vm749_vm0, 0.0, %v728_v31  ;;  %vm1291_vm4 = vcmask 23552  }
  0x3d   : > { %v6869_v7 = vsel %vm814_vm1, %v854_v53, %v855_v54  ;;  %v1102_v53 = vrot.slane %v6649_v28, 2  ;;  %v5401_v54 = vpack.i.bf16 %v6696_v56, %v6617_v13  ;;  %vm1307_vm5 = vcmask 48128  }
  0x3e   : > { %vm1323_vm6 = vcmask 72704   ;;  %vm1340_vm7 = vcmask 97280   ;;  %vm1357_vm8 = vcmask 121856   ;;  %vm1374_vm9 = vcmask 146432  }
  0x3f   : > { %5362 = vrot.lane.b32.xlu1 %v5361_v2, %s6433_s1  ;;  %v928_v2 = vrot.slane %v774_v15, 2  ;;  %v720_v15 = vrot.slane %v684_v19, 7  ;;  %vm1391_vm10 = vcmask 171008   ;;  %vm1408_vm11 = vcmask 195584  }
  0x40   : > { %5357 = vrot.lane.b32.xlu0 %v5356_v1, %s6433_s1  ;;  %v6862_v1 = vsel %vm814_vm1, %v836_v49, %v837_v52  ;;  %vm1448_vm12 = vcmask 220160   ;;  %vm1636_vm13 = vcmask 130048  }
  0x41   : > { %v5466_v27 = vpack.i.bf16 %v6869_v7, %v6862_v1  ;;  %v6880_v30 = vsel %vm905_vm2, %v927_v59, %v928_v2  ;;  %v5516_v18 = vpack.i.bf16 %v6678_v42, %v6862_v1  ;;  %v6923_v16 = vsel %vm749_vm0, 0.0, %v720_v15 }
  0x42   : > { %v5481_v36 = vpack.i.bf16 %v6885_v35, %v6880_v30 }
  0x43   : > { %5372 = vrot.lane.b32.xlu1 %v5371_v38, %s6433_s1 }
  0x44   : > { %5367 = vrot.lane.b32.xlu0 %v5366_v9, %s6433_s1  ;;  %v731_v9 = vrot.slane %v695_v60, 7  ;;  %v1103_v60 = vrot.slane %v6644_v26, 2 }
  0x46   : > { %v6891_v38 = vsel %vm749_vm0, 0.0, %v731_v9  ;;  %v783_v39 = vsel %vm749_vm0, %v731_v9, 0.0  ;;  %v6928_v19 = vsel %vm905_vm2, %v1102_v53, %v1103_v60  ;;  %v851_v53 = vrot.slane %v6912_v0, 1 }
  0x47   : > { %5382 = vrot.lane.b32.xlu1 %v5381_v17, %s6434_s25  ;;  %v1051_v20 = vrot.slane %v6891_v38, 1  ;;  %v1052_v17 = vrot.slane %v783_v39, 1  ;;  %v1105_v49 = vrot.slane %v6891_v38, 2  ;;  %v1106_v52 = vrot.slane %v783_v39, 2 }
  0x48   : > { %5377 = vrot.lane.b32.xlu0 %v5376_v4, %s6434_s25  ;;  %v1474_v9 = vsel %vm1473_vm3, 4294967295, %v6436_v47  ;;  %v5592_v47 = vld [vmem:[%s9194_s0] sm:$0xff]  }
  0x49   : > { %v6907_v59 = vsel %vm814_vm1, %v1051_v20, %v1052_v17  ;;  %v6917_v3 = vsel %vm905_vm2, %v1105_v49, %v1106_v52  ;;  %v772_v17 = vsel %vm749_vm0, %v720_v15, 0.0  ;;  %v5406_v52 = vpack.i.bf16 %v6923_v16, %v6693_v55 }
  0x4a   : > { %v5521_v2 = vpack.i.bf16 %v6907_v59, %v6835_v46  ;;  %v5541_v26 = vpack.i.bf16 %v6917_v3, %v6872_v8  ;;  %v830_v20 = vrot.slane %v6923_v16, 1  ;;  %v831_v15 = vrot.slane %v772_v17, 1 }
  0x4b   : > { %5392 = vrot.lane.b32.xlu1 %v5391_v32, %s6434_s25  ;;  %v780_v32 = vsel %vm749_vm0, %v728_v31, 0.0  ;;  %v5411_v31 = vpack.i.bf16 %v6912_v0, %v6779_v21  ;;  %v5421_v49 = vpack.i.bf16 %v6713_v6, %v6638_v24  ;;  %v5436_v6 = vpack.i.bf16 %v6759_v44, %v6722_v11 }
  0x4c   : > { %5387 = vrot.lane.b32.xlu0 %v5386_v41, %s6434_s25  ;;  %v852_v60 = vrot.slane %v780_v32, 1  ;;  %v5591_v41 = vld [vmem:[%s9194_s0 + $0x8] sm:$0x3f]   ;;  %v832_v4 = vsel %vm814_vm1, %v830_v20, %v831_v15  ;;  %v5556_v15 = vpack.i.bf16 %v6632_v22, %v6649_v28 }
  0x4f   : > { %5402 = vrot.lane.b32.xlu1 %v5401_v54, %s6435_s16  ;;  %v5416_v54 = vpack.i.bf16 %v6635_v23, %v6688_v51  ;;  %v5426_v23 = vpack.i.bf16 %v832_v4, %v6710_v5  ;;  %v5441_v51 = vpack.i.bf16 %v6754_v43, %v6764_v45  ;;  %v942_v5 = vrot.slane %v6912_v0, 2 }
  0x50   : > { %5397 = vrot.lane.b32.xlu0 %v5396_v58, %s6435_s16  ;;  %v853_v58 = vsel %vm814_vm1, %v851_v53, %v852_v60  ;;  %v5446_v45 = vpack.i.bf16 %v6813_v50, %v832_v4 }
  0x51   : > { %v5431_v24 = vpack.i.bf16 %v853_v58, %v6813_v50  ;;  %v5451_v43 = vpack.i.bf16 %v6825_v25, %v853_v58 }
  0x53   : > { %5412 = vrot.lane.b32.xlu1 %v5411_v31, %s6435_s16  ;;  %v1475_v31 = vsel %vm905_vm2, %v1474_v9, 0  ;;  %v943_v9 = vrot.slane %v780_v32, 2 }
  0x54   : > { %5407 = vrot.lane.b32.xlu0 %v5406_v52, %s6435_s16  ;;  %v1477_v39 = vand.u32 %v5591_v41, %v1475_v31  ;;  %v922_v41 = vrot.slane %v772_v17, 2  ;;  %v5511_v52 = vpack.i.bf16 %v6869_v7, %v853_v58  ;;  %v9197_v58 = vpack.i.bf16 %v6862_v1, %v6825_v25 }
  0x55   : > { %v944_v11 = vsel %vm905_vm2, %v942_v5, %v943_v9 }
  0x56   : > { %5220 = vmatprep.subr.bf16.mxu0 %v1477_v39  ;;  %5240 = vmatprep.subr.bf16.mxu1 %v1477_v39  ;;  %v5461_v32 = vpack.i.bf16 %v944_v11, %v6856_v62  ;;  %v5476_v50 = vpack.i.bf16 %v6848_v57, %v944_v11  ;;  %v5531_v53 = vpack.i.bf16 %v6885_v35, %v944_v11 }
  0x57   : > { %5422 = vrot.lane.b32.xlu1 %v5421_v49, %s6437_s19  ;;  %5221 = vmatpush3.bf16.msra.mxu0 %v1477_v39  ;;  %v5496_v49 = vpack.i.bf16 %v6649_v28, %v6838_v48  ;;  %v9198_v28 = vpack.i.bf16 %v6669_v37, %v6678_v42  ;;  %v9201_v37 = vpack.i.bf16 %v6736_v29, %v6928_v19 }
  0x58   : > { %5417 = vrot.lane.b32.xlu0 %v5416_v54, %s6437_s19  ;;  %5242 = vmatpush3.bf16.msra.mxu1 %v1477_v39  ;;  %v921_v39 = vrot.slane %v6923_v16, 2 }
  0x59   : > { %5222 = vmatprep.subr.bf16.mxu0 %v5592_v47  ;;  %5241 = vmatprep.subr.bf16.mxu1 %v5592_v47 }
  0x5a   : > { %v923_v44 = vsel %vm905_vm2, %v921_v39, %v922_v41 }
  0x5b   : > { %5432 = vrot.lane.b32.xlu1 %v5431_v24, %s6437_s19  ;;  %5223 = vmatpush3.bf16.msra.mxu0 %v5592_v47  ;;  %v5456_v20 = vpack.i.bf16 %v923_v44, %v6748_v40  ;;  %v5471_v17 = vpack.i.bf16 %v6856_v62, %v923_v44  ;;  %v5491_v40 = vpack.i.bf16 %v6841_v14, %v6912_v0 }
  0x5c   : > { %5427 = vrot.lane.b32.xlu0 %v5426_v23, %s6437_s19  ;;  %5243 = vmatpush3.bf16.msra.mxu1 %v5592_v47  ;;  %v5501_v62 = vpack.i.bf16 %v6891_v38, %v6818_v10  ;;  %v5526_v60 = vpack.i.bf16 %v6848_v57, %v923_v44 }
  0x5f   : > { %5442 = vrot.lane.b32.xlu1 %v5441_v51, %s6438_s17 }
  0x60   : > { %5437 = vrot.lane.b32.xlu0 %v5436_v6, %s6438_s17 }
  0x63   : > { %5452 = vrot.lane.b32.xlu1 %v5451_v43, %s6430_s27 }
  0x64   : > { %5447 = vrot.lane.b32.xlu0 %v5446_v45, %s6430_s27 }
  0x67   : > { %5462 = vrot.lane.b32.xlu1 %v5461_v32, %s6438_s17 }
  0x68   : > { %5457 = vrot.lane.b32.xlu0 %v5456_v20, %s6438_s17 }
  0x6b   : > { %888 = vrot.lane.b32.xlu1 %v6835_v46, %s6430_s27 }
  0x6c   : > { %5467 = vrot.lane.b32.xlu0 %v5466_v27, %s6430_s27  ;;  %v5486_v27 = vpack.i.bf16 %v6796_v61, %v6923_v16 }
  0x6f   : > { %5477 = vrot.lane.b32.xlu1 %v5476_v50, %s6431_s30 }
  0x70   : > { %5472 = vrot.lane.b32.xlu0 %v5471_v17, %s6431_s30 }
  0x73   : > { %979 = vrot.lane.b32.xlu1 %v6872_v8, %s6431_s30 }
  0x74   : > { %5482 = vrot.lane.b32.xlu0 %v5481_v36, %s6431_s30  ;;  %v5506_v36 = vpack.i.bf16 %v6825_v25, %v832_v4  ;;  %v9195_v4 = vpack.i.bf16 %v6928_v19, %v6880_v30  ;;  %v9200_v25 = vpack.i.bf16 %v6880_v30, %v6848_v57 }
  0x77   : > { %5492 = vrot.lane.b32.xlu1 %v5491_v40, %s6432_s22 }
  0x78   : > { %5487 = vrot.lane.b32.xlu0 %v5486_v27, %s6432_s22 }
  0x7b   : > { %5502 = vrot.lane.b32.xlu1 %v5501_v62, %s6432_s22 }
  0x7c   : > { %5497 = vrot.lane.b32.xlu0 %v5496_v49, %s6432_s22 }
  0x7f   : > { %5512 = vrot.lane.b32.xlu1 %v5511_v52, %s6433_s1 }
  0x80   : > { %5507 = vrot.lane.b32.xlu0 %v5506_v36, %s6433_s1 }
  0x83   : > { %5522 = vrot.lane.b32.xlu1 %v5521_v2, %s6433_s1  ;;  %v5551_v2 = vpack.i.bf16 %v6818_v10, %v6841_v14 }
  0x84   : > { %5517 = vrot.lane.b32.xlu0 %v5516_v18, %s6433_s1  ;;  %v5546_v18 = vpack.i.bf16 %v6838_v48, %v6796_v61 }
  0x87   : > { %5532 = vrot.lane.b32.xlu1 %v5531_v53, %s6434_s25 }
  0x88   : > { %5527 = vrot.lane.b32.xlu0 %v5526_v60, %s6434_s25 }
  0x8b   : > { %5542 = vrot.lane.b32.xlu1 %v5541_v26, %s6434_s25  ;;  %v9196_v26 = vpack.i.bf16 %v6835_v46, %v6869_v7  ;;  %v9199_v46 = vpack.i.bf16 %v6872_v8, %v6885_v35 }
  0x8c   : > { %5537 = vrot.lane.b32.xlu0 %v9195_v4, %s6434_s25 }
  0x8f   : > { %5552 = vrot.lane.b32.xlu1 %v5551_v2, %s6435_s16 }
  0x90   : > { %5547 = vrot.lane.b32.xlu0 %v5546_v18, %s6435_s16 }
  0x93   : > { %1184 = vrot.lane.b32.xlu1 %v6891_v38, %s6435_s16  ;;  %v5308_v54 = vpop.permute.xlu1 %5307 }
  0x94   : > { %5557 = vrot.lane.b32.xlu0 %v5556_v15, %s6435_s16  ;;  %v5310_v39 = vunpack.i.h.bf16 %v5308_v54  ;;  %v5309_v41 = vunpack.i.l.bf16 %v5308_v54 }
  0x96   : > { %v1301_v27 = vsel %vm1291_vm4, %v6617_v13, %v5310_v39  ;;  %v1295_v62 = vsel %vm1291_vm4, %v6614_v12, %v5309_v41 }
  0x97   : > { %5567 = vrot.lane.b32.xlu1 %v9196_v26, %s6437_s19 }
  0x98   : > { %5562 = vrot.lane.b32.xlu0 %v9197_v58, %s6437_s19  ;;  %v5298_v31 = vpop.permute.xlu0 %5297 }
  0x99   : > { %v5300_v43 = vunpack.i.h.bf16 %v5298_v31  ;;  %v5299_v45 = vunpack.i.l.bf16 %v5298_v31 }
  0x9b   : > { %1229 = vrot.lane.b32.xlu1 %v6907_v59, %s6437_s19  ;;  %v1293_v52 = vsel %vm1291_vm4, %v6656_v33, %v5300_v43  ;;  %v1292_v36 = vsel %vm1291_vm4, %v6632_v22, %v5299_v45 }
  0x9c   : > { %5572 = vrot.lane.b32.xlu0 %v9198_v28, %s6437_s19 }
  0x9d   : > { %v5313_v38 = vpop.permute.xlu1 %5312 }
  0x9e   : > { %v5303_v24 = vpop.permute.xlu0 %5302  ;;  %v5315_v59 = vunpack.i.h.bf16 %v5313_v38  ;;  %v5314_v50 = vunpack.i.l.bf16 %v5313_v38 }
  0x9f   : > { %5582 = vrot.lane.b32.xlu1 %v9199_v46, %s6438_s17  ;;  %v5305_v11 = vunpack.i.h.bf16 %v5303_v24  ;;  %v5304_v32 = vunpack.i.l.bf16 %v5303_v24 }
  0xa0   : > { %5577 = vrot.lane.b32.xlu0 %v9200_v25, %s6438_s17  ;;  %v1296_v23 = vsel %vm1291_vm4, %v6693_v55, %v5315_v59  ;;  %v1302_v33 = vsel %vm1291_vm4, %v6696_v56, %v5314_v50 }
  0xa1   : > { %v5323_v1 = vpop.permute.xlu1 %5322  ;;  %v1294_v53 = vsel %vm1291_vm4, %v6659_v34, %v5305_v11  ;;  %v1300_v13 = vsel %vm1291_vm4, %v6704_v63, %v5304_v32 }
  0xa2   : > { %v5318_v7 = vpop.permute.xlu0 %5317  ;;  %v5325_v17 = vunpack.i.h.bf16 %v5323_v1  ;;  %v5324_v40 = vunpack.i.l.bf16 %v5323_v1 }
  0xa3   : > { %1274 = vrot.lane.b32.xlu1 %v6917_v3, %s6438_s17  ;;  %v5319_v49 = vunpack.i.l.bf16 %v5318_v7  ;;  %v5320_v60 = vunpack.i.h.bf16 %v5318_v7 }
  0xa4   : > { %5587 = vrot.lane.b32.xlu0 %v9201_v37, %s6438_s17  ;;  %v1310_v26 = vsel %vm1307_vm5, %v1294_v53, %v5325_v17  ;;  %v1316_v22 = vsel %vm1307_vm5, %v1300_v13, %v5324_v40 }
  0xa5   : > { %v5333_v42 = vpop.permute.xlu1 %5332  ;;  %v1308_v34 = vsel %vm1307_vm5, %v1292_v36, %v5319_v49  ;;  %v1309_v28 = vsel %vm1307_vm5, %v1293_v52, %v5320_v60 }
  0xa6   : > { %v5335_v8 = vunpack.i.h.bf16 %v5333_v42  ;;  %v5328_v35 = vpop.permute.xlu0 %5327  ;;  %v5334_v4 = vunpack.i.l.bf16 %v5333_v42 }
  0xa7   : > { %v5330_v18 = vunpack.i.h.bf16 %v5328_v35  ;;  %v5329_v12 = vunpack.i.l.bf16 %v5328_v35 }
  0xa8   : > { %v7083_v57 = vsel %vm1307_vm5, %v1296_v23, %v5335_v8  ;;  %v1318_v25 = vsel %vm1307_vm5, %v1302_v33, %v5334_v4 }
  0xa9   : > { %v5343_v30 = vpop.permute.xlu1 %5342  ;;  %v1317_v1 = vsel %vm1307_vm5, %v1301_v27, %v5330_v18  ;;  %v1311_v7 = vsel %vm1307_vm5, %v1295_v62, %v5329_v12 }
  0xaa   : > { %v7085_v47 = vpop.permute.xlu0 %5337  ;;  %v5344_v54 = vunpack.i.l.bf16 %v5343_v30  ;;  %v5345_v58 = vunpack.i.h.bf16 %v5343_v30 }
  0xab   : > { %v5340_v31 = vunpack.i.h.bf16 %v7085_v47  ;;  %v5339_v63 = vunpack.i.l.bf16 %v7085_v47 }
  0xac   : > { %v1332_v42 = vsel %vm1323_vm6, %v1308_v34, %v5344_v54  ;;  %v1333_v30 = vsel %vm1323_vm6, %v1316_v22, %v5345_v58 }
  0xad   : > { %v7087_v3 = vpop.permute.xlu1 %5352  ;;  %v1324_v47 = vsel %vm1323_vm6, %v1308_v34, %v5339_v63 }
  0xae   : > { %v7089_v51 = vpop.permute.xlu0 %5347  ;;  %v5355_v38 = vunpack.i.h.bf16 %v7087_v3  ;;  %v5354_v24 = vunpack.i.l.bf16 %v7087_v3  ;;  %v1325_v3 = vsel %vm1323_vm6, %v1309_v28, %v5340_v31 }
  0xaf   : > { %v5349_v56 = vunpack.i.l.bf16 %v7089_v51  ;;  %v5350_v59 = vunpack.i.h.bf16 %v7089_v51 }
  0xb0   : > { %v1334_v51 = vsel %vm1323_vm6, %v1317_v1, %v5354_v24  ;;  %v1335_v41 = vsel %vm1323_vm6, %v1318_v25, %v5355_v38 }
  0xb1   : > { %v7091_v29 = vpop.permute.xlu1 %5362  ;;  %v7153_v43 = vsel %vm1323_vm6, %v1310_v26, %v5349_v56  ;;  %v1327_v11 = vsel %vm1323_vm6, %v1311_v7, %v5350_v59 }
  0xb2   : > { %v7093_v19 = vpop.permute.xlu0 %5357  ;;  %v5365_v8 = vunpack.i.h.bf16 %v7091_v29  ;;  %v5364_v35 = vunpack.i.l.bf16 %v7091_v29 }
  0xb3   : > { %v5359_v23 = vunpack.i.l.bf16 %v7093_v19  ;;  %v5360_v39 = vunpack.i.h.bf16 %v7093_v19 }
  0xb4   : > { %v1349_v40 = vsel %vm1340_vm7, %v1332_v42, %v5364_v35  ;;  %v1350_v27 = vsel %vm1340_vm7, %v1333_v30, %v5365_v8 }
  0xb5   : > { %v7095_v6 = vpop.permute.xlu1 %5372  ;;  %v1341_v62 = vsel %vm1340_vm7, %v1324_v47, %v5359_v23  ;;  %v1342_v52 = vsel %vm1340_vm7, %v1325_v3, %v5360_v39 }
  0xb6   : > { %v7097_v5 = vpop.permute.xlu0 %5367  ;;  %v5374_v29 = vunpack.i.l.bf16 %v7095_v6  ;;  %v5375_v36 = vunpack.i.h.bf16 %v7095_v6 }
  0xb7   : > { %v5370_v53 = vunpack.i.h.bf16 %v7097_v5  ;;  %v5369_v60 = vunpack.i.l.bf16 %v7097_v5 }
  0xb9   : > { %v7099_v55 = vpop.permute.xlu1 %5382 }
  0xba   : > { %v7101_v9 = vpop.permute.xlu0 %5377  ;;  %v5385_v32 = vunpack.i.h.bf16 %v7099_v55  ;;  %v5384_v50 = vunpack.i.l.bf16 %v7099_v55  ;;  %v1351_v55 = vsel %vm1340_vm7, %v1334_v51, %v5374_v29 }
  0xbb   : > { %v5379_v19 = vunpack.i.l.bf16 %v7101_v9  ;;  %v5380_v49 = vunpack.i.h.bf16 %v7101_v9 }
  0xbc   : > { %v1366_v9 = vsel %vm1357_vm8, %v1349_v40, %v5384_v50  ;;  %v1367_v33 = vsel %vm1357_vm8, %v1350_v27, %v5385_v32 }
  0xbd   : > { %v7103_v44 = vpop.permute.xlu1 %5392  ;;  %v1358_v6 = vsel %vm1357_vm8, %v1341_v62, %v5379_v19  ;;  %v1359_v22 = vsel %vm1357_vm8, %v1342_v52, %v5380_v49  ;;  %v1352_v19 = vsel %vm1340_vm7, %v1335_v41, %v5375_v36  ;;  %v1343_v49 = vsel %vm1340_vm7, %v7153_v43, %v5369_v60 }
  0xbe   : > { %v7105_v20 = vpop.permute.xlu0 %5387  ;;  %v5395_v54 = vunpack.i.h.bf16 %v7103_v44  ;;  %v5394_v58 = vunpack.i.l.bf16 %v7103_v44 }
  0xbf   : > { %v5390_v31 = vunpack.i.h.bf16 %v7105_v20  ;;  %v5389_v38 = vunpack.i.l.bf16 %v7105_v20 }
  0xc0   : > { %v1368_v41 = vsel %vm1357_vm8, %v1351_v55, %v5394_v58  ;;  %v1369_v36 = vsel %vm1357_vm8, %v1352_v19, %v5395_v54 }
  0xc1   : > { %v7117_v2 = vpop.permute.xlu1 %5402  ;;  %v1360_v43 = vsel %vm1357_vm8, %v1343_v49, %v5389_v38 }
  0xc2   : > { %v7121_v15 = vpop.permute.xlu0 %5397  ;;  %v5405_v13 = vunpack.i.h.bf16 %v7117_v2  ;;  %v5404_v4 = vunpack.i.l.bf16 %v7117_v2 }
  0xc3   : > { %v5399_v18 = vunpack.i.l.bf16 %v7121_v15  ;;  %v5400_v26 = vunpack.i.h.bf16 %v7121_v15 }
  0xc4   : > { %v1383_v24 = vsel %vm1374_vm9, %v1366_v9, %v5404_v4  ;;  %v1384_v15 = vsel %vm1374_vm9, %v1367_v33, %v5405_v13 }
  0xc5   : > { %v7134_v46 = vpop.permute.xlu1 %5412  ;;  %v1375_v56 = vsel %vm1374_vm9, %v1358_v6, %v5399_v18  ;;  %v1376_v1 = vsel %vm1374_vm9, %v1359_v22, %v5400_v26 }
  0xc6   : > { %v7140_v37 = vpop.permute.xlu0 %5407  ;;  %v5415_v7 = vunpack.i.h.bf16 %v7134_v46  ;;  %v5414_v51 = vunpack.i.l.bf16 %v7134_v46  ;;  %v1344_v46 = vsel %vm1340_vm7, %v1327_v11, %v5370_v53 }
  0xc7   : > { %v5409_v40 = vunpack.i.l.bf16 %v7140_v37  ;;  %v1361_v11 = vsel %vm1357_vm8, %v1344_v46, %v5390_v31 }
  0xc8   : > { %v1385_v53 = vsel %vm1374_vm9, %v1368_v41, %v5414_v51  ;;  %v1386_v60 = vsel %vm1374_vm9, %v1369_v36, %v5415_v7 }
  0xc9   : > { %v5423_v45 = vpop.permute.xlu1 %5422 }
  0xca   : > { %v5418_v17 = vpop.permute.xlu0 %5417  ;;  %v5425_v34 = vunpack.i.h.bf16 %v5423_v45  ;;  %v5424_v2 = vunpack.i.l.bf16 %v5423_v45 }
  0xcb   : > { %v5420_v63 = vunpack.i.h.bf16 %v5418_v17  ;;  %v5419_v28 = vunpack.i.l.bf16 %v5418_v17  ;;  %v5410_v17 = vunpack.i.h.bf16 %v7140_v37 }
  0xcc   : > { %v1400_v23 = vsel %vm1391_vm10, %v1383_v24, %v5424_v2  ;;  %v1401_v20 = vsel %vm1391_vm10, %v1384_v15, %v5425_v34 }
  0xcd   : > { %v7172_v12 = vpop.permute.xlu1 %5432  ;;  %v1392_v30 = vsel %vm1391_vm10, %v1375_v56, %v5419_v28  ;;  %v1393_v47 = vsel %vm1391_vm10, %v1376_v1, %v5420_v63  ;;  %v1378_v55 = vsel %vm1374_vm9, %v1361_v11, %v5410_v17 }
  0xce   : > { %v7178_v5 = vpop.permute.xlu0 %5427  ;;  %v5435_v52 = vunpack.i.h.bf16 %v7172_v12  ;;  %v5434_v13 = vunpack.i.l.bf16 %v7172_v12  ;;  %v1377_v12 = vsel %vm1374_vm9, %v1360_v43, %v5409_v40 }
  0xcf   : > { %v5430_v37 = vunpack.i.h.bf16 %v7178_v5  ;;  %v5429_v4 = vunpack.i.l.bf16 %v7178_v5 }
  0xd0   : > { %v1402_v26 = vsel %vm1391_vm10, %v1385_v53, %v5434_v13  ;;  %v1403_v5 = vsel %vm1391_vm10, %v1386_v60, %v5435_v52 }
  0xd1   : > { %v5443_v25 = vpop.permute.xlu1 %5442  ;;  %v1394_v34 = vsel %vm1391_vm10, %v1377_v12, %v5429_v4  ;;  %v1395_v2 = vsel %vm1391_vm10, %v1378_v55, %v5430_v37 }
  0xd2   : > { %v5445_v59 = vunpack.i.h.bf16 %v5443_v25  ;;  %v5444_v42 = vunpack.i.l.bf16 %v5443_v25  ;;  %v5438_v44 = vpop.permute.xlu0 %5437 }
  0xd3   : > { %v5440_v8 = vunpack.i.h.bf16 %v5438_v44  ;;  %v5439_v35 = vunpack.i.l.bf16 %v5438_v44 }
  0xd4   : > { %v1417_v3 = vsel %vm1408_vm11, %v1400_v23, %v5444_v42  ;;  %v1418_v39 = vsel %vm1408_vm11, %v1401_v20, %v5445_v59 }
  0xd5   : > { %v7197_v29 = vpop.permute.xlu1 %5452  ;;  %v1409_v45 = vsel %vm1408_vm11, %v1392_v30, %v5439_v35  ;;  %v1410_v32 = vsel %vm1408_vm11, %v1393_v47, %v5440_v8  ;;  %v1429_v50 = vpack.c.bf16 %v1418_v39, %v1417_v3 }
  0xd6   : > { %v7204_v27 = vpop.permute.xlu0 %5447  ;;  %v1425_v62 = vpack.c.bf16 %v1410_v32, %v1409_v45  ;;  %v5455_v39 = vunpack.i.h.bf16 %v7197_v29  ;;  %v5454_v45 = vunpack.i.l.bf16 %v7197_v29 }
  0xd7   : > { %5232 = vmatprep.mubr.msk.bf16.mxu1 %vm1448_vm12, %v1429_v50  ;;  %v5450_v32 = vunpack.i.h.bf16 %v7204_v27  ;;  %v5449_v50 = vunpack.i.l.bf16 %v7204_v27 }
  0xd8   : > { %5224 = vmatprep.mubr.msk.bf16.mxu0 %vm1448_vm12, %v1425_v62  ;;  %v1298_v49 = vsel %vm1291_vm4, %v6796_v61, %v5455_v39  ;;  %v1304_v41 = vsel %vm1291_vm4, %v6912_v0, %v5454_v45 }
  0xd9   : > { %v5463_v18 = vpop.permute.xlu1 %5462  ;;  %v1303_v27 = vsel %vm1291_vm4, %v6779_v21, %v5450_v32  ;;  %v1297_v4 = vsel %vm1291_vm4, %v6923_v16, %v5449_v50 }
  0xda   : > { %v5465_v9 = vunpack.i.h.bf16 %v5463_v18  ;;  %v5464_v33 = vunpack.i.l.bf16 %v5463_v18  ;;  %v5458_v6 = vpop.permute.xlu0 %5457 }
  0xdb   : > { %v5460_v22 = vunpack.i.h.bf16 %v5458_v6  ;;  %v5459_v54 = vunpack.i.l.bf16 %v5458_v6 }
  0xdc   : > { %v1419_v58 = vsel %vm1408_vm11, %v1402_v26, %v5464_v33  ;;  %v1420_v31 = vsel %vm1408_vm11, %v1403_v5, %v5465_v9 }
  0xdd   : > { %v1430_v63 = vpack.c.bf16 %v1420_v31, %v1419_v58  ;;  %v1411_v28 = vsel %vm1408_vm11, %v1394_v34, %v5459_v54  ;;  %v1412_v38 = vsel %vm1408_vm11, %v1395_v2, %v5460_v22  ;;  %v889_v24 = vpop.permute.xlu1 %888 }
  0xde   : > { %v1426_v15 = vpack.c.bf16 %v1412_v38, %v1411_v28  ;;  %v5468_v56 = vpop.permute.xlu0 %5467  ;;  %v1306_v43 = vsel %vm1291_vm4, %v6818_v10, %v889_v24 }
  0xdf   : > { %5233 = vmatmul.mubr.msk.bf16.vlgmr.msra.gmra.mxu1 %vm1448_vm12, %v1430_v63  ;;  %v5470_v19 = vunpack.i.h.bf16 %v5468_v56  ;;  %v5469_v17 = vunpack.i.l.bf16 %v5468_v56 }
  0xe0   : > { %5225 = vmatmul.mubr.msk.bf16.vlgmr.msra.gmra.mxu0 %vm1448_vm12, %v1426_v15 }
  0xe1   : > { %v5478_v25 = vpop.permute.xlu1 %5477  ;;  %v1305_v61 = vsel %vm1291_vm4, %v6841_v14, %v5470_v19  ;;  %v1299_v11 = vsel %vm1291_vm4, %v6838_v48, %v5469_v17 }
  0xe2   : > { %v5473_v1 = vpop.permute.xlu0 %5472  ;;  %v5480_v40 = vunpack.i.h.bf16 %v5478_v25  ;;  %v5479_v46 = vunpack.i.l.bf16 %v5478_v25 }
  0xe3   : > { %v5474_v52 = vunpack.i.l.bf16 %v5473_v1  ;;  %v5475_v29 = vunpack.i.h.bf16 %v5473_v1 }
  0xe4   : > { %v1314_v0 = vsel %vm1307_vm5, %v1298_v49, %v5480_v40  ;;  %v1320_v21 = vsel %vm1307_vm5, %v1304_v41, %v5479_v46 }
  0xe5   : > { %v980_v7 = vpop.permute.xlu1 %979  ;;  %v1313_v12 = vsel %vm1307_vm5, %v1297_v4, %v5474_v52  ;;  %v1319_v10 = vsel %vm1307_vm5, %v1303_v27, %v5475_v29 }
  0xe6   : > { %v5483_v59 = vpop.permute.xlu0 %5482  ;;  %v1322_v14 = vsel %vm1307_vm5, %v1306_v43, %v980_v7 }
  0xe7   : > { %v5485_v36 = vunpack.i.h.bf16 %v5483_v59  ;;  %v5484_v37 = vunpack.i.l.bf16 %v5483_v59 }
  0xe9   : > { %v5493_v42 = vpop.permute.xlu1 %5492  ;;  %v1315_v48 = vsel %vm1307_vm5, %v1299_v11, %v5484_v37  ;;  %v1321_v33 = vsel %vm1307_vm5, %v1305_v61, %v5485_v36 }
  0xea   : > { %v5488_v44 = vpop.permute.xlu0 %5487  ;;  %v5495_v53 = vunpack.i.h.bf16 %v5493_v42  ;;  %v5494_v60 = vunpack.i.l.bf16 %v5493_v42 }
  0xeb   : > { %v5490_v16 = vunpack.i.h.bf16 %v5488_v44  ;;  %v5489_v55 = vunpack.i.l.bf16 %v5488_v44 }
  0xec   : > { %v1336_v54 = vsel %vm1323_vm6, %v1319_v10, %v5494_v60  ;;  %v1337_v34 = vsel %vm1323_vm6, %v1320_v21, %v5495_v53 }
  0xed   : > { %v7233_v8 = vpop.permute.xlu1 %5502  ;;  %v1328_v63 = vsel %vm1323_vm6, %v7083_v57, %v5489_v55  ;;  %v1329_v28 = vsel %vm1323_vm6, %v1313_v12, %v5490_v16 }
  0xee   : > { %v7235_v35 = vpop.permute.xlu0 %5497  ;;  %v5505_v6 = vunpack.i.h.bf16 %v7233_v8  ;;  %v5504_v26 = vunpack.i.l.bf16 %v7233_v8 }
  0xef   : > { %v5500_v5 = vunpack.i.h.bf16 %v7235_v35  ;;  %v5499_v22 = vunpack.i.l.bf16 %v7235_v35 }
  0xf0   : > { %v1339_v59 = vsel %vm1323_vm6, %v1322_v14, %v5505_v6  ;;  %v1338_v57 = vsel %vm1323_vm6, %v1321_v33, %v5504_v26 }
  0xf1   : > { %v7237_v23 = vpop.permute.xlu1 %5512  ;;  %v1330_v42 = vsel %vm1323_vm6, %v1314_v0, %v5499_v22  ;;  %v1331_v44 = vsel %vm1323_vm6, %v1315_v48, %v5500_v5 }
  0xf2   : > { %v7239_v20 = vpop.permute.xlu0 %5507  ;;  %v5515_v2 = vunpack.i.h.bf16 %v7237_v23  ;;  %v5514_v58 = vunpack.i.l.bf16 %v7237_v23 }
  0xf3   : > { %v5510_v38 = vunpack.i.h.bf16 %v7239_v20  ;;  %v5509_v24 = vunpack.i.l.bf16 %v7239_v20 }
  0xf4   : > { %v1353_v8 = vsel %vm1340_vm7, %v1336_v54, %v5514_v58  ;;  %v1354_v35 = vsel %vm1340_vm7, %v1337_v34, %v5515_v2 }
  0xf5   : > { %v7241_v30 = vpop.permute.xlu1 %5522  ;;  %v1345_v39 = vsel %vm1340_vm7, %v1328_v63, %v5509_v24 }
  0xf6   : > { %v7243_v47 = vpop.permute.xlu0 %5517  ;;  %v5525_v56 = vunpack.i.h.bf16 %v7241_v30  ;;  %v5524_v25 = vunpack.i.l.bf16 %v7241_v30 }
  0xf7   : > { %v5520_v1 = vunpack.i.h.bf16 %v7243_v47  ;;  %v5519_v7 = vunpack.i.l.bf16 %v7243_v47  ;;  %v1346_v47 = vsel %vm1340_vm7, %v1329_v28, %v5510_v38 }
  0xf8   : > { %v1356_v19 = vsel %vm1340_vm7, %v1339_v59, %v5525_v56  ;;  %v1355_v49 = vsel %vm1340_vm7, %v1338_v57, %v5524_v25 }
  0xf9   : > { %v7245_v3 = vpop.permute.xlu1 %5532  ;;  %v1347_v17 = vsel %vm1340_vm7, %v1330_v42, %v5519_v7  ;;  %v1348_v40 = vsel %vm1340_vm7, %v1331_v44, %v5520_v1 }
  0xfa   : > { %v7248_v51 = vpop.permute.xlu0 %5527  ;;  %v5535_v23 = vunpack.i.h.bf16 %v7245_v3  ;;  %v5534_v20 = vunpack.i.l.bf16 %v7245_v3 }
  0xfb   : > { %v5530_v45 = vunpack.i.h.bf16 %v7248_v51  ;;  %v5529_v32 = vunpack.i.l.bf16 %v7248_v51 }
  0xfc   : > { %v1370_v29 = vsel %vm1357_vm8, %v1353_v8, %v5534_v20  ;;  %v1371_v51 = vsel %vm1357_vm8, %v1354_v35, %v5535_v23 }
  0xfd   : > { %v7253_v62 = vpop.permute.xlu1 %5542  ;;  %v1362_v4 = vsel %vm1357_vm8, %v1345_v39, %v5529_v32  ;;  %v1363_v43 = vsel %vm1357_vm8, %v1346_v47, %v5530_v45 }
  0xfe   : > { %v7257_v13 = vpop.permute.xlu0 %5537  ;;  %v5545_v3 = vunpack.i.h.bf16 %v7253_v62  ;;  %v5544_v46 = vunpack.i.l.bf16 %v7253_v62 }
  0xff   : > { %v5540_v0 = vunpack.i.h.bf16 %v7257_v13  ;;  %v5539_v53 = vunpack.i.l.bf16 %v7257_v13 }
 0x100   : > { %v1373_v21 = vsel %vm1357_vm8, %v1356_v19, %v5545_v3  ;;  %v1372_v55 = vsel %vm1357_vm8, %v1355_v49, %v5544_v46  ;;  %v7369_v3 = vld [vmem:[%s9163_s2] ss:$0 sm:$0xff] }
 0x101   : > { %v7272_v18 = vpop.permute.xlu1 %5552  ;;  %v1365_v7 = vsel %vm1357_vm8, %v1348_v40, %v5540_v0  ;;  %v7374_v46 = vld [vmem:[%s9164_s3] ss:$0 sm:$0xff] }
 0x102   : > { %v7276_v9 = vpop.permute.xlu0 %5547  ;;  %v5555_v52 = vunpack.i.h.bf16 %v7272_v18  ;;  %v5554_v41 = vunpack.i.l.bf16 %v7272_v18 }
 0x103   : > { %v5550_v36 = vunpack.i.h.bf16 %v7276_v9  ;;  %v5549_v37 = vunpack.i.l.bf16 %v7276_v9 }
 0x104   : > { %v1387_v12 = vsel %vm1374_vm9, %v1370_v29, %v5554_v41  ;;  %v1388_v16 = vsel %vm1374_vm9, %v1371_v51, %v5555_v52 }
 0x105   : > { %v7290_v31 = vpop.permute.xlu1 %1184  ;;  %v1379_v9 = vsel %vm1374_vm9, %v1362_v4, %v5549_v37  ;;  %v1380_v10 = vsel %vm1374_vm9, %v1363_v43, %v5550_v36 }
 0x106   : > { %v7297_v15 = vpop.permute.xlu0 %5557  ;;  %v1389_v59 = vsel %vm1374_vm9, %v1372_v55, %v7290_v31 }
 0x107   : > { %v5560_v14 = vunpack.i.h.bf16 %v7297_v15  ;;  %v5559_v48 = vunpack.i.l.bf16 %v7297_v15  ;;  %v1364_v15 = vsel %vm1357_vm8, %v1347_v17, %v5539_v53 }
 0x109   : > { %v5568_v30 = vpop.permute.xlu1 %5567  ;;  %v1390_v57 = vsel %vm1374_vm9, %v1373_v21, %v5560_v14  ;;  %v1381_v35 = vsel %vm1374_vm9, %v1364_v15, %v5559_v48  ;;  %v1382_v23 = vsel %vm1374_vm9, %v1365_v7, %v5560_v14 }
 0x10a   : > { %v5563_v50 = vpop.permute.xlu0 %5562  ;;  %v5570_v61 = vunpack.i.h.bf16 %v5568_v30  ;;  %v5569_v11 = vunpack.i.l.bf16 %v5568_v30 }
 0x10b   : > { %v5565_v60 = vunpack.i.h.bf16 %v5563_v50  ;;  %v5564_v18 = vunpack.i.l.bf16 %v5563_v50 }
 0x10c   : > { %v1404_v13 = vsel %vm1391_vm10, %v1387_v12, %v5569_v11  ;;  %v1405_v6 = vsel %vm1391_vm10, %v1388_v16, %v5570_v61 }
 0x10d   : > { %v1230_v27 = vpop.permute.xlu1 %1229  ;;  %v1396_v54 = vsel %vm1391_vm10, %v1379_v9, %v5564_v18  ;;  %v1397_v34 = vsel %vm1391_vm10, %v1380_v10, %v5565_v60 }
 0x10e   : > { %v5573_v62 = vpop.permute.xlu0 %5572  ;;  %v1406_v39 = vsel %vm1391_vm10, %v1389_v59, %v1230_v27 }
 0x10f   : > { %v5575_v63 = vunpack.i.h.bf16 %v5573_v62  ;;  %v5574_v28 = vunpack.i.l.bf16 %v5573_v62 }
 0x111   : > { %v5583_v33 = vpop.permute.xlu1 %5582  ;;  %v1398_v47 = vsel %vm1391_vm10, %v1381_v35, %v5574_v28  ;;  %v1399_v45 = vsel %vm1391_vm10, %v1382_v23, %v5575_v63  ;;  %v1407_v31 = vsel %vm1391_vm10, %v1390_v57, %v5575_v63 }
 0x112   : > { %v5585_v26 = vunpack.i.h.bf16 %v5583_v33  ;;  %v5584_v5 = vunpack.i.l.bf16 %v5583_v33  ;;  %v5578_v22 = vpop.permute.xlu0 %5577 }
 0x113   : > { %v5580_v2 = vunpack.i.h.bf16 %v5578_v22  ;;  %v5579_v58 = vunpack.i.l.bf16 %v5578_v22 }
 0x114   : > { %v1421_v38 = vsel %vm1408_vm11, %v1404_v13, %v5584_v5  ;;  %v1422_v24 = vsel %vm1408_vm11, %v1405_v6, %v5585_v26 }
 0x115   : > { %v1431_v56 = vpack.c.bf16 %v1422_v24, %v1421_v38  ;;  %v1413_v25 = vsel %vm1408_vm11, %v1396_v54, %v5579_v58  ;;  %v1414_v1 = vsel %vm1408_vm11, %v1397_v34, %v5580_v2  ;;  %v1275_v44 = vpop.permute.xlu1 %1274 }
 0x116   : > { %v1427_v42 = vpack.c.bf16 %v1414_v1, %v1413_v25  ;;  %v5588_v8 = vpop.permute.xlu0 %5587  ;;  %v1423_v32 = vsel %vm1408_vm11, %v1406_v39, %v1275_v44 }
 0x117   : > { %v5590_v20 = vunpack.i.h.bf16 %v5588_v8  ;;  %v5589_v30 = vunpack.i.l.bf16 %v5588_v8  ;;  %5236 = vmatprep.mubr.msk.bf16.mxu1 %vm1448_vm12, %v1431_v56 }
 0x118   : > { %5228 = vmatprep.mubr.msk.bf16.mxu0 %vm1448_vm12, %v1427_v42 }
 0x119   : > { %v1415_v50 = vsel %vm1408_vm11, %v1398_v47, %v5589_v30  ;;  %v1416_v19 = vsel %vm1408_vm11, %v1399_v45, %v5590_v20  ;;  %v1424_v17 = vsel %vm1408_vm11, %v1407_v31, %v5590_v20 }
 0x11a   : > { %v1428_v40 = vpack.c.bf16 %v1416_v19, %v1415_v50  ;;  %v1432_v49 = vpack.c.bf16 %v1424_v17, %v1423_v32 }
 0x11c   : > { %5229 = vmatmul.mubr.msk.bf16.gmra.mxu0 %vm1448_vm12, %v1428_v40  ;;  %5237 = vmatmul.mubr.msk.bf16.gmra.mxu1 %vm1448_vm12, %v1432_v49 }
 0x19f   : > { %v5234_v52 = vpop.f32.mrf.mxu1 }
 0x1a0   : > { %v5226_v41 = vpop.f32.mrf.mxu0  ;;  %v1592_v29 = vmul.f32 %v5234_v52, %v7369_v3 }
 0x1a1   : > { %v1584_v51 = vmul.f32 %v5226_v41, %v7369_v3  ;;  %v1545_v36 = vpop.f32.mrf.mxu1 }
 0x1a2   : > { %v1614_v37 = vadd.f32 %v7374_v46, %v1592_v29  ;;  %v1513_v27 = vpop.f32.mrf.mxu0  ;;  %v1590_v4 = vmul.f32 %v7369_v3, %v1545_v36 }
 0x1a3   : > { %v1606_v43 = vadd.f32 %v7374_v46, %v1584_v51  ;;  %v1582_v61 = vmul.f32 %v7369_v3, %v1513_v27  ;;  %v5235_v11 = vpop.f32.mrf.mxu1 }
 0x1a4   : > { %v1630_v62 = vmax.f32 %v1614_v37, 0.0  ;;  %v1612_v0 = vadd.f32 %v7374_v46, %v1590_v4  ;;  %v5227_v53 = vpop.f32.mrf.mxu0  ;;  %v1593_v60 = vmul.f32 %v5235_v11, %v7369_v3 }
 0x1a5   : > { %v1622_v18 = vmax.f32 %v1606_v43, 0.0  ;;  %v1604_v21 = vadd.f32 %v7374_v46, %v1582_v61  ;;  %v1585_v12 = vmul.f32 %v5227_v53, %v7369_v3  ;;  %v1548_v16 = vpop.f32.mrf.mxu1 }
 0x1a6   : > { %1647 = vst.msk [vmem:[#allocation2 + $0x50] sm:$0xff] %vm1636_vm13, %v1630_v62  ;;  %v1628_v55 = vmax.f32 %v1612_v0, 0.0  ;;  %v1615_v9 = vadd.f32 %v7374_v46, %v1593_v60  ;;  %v1516_v10 = vpop.f32.mrf.mxu0  ;;  %v1591_v14 = vmul.f32 %v7369_v3, %v1548_v16 }
 0x1a7   : > { %1639 = vst.msk [vmem:[#allocation2 + $0x10] sm:$0xff] %vm1636_vm13, %v1622_v18  ;;  %v1620_v48 = vmax.f32 %v1604_v21, 0.0  ;;  %v1607_v33 = vadd.f32 %v7374_v46, %v1585_v12  ;;  %v1583_v13 = vmul.f32 %v7369_v3, %v1516_v10 }
 0x1a8   : > { %1645 = vst.msk [vmem:[#allocation2 + $0x40] sm:$0xff] %vm1636_vm13, %v1628_v55  ;;  %v1631_v6 = vmax.f32 %v1615_v9, 0.0  ;;  %v1613_v26 = vadd.f32 %v7374_v46, %v1591_v14 }
 0x1a9   : > { %1637 = vst.msk [vmem:[#allocation2] sm:$0xff] %vm1636_vm13, %v1620_v48  ;;  %v1623_v5 = vmax.f32 %v1607_v33, 0.0  ;;  %v1605_v22 = vadd.f32 %v7374_v46, %v1583_v13 }
 0x1aa   : > { %1648 = vst.msk [vmem:[#allocation2 + $0x58] sm:$0xff] %vm1636_vm13, %v1631_v6  ;;  %v1629_v54 = vmax.f32 %v1613_v26, 0.0 }
 0x1ab   : > { %1640 = vst.msk [vmem:[#allocation2 + $0x18] sm:$0xff] %vm1636_vm13, %v1623_v5  ;;  %v1621_v34 = vmax.f32 %v1605_v22, 0.0 }
 0x1ac   : > { %1646 = vst.msk [vmem:[#allocation2 + $0x48] sm:$0xff] %vm1636_vm13, %v1629_v54 }
 0x1ad   : > { %1638 = vst.msk [vmem:[#allocation2 + $0x8] sm:$0xff] %vm1636_vm13, %v1621_v34 }
 0x1dc   : > { %v5230_v2 = vpop.f32.mrf.mxu0  ;;  %v5238_v58 = vpop.f32.mrf.mxu1 }
 0x1dd   : > { %v1588_v63 = vmul.f32 %v5230_v2, %v7369_v3  ;;  %v1596_v28 = vmul.f32 %v5238_v58, %v7369_v3 }
 0x1de   : > { %v1529_v38 = vpop.f32.mrf.mxu0  ;;  %v1561_v24 = vpop.f32.mrf.mxu1 }
 0x1df   : > { %v1610_v15 = vadd.f32 %v7374_v46, %v1588_v63  ;;  %v1618_v56 = vadd.f32 %v7374_v46, %v1596_v28  ;;  %v1586_v25 = vmul.f32 %v7369_v3, %v1529_v38  ;;  %v1594_v1 = vmul.f32 %v7369_v3, %v1561_v24 }
 0x1e0   : > { %v5231_v7 = vpop.f32.mrf.mxu0  ;;  %v5239_v59 = vpop.f32.mrf.mxu1 }
 0x1e1   : > { %v1626_v57 = vmax.f32 %v1610_v15, 0.0  ;;  %v1634_v42 = vmax.f32 %v1618_v56, 0.0  ;;  %v1608_v44 = vadd.f32 %v7374_v46, %v1586_v25  ;;  %v1616_v8 = vadd.f32 %v7374_v46, %v1594_v1 }
 0x1e2   : > { %v1589_v35 = vmul.f32 %v5231_v7, %v7369_v3  ;;  %v1597_v23 = vmul.f32 %v5239_v59, %v7369_v3  ;;  %v1532_v20 = vpop.f32.mrf.mxu0  ;;  %v1564_v30 = vpop.f32.mrf.mxu1 }
 0x1e3   : > { %1643 = vst.msk [vmem:[#allocation2 + $0x30] sm:$0xff] %vm1636_vm13, %v1626_v57  ;;  %1651 = vst.msk [vmem:[#allocation2 + $0x70] sm:$0xff] %vm1636_vm13, %v1634_v42  ;;  %v1624_v39 = vmax.f32 %v1608_v44, 0.0  ;;  %v1632_v47 = vmax.f32 %v1616_v8, 0.0  ;;  %v1587_v45 = vmul.f32 %v7369_v3, %v1532_v20  ;;  %v1595_v31 = vmul.f32 %v7369_v3, %v1564_v30 }
 0x1e4   : > { %v1611_v32 = vadd.f32 %v7374_v46, %v1589_v35  ;;  %v1619_v50 = vadd.f32 %v7374_v46, %v1597_v23 }
 0x1e5   : > { %1641 = vst.msk [vmem:[#allocation2 + $0x20] sm:$0xff] %vm1636_vm13, %v1624_v39  ;;  %1649 = vst.msk [vmem:[#allocation2 + $0x60] sm:$0xff] %vm1636_vm13, %v1632_v47  ;;  %v1609_v19 = vadd.f32 %v7374_v46, %v1587_v45  ;;  %v1617_v17 = vadd.f32 %v7374_v46, %v1595_v31 }
 0x1e6   : > { %v1627_v40 = vmax.f32 %v1611_v32, 0.0  ;;  %v1635_v49 = vmax.f32 %v1619_v50, 0.0 }
 0x1e7   : > { %v1625_v52 = vmax.f32 %v1609_v19, 0.0  ;;  %v1633_v41 = vmax.f32 %v1617_v17, 0.0 }
 0x1e8   : > { %1644 = vst.msk [vmem:[#allocation2 + $0x38] sm:$0xff] %vm1636_vm13, %v1627_v40  ;;  %1652 = vst.msk [vmem:[#allocation2 + $0x78] sm:$0xff] %vm1636_vm13, %v1635_v49 }
 0x1e9   : > { %1642 = vst.msk [vmem:[#allocation2 + $0x28] sm:$0xff] %vm1636_vm13, %v1625_v52  ;;  %1650 = vst.msk [vmem:[#allocation2 + $0x68] sm:$0xff] %vm1636_vm13, %v1633_v41 }
 0x1ea PF: > { %v1653_v3 = vld [vmem:[#allocation2] sm:$0xff]  ;;  %v1654_v29 = vld [vmem:[#allocation2 + $0x8] sm:$0xff]  ;;  %vm1722_vm14 = vcmask 1040384   ;;  %v6439_v37 = vmov 0.0   ;;  %vm1787_vm15 = vcmask 1046528   ;;  %s6440_s25 = smov 48   ;;  %s9202_s1 = scalar_lea.vmem %s9166_s5, %s6568_s28 }
 0x1eb   : > { %v1689_v51 = vrot.slane %v1653_v3, 7  ;;  %v1690_v36 = vrot.slane %v1654_v29, 7  ;;  %v1688_v46 = vrot.slane %v6439_v37, 7  ;;  %v1655_v16 = vld [vmem:[#allocation2 + $0x10] sm:$0xff]  ;;  %vm1878_vm0 = vcmask 1045504   ;;  %v1656_v22 = vld [vmem:[#allocation2 + $0x18] sm:$0xff] }
 0x1ec   : > { %v1691_v26 = vrot.slane %v1655_v16, 7  ;;  %v1657_v54 = vld [vmem:[#allocation2 + $0x20] sm:$0xff]  ;;  %s6441_s16 = smov 16   ;;  %s6442_s19 = smov 64   ;;  %v1692_v7 = vrot.slane %v1656_v22, 7  ;;  %vm2234_vm1 = vcmask 130048  }
 0x1ed   : > { %v7425_v27 = vsel %vm1722_vm14, 0.0, %v1689_v51  ;;  %v7428_v4 = vsel %vm1722_vm14, 0.0, %v1690_v36  ;;  %v7431_v43 = vsel %vm1722_vm14, 0.0, %v1688_v46  ;;  %v1740_v11 = vsel %vm1722_vm14, %v1688_v46, 0.0  ;;  %s6443_s29 = smov 32   ;;  %s6444_s17 = smov 96  }
 0x1ee   : > { %v5593_v61 = vpack.i.bf16 %v7428_v4, %v7425_v27  ;;  %v1788_v62 = vrot.slane %v7431_v43, 1  ;;  %v1789_v0 = vrot.slane %v1740_v11, 1  ;;  %v1880_v53 = vrot.slane %v1740_v11, 2  ;;  %s6445_s27 = smov 80   ;;  %s6446_s30 = smov 112  }
 0x1ef   : > { %v1741_v60 = vsel %vm1722_vm14, %v1689_v51, 0.0  ;;  %v1742_v18 = vsel %vm1722_vm14, %v1690_v36, 0.0  ;;  %v1791_v21 = vrot.slane %v7425_v27, 1  ;;  %v1794_v12 = vrot.slane %v7428_v4, 1  ;;  %p5103_p6 = scmp.ne.s32.totalorder %s6419_s24, 1 }
 0x1f0   : > { %5594 = vrot.lane.b32.xlu1 %v5593_v61, %s6440_s25  ;;  %v7443_v55 = vsel %vm1787_vm15, %v1788_v62, %v1789_v0  ;;  %v1792_v9 = vrot.slane %v1741_v60, 1  ;;  %v1795_v10 = vrot.slane %v1742_v18, 1  ;;  %v1883_v14 = vrot.slane %v1741_v60, 2  ;;  %v1658_v20 = vld [vmem:[#allocation2 + $0x28] sm:$0xff]  ;;  %v1659_v0 = vld [vmem:[#allocation2 + $0x30] sm:$0xff]  ;;  %s6449_s24 = smov (!%p5103_p6), 48  }
 0x1f1   : > { %v1879_v48 = vrot.slane %v7431_v43, 2  ;;  %v1882_v33 = vrot.slane %v7425_v27, 2  ;;  %v1885_v5 = vrot.slane %v7428_v4, 2  ;;  %v7457_v38 = vsel %vm1722_vm14, 0.0, %v1691_v26  ;;  %s6452_s23 = smov (!%p5103_p6), 32   ;;  %s6454_s22 = smov (!%p5103_p6), 80  }
 0x1f2   : > { %v1793_v13 = vsel %vm1787_vm15, %v1791_v21, %v1792_v9  ;;  %v1796_v6 = vsel %vm1787_vm15, %v1794_v12, %v1795_v10  ;;  %v1886_v24 = vrot.slane %v1742_v18, 2  ;;  %v1743_v15 = vsel %vm1722_vm14, %v1691_v26, 0.0 }
 0x1f3   : > { %v5608_v34 = vpack.i.bf16 %v1796_v6, %v1793_v13  ;;  %v5598_v2 = vpack.i.bf16 %v1793_v13, %v7443_v55  ;;  %v7452_v58 = vsel %vm1878_vm0, %v1879_v48, %v1880_v53  ;;  %v1884_v63 = vsel %vm1878_vm0, %v1882_v33, %v1883_v14  ;;  %v1660_v14 = vld [vmem:[#allocation2 + $0x38] sm:$0xff] }
 0x1f4   : > { %v5603_v28 = vpack.i.bf16 %v1884_v63, %v7452_v58  ;;  %v5618_v56 = vpack.i.bf16 %v7457_v38, %v7428_v4  ;;  %v1797_v25 = vrot.slane %v7457_v38, 1  ;;  %v1798_v1 = vrot.slane %v1743_v15, 1 }
 0x1f5   : > { %5599 = vrot.lane.b32.xlu0 %v5598_v2, %s6441_s16  ;;  %5609 = vrot.lane.b32.xlu1 %v5608_v34, %s6442_s19  ;;  %v7466_v59 = vsel %vm1878_vm0, %v1885_v5, %v1886_v24  ;;  %v1693_v57 = vrot.slane %v1657_v54, 7  ;;  %v7470_v44 = vsel %vm1722_vm14, 0.0, %v1692_v7  ;;  %v1744_v8 = vsel %vm1722_vm14, %v1692_v7, 0.0  ;;  %v1666_v2 = vld [vmem:[#allocation2 + $0x68] sm:$0xff]  ;;  %v1661_v7 = vld [vmem:[#allocation2 + $0x40] sm:$0xff] }
 0x1f6   : > { %v1799_v42 = vsel %vm1787_vm15, %v1797_v25, %v1798_v1  ;;  %v5613_v35 = vpack.i.bf16 %v7466_v59, %v1884_v63  ;;  %v1888_v30 = vrot.slane %v7457_v38, 2  ;;  %v1889_v39 = vrot.slane %v1743_v15, 2 }
 0x1f7   : > { %v5628_v23 = vpack.i.bf16 %v1799_v42, %v1796_v6  ;;  %v1891_v47 = vrot.slane %v7470_v44, 2  ;;  %v1892_v45 = vrot.slane %v1744_v8, 2  ;;  %v7479_v31 = vsel %vm1722_vm14, 0.0, %v1693_v57 }
 0x1f8   : > { %v1745_v32 = vsel %vm1722_vm14, %v1693_v57, 0.0  ;;  %v1800_v50 = vrot.slane %v7470_v44, 1  ;;  %v5638_v19 = vpack.i.bf16 %v7470_v44, %v7457_v38  ;;  %v1801_v17 = vrot.slane %v1744_v8, 1  ;;  %v1662_v57 = vld [vmem:[#allocation2 + $0x48] sm:$0xff] }
 0x1f9   : > { %5604 = vrot.lane.b32.xlu0 %v5603_v28, %s6443_s29  ;;  %5619 = vrot.lane.b32.xlu1 %v5618_v56, %s6444_s17  ;;  %v1694_v40 = vrot.slane %v1658_v20, 7  ;;  %v7488_v49 = vsel %vm1878_vm0, %v1888_v30, %v1889_v39  ;;  %v7491_v52 = vsel %vm1878_vm0, %v1891_v47, %v1892_v45  ;;  %v1803_v41 = vrot.slane %v7479_v31, 1 }
 0x1fa   : > { %v1804_v3 = vrot.slane %v1745_v32, 1  ;;  %v5633_v29 = vpack.i.bf16 %v7488_v49, %v7466_v59  ;;  %v5648_v51 = vpack.i.bf16 %v7491_v52, %v7488_v49  ;;  %v1894_v36 = vrot.slane %v7479_v31, 2 }
 0x1fb   : > { %v1895_v37 = vrot.slane %v1745_v32, 2  ;;  %v1802_v46 = vsel %vm1787_vm15, %v1800_v50, %v1801_v17  ;;  %v7504_v11 = vsel %vm1722_vm14, 0.0, %v1694_v40  ;;  %v1746_v62 = vsel %vm1722_vm14, %v1694_v40, 0.0 }
 0x1fc   : > { %v1805_v61 = vsel %vm1787_vm15, %v1803_v41, %v1804_v3  ;;  %v5643_v53 = vpack.i.bf16 %v1802_v46, %v1799_v42  ;;  %v1806_v18 = vrot.slane %v7504_v11, 1  ;;  %v1807_v21 = vrot.slane %v1746_v62, 1 }
 0x1fd   : > { %5614 = vrot.lane.b32.xlu0 %v5613_v35, %s6445_s27  ;;  %5629 = vrot.lane.b32.xlu1 %v5628_v23, %s6441_s16  ;;  %v5658_v60 = vpack.i.bf16 %v1805_v61, %v1802_v46  ;;  %v7511_v12 = vsel %vm1878_vm0, %v1894_v36, %v1895_v37  ;;  %v1695_v16 = vrot.slane %v1659_v0, 7  ;;  %v5653_v9 = vpack.i.bf16 %v7479_v31, %v7470_v44  ;;  %v1667_v35 = vld [vmem:[#allocation2 + $0x70] sm:$0xff] }
 0x1fe   : > { %v5668_v10 = vpack.i.bf16 %v7511_v12, %v7491_v52  ;;  %v1808_v48 = vsel %vm1787_vm15, %v1806_v18, %v1807_v21  ;;  %v1696_v6 = vrot.slane %v1660_v14, 7  ;;  %v1897_v5 = vrot.slane %v7504_v11, 2 }
 0x1ff   : > { %v7521_v33 = vsel %vm1722_vm14, 0.0, %v1695_v16  ;;  %v1747_v13 = vsel %vm1722_vm14, %v1695_v16, 0.0  ;;  %v5678_v26 = vpack.i.bf16 %v1808_v48, %v1805_v61  ;;  %v1898_v22 = vrot.slane %v1746_v62, 2 }
 0x200   : > { %v1809_v54 = vrot.slane %v7521_v33, 1  ;;  %v1810_v34 = vrot.slane %v1747_v13, 1  ;;  %v7529_v63 = vsel %vm1722_vm14, 0.0, %v1696_v6  ;;  %v1748_v28 = vsel %vm1722_vm14, %v1696_v6, 0.0  ;;  %v1663_v6 = vld [vmem:[#allocation2 + $0x50] sm:$0xff] }
 0x201   : > { %5624 = vrot.lane.b32.xlu0 %v5628_v23, %s6446_s30  ;;  %5639 = vrot.lane.b32.xlu1 %v5638_v19, %s6440_s25  ;;  %v5673_v24 = vpack.i.bf16 %v7504_v11, %v7479_v31  ;;  %v5688_v15 = vpack.i.bf16 %v7521_v33, %v7504_v11  ;;  %v7539_v56 = vsel %vm1878_vm0, %v1897_v5, %v1898_v22  ;;  %v1702_v1 = vrot.slane %v1666_v2, 7  ;;  %v6103_v19 = vld [vmem:[%s6586_s26 + $0x38] sm:$0xff]  }
 0x202   : > { %v7542_v25 = vsel %vm1787_vm15, %v1809_v54, %v1810_v34  ;;  %v2075_v42 = vrot.slane %v7529_v63, 2  ;;  %v2076_v8 = vrot.slane %v1748_v28, 2  ;;  %v5683_v23 = vpack.i.bf16 %v7539_v56, %v7511_v12 }
 0x203   : > { %v5698_v20 = vpack.i.bf16 %v7542_v25, %v1808_v48  ;;  %v1900_v30 = vrot.slane %v7521_v33, 2  ;;  %v1901_v39 = vrot.slane %v1747_v13, 2  ;;  %v1697_v47 = vrot.slane %v1661_v7, 7 }
 0x204   : > { %v1698_v45 = vrot.slane %v1662_v57, 7  ;;  %v7552_v32 = vsel %vm1722_vm14, 0.0, %v1702_v1  ;;  %v7555_v50 = vsel %vm1722_vm14, %v1702_v1, 0.0  ;;  %v1703_v17 = vrot.slane %v1667_v35, 7  ;;  %v1664_v57 = vld [vmem:[#allocation2 + $0x58] sm:$0xff] }
 0x205   : > { %5634 = vrot.lane.b32.xlu0 %v5633_v29, %s6443_s29  ;;  %5649 = vrot.lane.b32.xlu1 %v5648_v51, %s6445_s27  ;;  %v2021_v40 = vrot.slane %v7529_v63, 1  ;;  %v2022_v41 = vrot.slane %v1748_v28, 1  ;;  %v5708_v3 = vpack.i.bf16 %v7529_v63, %v7521_v33  ;;  %v7562_v29 = vsel %vm1878_vm0, %v2075_v42, %v2076_v8  ;;  %v6105_v28 = vld [vmem:[%s6586_s26 + $0x28] sm:$0xff]  }
 0x206   : > { %v6447_v51 = vmov 0   ;;  %v7569_v36 = vsel %vm1878_vm0, %v1900_v30, %v1901_v39  ;;  %v1918_v37 = vrot.slane %v7552_v32, 2  ;;  %v1919_v46 = vrot.slane %v7555_v50, 2 }
 0x207   : > { %2463 = vmatprep.subr.bf16.mxu0 %v6447_v51  ;;  %3376 = vmatprep.subr.bf16.mxu1 %v6447_v51  ;;  %v7574_v61 = vsel %vm1722_vm14, 0.0, %v1697_v47  ;;  %v7577_v62 = vsel %vm1722_vm14, 0.0, %v1698_v45  ;;  %v7580_v0 = vsel %vm1722_vm14, 0.0, %v1703_v17  ;;  %v1749_v18 = vsel %vm1722_vm14, %v1697_v47, 0.0 }
 0x208   : > { %2464 = vmatpush1.bf16.msra.mxu0 %v6103_v19  ;;  %v1750_v21 = vsel %vm1722_vm14, %v1698_v45, 0.0  ;;  %v1921_v16 = vrot.slane %v7580_v0, 2  ;;  %v5703_v14 = vpack.i.bf16 %v7569_v36, %v7539_v56  ;;  %v5718_v48 = vpack.i.bf16 %v7562_v29, %v7569_v36 }
 0x209   : > { %5644 = vrot.lane.b32.xlu0 %v5643_v53, %s6442_s19  ;;  %5659 = vrot.lane.b32.xlu1 %v5658_v60, %s6446_s30  ;;  %v7583_v53 = vsel %vm1722_vm14, %v1703_v17, 0.0  ;;  %v1903_v13 = vrot.slane %v7574_v61, 2  ;;  %v1904_v22 = vrot.slane %v1749_v18, 2  ;;  %v1906_v54 = vrot.slane %v7577_v62, 2 }
 0x20a   : > { %2465 = vmatprep.subr.bf16.mxu0 %v6447_v51  ;;  %v1907_v34 = vrot.slane %v1750_v21, 2  ;;  %v1812_v1 = vrot.slane %v7574_v61, 1  ;;  %v1699_v7 = vrot.slane %v1663_v6, 7  ;;  %v2352_v42 = vpack.c.bf16 %v7488_v49, %v7466_v59  ;;  %v6106_v49 = vld [vmem:[%s6586_s26 + $0x20] sm:$0xff]  }
 0x20b   : > { %v1813_v8 = vrot.slane %v1749_v18, 1  ;;  %v1905_v35 = vsel %vm1878_vm0, %v1903_v13, %v1904_v22  ;;  %v1816_v59 = vrot.slane %v1750_v21, 1  ;;  %v1700_v30 = vrot.slane %v1664_v57, 7  ;;  %v6110_v57 = vld [vmem:[%s6586_s26] sm:$0xff]  }
 0x20c   : > { %5074 = vmatprep.mubr.msk.bf16.mxu0 %vm2234_vm1, %v2352_v42  ;;  %v5723_v39 = vpack.i.bf16 %v7431_v43, %v7529_v63  ;;  %v7637_v17 = vsel %vm1722_vm14, 0.0, %v1699_v7  ;;  %vm2250_vm2 = vcmask 261120   ;;  %vm2266_vm3 = vcmask 392192  }
 0x20d   : > { %5654 = vrot.lane.b32.xlu0 %v5653_v9, %s6444_s17  ;;  %5669 = vrot.lane.b32.xlu1 %v5668_v10, %s6443_s29  ;;  %v1922_v9 = vrot.slane %v7583_v53, 2  ;;  %v2023_v10 = vsel %vm1787_vm15, %v2021_v40, %v2022_v41  ;;  %v1814_v45 = vsel %vm1787_vm15, %v1812_v1, %v1813_v8  ;;  %v1751_v40 = vsel %vm1722_vm14, %v1699_v7, 0.0  ;;  %v6107_v41 = vld [vmem:[%s6586_s26 + $0x18] sm:$0xff]  }
 0x20e   : > { %v5758_v13 = vpack.i.bf16 %v7637_v17, %v7577_v62  ;;  %vm2283_vm4 = vcmask 523264   ;;  %vm2300_vm5 = vcmask 654336   ;;  %vm2317_vm6 = vcmask 785408  }
 0x20f   : > { %v7603_v5 = vsel %vm1878_vm0, %v1921_v16, %v1922_v9  ;;  %v1909_v16 = vrot.slane %v7637_v17, 2  ;;  %v1910_v9 = vrot.slane %v1751_v40, 2  ;;  %vm2334_vm7 = vcmask 916480  }
 0x211   : > { %5664 = vrot.lane.b32.xlu0 %v5658_v60, %s6441_s16  ;;  %5679 = vrot.lane.b32.xlu1 %v5678_v26, %s6442_s19  ;;  %v6104_v60 = vld [vmem:[%s6586_s26 + $0x30] sm:$0xff]   ;;  %v7600_v26 = vsel %vm1878_vm0, %v1918_v37, %v1919_v46  ;;  %v1752_v37 = vsel %vm1722_vm14, %v1700_v30, 0.0  ;;  %v1818_v46 = vrot.slane %v7637_v17, 1 }
 0x212   : > { %v2364_v2 = vpack.c.bf16 %v7603_v5, %v7600_v26  ;;  %2466 = vmatpush1.bf16.msra.mxu0 %v6104_v60  ;;  %v1819_v60 = vrot.slane %v1751_v40, 1  ;;  %v1822_v21 = vrot.slane %v1752_v37, 1  ;;  %v1913_v7 = vrot.slane %v1752_v37, 2 }
 0x213   : > { %2467 = vmatprep.subr.bf16.mxu0 %v6447_v51 }
 0x214   : > { %v1820_v6 = vsel %vm1787_vm15, %v1818_v46, %v1819_v60  ;;  %v1827_v46 = vrot.slane %v7552_v32, 1  ;;  %v1828_v60 = vrot.slane %v7555_v50, 1 }
 0x215   : > { %5674 = vrot.lane.b32.xlu0 %v5673_v24, %s6440_s25  ;;  %5689 = vrot.lane.b32.xlu1 %v5688_v15, %s6444_s17  ;;  %v5728_v24 = vpack.i.bf16 %v7443_v55, %v2023_v10  ;;  %v5713_v15 = vpack.i.bf16 %v2023_v10, %v7542_v25  ;;  %v2354_v55 = vpack.c.bf16 %v7511_v12, %v7491_v52  ;;  %v6108_v10 = vld [vmem:[%s6586_s26 + $0x10] sm:$0xff]  }
 0x216   : > { %v2356_v25 = vpack.c.bf16 %v7569_v36, %v7539_v56  ;;  %2468 = vmatpush1.bf16.msra.mxu0 %v6105_v28 }
 0x217   : > { %2469 = vmatprep.subr.bf16.mxu0 %v6447_v51 }
 0x219   : > { %5684 = vrot.lane.b32.xlu0 %v5683_v23, %s6445_s27  ;;  %5699 = vrot.lane.b32.xlu1 %v5698_v20, %s6441_s16  ;;  %v7623_v23 = vsel %vm1878_vm0, %v1906_v54, %v1907_v34  ;;  %v7662_v54 = vsel %vm1878_vm0, %v1909_v16, %v1910_v9  ;;  %v6109_v34 = vld [vmem:[%s6586_s26 + $0x8] sm:$0xff]   ;;  %v1829_v16 = vsel %vm1787_vm15, %v1827_v46, %v1828_v60 }
 0x21a   : > { %v5738_v47 = vpack.i.bf16 %v7623_v23, %v1905_v35  ;;  %2470 = vmatpush1.bf16.msra.mxu0 %v6106_v49 }
 0x21b   : > { %2471 = vmatprep.subr.bf16.mxu0 %v6447_v51 }
 0x21d   : > { %5694 = vrot.lane.b32.xlu0 %v5698_v20, %s6446_s30  ;;  %5709 = vrot.lane.b32.xlu1 %v5708_v3, %s6440_s25  ;;  %v1815_v20 = vrot.slane %v7577_v62, 1  ;;  %v7642_v3 = vsel %vm1722_vm14, 0.0, %v1700_v30 }
 0x21e   : > { %v1821_v18 = vrot.slane %v7642_v3, 1  ;;  %2472 = vmatpush1.bf16.msra.mxu0 %v6107_v41  ;;  %v1912_v1 = vrot.slane %v7642_v3, 2 }
 0x21f   : > { %v1817_v19 = vsel %vm1787_vm15, %v1815_v20, %v1816_v59  ;;  %2473 = vmatprep.subr.bf16.mxu0 %v6447_v51  ;;  %v5778_v20 = vpack.i.bf16 %v7642_v3, %v7637_v17 }
 0x220   : > { %v5733_v63 = vpack.i.bf16 %v1817_v19, %v1814_v45  ;;  %v1823_v22 = vsel %vm1787_vm15, %v1821_v18, %v1822_v21  ;;  %v5763_v35 = vpack.i.bf16 %v1820_v6, %v1817_v19  ;;  %v7682_v59 = vsel %vm1878_vm0, %v1912_v1, %v1913_v7 }
 0x221   : > { %5704 = vrot.lane.b32.xlu0 %v5703_v14, %s6443_s29  ;;  %5719 = vrot.lane.b32.xlu1 %v5718_v48, %s6445_s27  ;;  %v1665_v14 = vld [vmem:[#allocation2 + $0x60] sm:$0xff]  ;;  %v5743_v48 = vpack.i.bf16 %v7577_v62, %v7574_v61 }
 0x222   : > { %2474 = vmatpush1.bf16.msra.mxu0 %v6108_v10  ;;  %v1701_v28 = vrot.slane %v1665_v14, 7  ;;  %v1668_v10 = vld [vmem:[#allocation2 + $0x78] sm:$0xff]  ;;  %v5828_v14 = vpack.i.bf16 %v7580_v0, %v7552_v32 }
 0x223   : > { %2475 = vmatprep.subr.bf16.mxu0 %v6447_v51 }
 0x224   : > { %v7673_v42 = vsel %vm1722_vm14, 0.0, %v1701_v28  ;;  %v1753_v8 = vsel %vm1722_vm14, %v1701_v28, 0.0 }
 0x225   : > { %5714 = vrot.lane.b32.xlu0 %v5713_v15, %s6442_s19  ;;  %5729 = vrot.lane.b32.xlu1 %v5728_v24, %s6446_s30  ;;  %v2360_v24 = vpack.c.bf16 %v7662_v54, %v7623_v23  ;;  %v5768_v15 = vpack.i.bf16 %v1823_v22, %v1820_v6  ;;  %v1824_v49 = vrot.slane %v7673_v42, 1  ;;  %v1825_v30 = vrot.slane %v1753_v8, 1 }
 0x226   : > { %2476 = vmatpush1.bf16.msra.mxu0 %v6109_v34  ;;  %v1915_v45 = vrot.slane %v7673_v42, 2  ;;  %v1916_v40 = vrot.slane %v1753_v8, 2  ;;  %v5793_v18 = vpack.i.bf16 %v7673_v42, %v7642_v3  ;;  %v5813_v50 = vpack.i.bf16 %v7552_v32, %v7673_v42 }
 0x227   : > { %2477 = vmatprep.subr.bf16.mxu0 %v6447_v51  ;;  %v1826_v19 = vsel %vm1787_vm15, %v1824_v49, %v1825_v30  ;;  %v1831_v6 = vrot.slane %v7583_v53, 1 }
 0x228   : > { %v7694_v41 = vsel %vm1878_vm0, %v1915_v45, %v1916_v40  ;;  %v5803_v9 = vpack.i.bf16 %v1829_v16, %v1826_v19 }
 0x229   : > { %5724 = vrot.lane.b32.xlu0 %v5723_v39, %s6444_s17  ;;  %5739 = vrot.lane.b32.xlu1 %v5738_v47, %s6443_s29  ;;  %v6111_v39 = vld [vmem:[%s6586_s26 + $0x40] sm:$0xff]   ;;  %v2362_v37 = vpack.c.bf16 %v7694_v41, %v7682_v59  ;;  %v5808_v21 = vpack.i.bf16 %v7600_v26, %v7694_v41 }
 0x22a   : > { %2478 = vmatpush1.bf16.msra.mxu0 %v6110_v57 }
 0x22b   : > { %2493 = vmatprep.subr.bf16.mxu0 %v6447_v51 }
 0x22d   : > { %5734 = vrot.lane.b32.xlu0 %v5733_v63, %s6441_s16  ;;  %5749 = vrot.lane.b32.xlu1 %v5733_v63, %s6442_s19  ;;  %v5798_v63 = vpack.i.bf16 %v1826_v19, %v1823_v22 }
 0x22e   : > { %2494 = vmatpush2.bf16.msra.mxu0 %v6111_v39 }
 0x231   : > { %5744 = vrot.lane.b32.xlu0 %v5743_v48, %s6440_s25  ;;  %5759 = vrot.lane.b32.xlu1 %v5758_v13, %s6444_s17  ;;  %v1704_v48 = vrot.slane %v1668_v10, 7  ;;  %v1830_v13 = vrot.slane %v7580_v0, 1 }
 0x233   : > { %v1756_v22 = vsel %vm1722_vm14, %v1704_v48, 0.0  ;;  %v1739_v34 = vsel %vm1722_vm14, 0.0, %v1704_v48  ;;  %v1832_v28 = vsel %vm1787_vm15, %v1830_v13, %v1831_v6 }
 0x234   : > { %v2079_v1 = vrot.slane %v1756_v22, 2  ;;  %v5833_v7 = vpack.i.bf16 %v1832_v28, %v1829_v16  ;;  %v5838_v57 = vpack.i.bf16 %v1739_v34, %v7580_v0  ;;  %v2024_v53 = vrot.slane %v1739_v34, 1 }
 0x235   : > { %5754 = vrot.lane.b32.xlu0 %v5738_v47, %s6445_s27  ;;  %5769 = vrot.lane.b32.xlu1 %v5768_v15, %s6441_s16  ;;  %v5773_v47 = vpack.i.bf16 %v7682_v59, %v7662_v54  ;;  %v2025_v8 = vrot.slane %v1756_v22, 1 }
 0x237   : > { %v2026_v49 = vsel %vm1787_vm15, %v2024_v53, %v2025_v8 }
 0x238   : > { %v5843_v30 = vpack.i.bf16 %v2026_v49, %v1832_v28 }
 0x239   : > { %5764 = vrot.lane.b32.xlu0 %v5763_v35, %s6446_s30  ;;  %5779 = vrot.lane.b32.xlu1 %v5778_v20, %s6440_s25 }
 0x23d   : > { %5774 = vrot.lane.b32.xlu0 %v5773_v47, %s6443_s29  ;;  %5789 = vrot.lane.b32.xlu1 %v5773_v47, %s6445_s27 }
 0x241   : > { %5784 = vrot.lane.b32.xlu0 %v5768_v15, %s6442_s19  ;;  %5799 = vrot.lane.b32.xlu1 %v5798_v63, %s6446_s30  ;;  %v2078_v15 = vrot.slane %v1739_v34, 2 }
 0x243   : > { %v7728_v35 = vsel %vm1878_vm0, %v2078_v15, %v2079_v1 }
 0x244   : > { %v5848_v20 = vpack.i.bf16 %v7728_v35, %v7603_v5 }
 0x245   : > { %5794 = vrot.lane.b32.xlu0 %v5793_v18, %s6444_s17  ;;  %5809 = vrot.lane.b32.xlu1 %v5808_v21, %s6443_s29 }
 0x249   : > { %5804 = vrot.lane.b32.xlu0 %v5803_v9, %s6441_s16  ;;  %5819 = vrot.lane.b32.xlu1 %v5803_v9, %s6442_s19 }
 0x24d   : > { %5814 = vrot.lane.b32.xlu0 %v5813_v50, %s6440_s25  ;;  %5829 = vrot.lane.b32.xlu1 %v5828_v14, %s6444_s17 }
 0x251   : > { %5824 = vrot.lane.b32.xlu0 %v5808_v21, %s6445_s27  ;;  %1861 = vrot.lane.b32.xlu1 %v1832_v28, %s6441_s16 }
 0x255   : > { %5834 = vrot.lane.b32.xlu0 %v5833_v7, %s6446_s30  ;;  %5839 = vrot.lane.b32.xlu1 %v5838_v57, %s6440_s25 }
 0x259   : > { %1952 = vrot.lane.b32.xlu0 %v7603_v5, %s6443_s29  ;;  %5849 = vrot.lane.b32.xlu1 %v5848_v20, %s6445_s27 }
 0x25d   : > { %5844 = vrot.lane.b32.xlu0 %v5843_v30, %s6442_s19  ;;  %2202 = vrot.lane.b32.xlu1 %v2026_v49, %s6446_s30 }
 0x261   : > { %2157 = vrot.lane.b32.xlu0 %v1739_v34, %s6444_s17 }
 0x262   : > { %v5595_v39 = vpop.permute.xlu1 %5594 }
 0x263   : > { %v5597_v9 = vunpack.i.h.bf16 %v5595_v39  ;;  %v5596_v10 = vunpack.i.l.bf16 %v5595_v39 }
 0x267   : > { %v5600_v45 = vpop.permute.xlu0 %5599  ;;  %v5610_v40 = vpop.permute.xlu1 %5609 }
 0x268   : > { %v5602_v47 = vunpack.i.h.bf16 %v5600_v45  ;;  %v5601_v19 = vunpack.i.l.bf16 %v5600_v45  ;;  %v5612_v60 = vunpack.i.h.bf16 %v5610_v40  ;;  %v5611_v18 = vunpack.i.l.bf16 %v5610_v40 }
 0x26a   : > { %v2236_v50 = vsel %vm2234_vm1, %v7425_v27, %v5602_v47  ;;  %v2235_v14 = vsel %vm2234_vm1, %v7431_v43, %v5601_v19 }
 0x26b   : > { %v5605_v63 = vpop.permute.xlu0 %5604  ;;  %v5620_v46 = vpop.permute.xlu1 %5619 }
 0x26c   : > { %v5607_v21 = vunpack.i.h.bf16 %v5605_v63  ;;  %v5606_v16 = vunpack.i.l.bf16 %v5605_v63  ;;  %v5622_v43 = vunpack.i.h.bf16 %v5620_v46  ;;  %v5621_v57 = vunpack.i.l.bf16 %v5620_v46 }
 0x26e   : > { %v7746_v48 = vsel %vm2250_vm2, %v2235_v14, %v5606_v16  ;;  %v2252_v13 = vsel %vm2250_vm2, %v2236_v50, %v5607_v21 }
 0x26f   : > { %v2267_v6 = vsel %vm2266_vm3, %v7746_v48, %v5596_v10  ;;  %v2268_v22 = vsel %vm2266_vm3, %v2252_v13, %v5597_v9  ;;  %v5615_v34 = vpop.permute.xlu0 %5614  ;;  %v5630_v28 = vpop.permute.xlu1 %5629 }
 0x270   : > { %v5617_v15 = vunpack.i.h.bf16 %v5615_v34  ;;  %v5616_v1 = vunpack.i.l.bf16 %v5615_v34  ;;  %v2284_v27 = vsel %vm2283_vm4, %v2267_v6, %v5611_v18  ;;  %v2285_v7 = vsel %vm2283_vm4, %v2268_v22, %v5612_v60 }
 0x271   : > { %v5632_v45 = vunpack.i.h.bf16 %v5630_v28  ;;  %v5631_v40 = vunpack.i.l.bf16 %v5630_v28 }
 0x272   : > { %v2301_v53 = vsel %vm2300_vm5, %v2284_v27, %v5616_v1  ;;  %v2302_v8 = vsel %vm2300_vm5, %v2285_v7, %v5617_v15 }
 0x273   : > { %v5625_v20 = vpop.permute.xlu0 %5624  ;;  %v5640_v49 = vpop.permute.xlu1 %5639  ;;  %v2318_v47 = vsel %vm2317_vm6, %v2301_v53, %v5621_v57  ;;  %v2319_v19 = vsel %vm2317_vm6, %v2302_v8, %v5622_v43  ;;  %v2238_v10 = vsel %vm2234_vm1, %v7457_v38, %v5632_v45  ;;  %v2237_v50 = vsel %vm2234_vm1, %v7428_v4, %v5631_v40 }
 0x274   : > { %v5627_v30 = vunpack.i.h.bf16 %v5625_v20  ;;  %v5626_v39 = vunpack.i.l.bf16 %v5625_v20  ;;  %v5642_v14 = vunpack.i.h.bf16 %v5640_v49  ;;  %v5641_v13 = vunpack.i.l.bf16 %v5640_v49 }
 0x276   : > { %v2335_v63 = vsel %vm2334_vm7, %v2318_v47, %v5626_v39  ;;  %v2336_v46 = vsel %vm2334_vm7, %v2319_v19, %v5627_v30 }
 0x277   : > { %v5635_v60 = vpop.permute.xlu0 %5634  ;;  %v5650_v18 = vpop.permute.xlu1 %5649  ;;  %v2351_v21 = vpack.c.bf16 %v2336_v46, %v2335_v63 }
 0x278   : > { %v5637_v16 = vunpack.i.h.bf16 %v5635_v60  ;;  %v5636_v9 = vunpack.i.l.bf16 %v5635_v60  ;;  %v5652_v38 = vunpack.i.h.bf16 %v5650_v18  ;;  %v5651_v27 = vunpack.i.l.bf16 %v5650_v18 }
 0x279   : > { %2496 = vmatmul.mubr.bf16.vlgmr.msra.gmra.mxu0 %v2351_v21 }
 0x27a   : > { %v2254_v6 = vsel %vm2250_vm2, %v2238_v10, %v5637_v16  ;;  %v2253_v22 = vsel %vm2250_vm2, %v2237_v50, %v5636_v9  ;;  %5075 = vmatprep.mubr.msk.bf16.mxu0 %vm2234_vm1, %v2354_v55 }
 0x27b   : > { %v5645_v34 = vpop.permute.xlu0 %5644  ;;  %v5660_v28 = vpop.permute.xlu1 %5659  ;;  %v2269_v4 = vsel %vm2266_vm3, %v2253_v22, %v5641_v13  ;;  %v2270_v7 = vsel %vm2266_vm3, %v2254_v6, %v5642_v14 }
 0x27c   : > { %v5647_v15 = vunpack.i.h.bf16 %v5645_v34  ;;  %v5646_v1 = vunpack.i.l.bf16 %v5645_v34  ;;  %v5662_v53 = vunpack.i.h.bf16 %v5660_v28  ;;  %v5661_v8 = vunpack.i.l.bf16 %v5660_v28 }
 0x27e   : > { %v2286_v43 = vsel %vm2283_vm4, %v2269_v4, %v5646_v1  ;;  %v2287_v57 = vsel %vm2283_vm4, %v2270_v7, %v5647_v15 }
 0x27f   : > { %v5655_v20 = vpop.permute.xlu0 %5654  ;;  %v5670_v52 = vpop.permute.xlu1 %5669  ;;  %v2303_v49 = vsel %vm2300_vm5, %v2286_v43, %v5651_v27  ;;  %v2304_v30 = vsel %vm2300_vm5, %v2287_v57, %v5652_v38 }
 0x280   : > { %v5657_v12 = vunpack.i.h.bf16 %v5655_v20  ;;  %v5656_v55 = vunpack.i.l.bf16 %v5655_v20  ;;  %v5672_v18 = vunpack.i.h.bf16 %v5670_v52  ;;  %v5671_v21 = vunpack.i.l.bf16 %v5670_v52 }
 0x282   : > { %v2320_v39 = vsel %vm2317_vm6, %v2303_v49, %v5656_v55  ;;  %v2321_v45 = vsel %vm2317_vm6, %v2304_v30, %v5657_v12 }
 0x283   : > { %v5665_v40 = vpop.permute.xlu0 %5664  ;;  %v5680_v47 = vpop.permute.xlu1 %5679  ;;  %v2337_v19 = vsel %vm2334_vm7, %v2320_v39, %v5661_v8  ;;  %v2338_v63 = vsel %vm2334_vm7, %v2321_v45, %v5662_v53  ;;  %v2358_v39 = vpack.c.bf16 %v7452_v58, %v7562_v29 }
 0x284   : > { %v5667_v46 = vunpack.i.h.bf16 %v5665_v40  ;;  %v5666_v60 = vunpack.i.l.bf16 %v5665_v40  ;;  %v2353_v16 = vpack.c.bf16 %v2338_v63, %v2337_v19  ;;  %v5682_v22 = vunpack.i.h.bf16 %v5680_v47 }
 0x285   : > { %v5681_v34 = vunpack.i.l.bf16 %v5680_v47 }
 0x286   : > { %v2240_v9 = vsel %vm2234_vm1, %v7479_v31, %v5667_v46  ;;  %v2239_v10 = vsel %vm2234_vm1, %v7470_v44, %v5666_v60  ;;  %2504 = vmatmul.mubr.bf16.gmra.mxu0 %v2353_v16 }
 0x287   : > { %v5675_v50 = vpop.permute.xlu0 %5674  ;;  %v5690_v14 = vpop.permute.xlu1 %5689  ;;  %5076 = vmatprep.mubr.msk.bf16.mxu0 %vm2234_vm1, %v2356_v25  ;;  %v2255_v28 = vsel %vm2250_vm2, %v2239_v10, %v5671_v21  ;;  %v2256_v15 = vsel %vm2250_vm2, %v2240_v9, %v5672_v18 }
 0x288   : > { %v5677_v13 = vunpack.i.h.bf16 %v5675_v50  ;;  %v5676_v6 = vunpack.i.l.bf16 %v5675_v50  ;;  %v5692_v7 = vunpack.i.h.bf16 %v5690_v14  ;;  %v5691_v43 = vunpack.i.l.bf16 %v5690_v14 }
 0x28a   : > { %v2271_v31 = vsel %vm2266_vm3, %v2255_v28, %v5676_v6  ;;  %v2272_v44 = vsel %vm2266_vm3, %v2256_v15, %v5677_v13 }
 0x28b   : > { %v5685_v1 = vpop.permute.xlu0 %5684  ;;  %v5700_v38 = vpop.permute.xlu1 %5699  ;;  %v2288_v56 = vsel %vm2283_vm4, %v2271_v31, %v5681_v34  ;;  %v2289_v36 = vsel %vm2283_vm4, %v2272_v44, %v5682_v22 }
 0x28c   : > { %v5687_v27 = vunpack.i.h.bf16 %v5685_v1  ;;  %v5686_v4 = vunpack.i.l.bf16 %v5685_v1  ;;  %v5702_v12 = vunpack.i.h.bf16 %v5700_v38  ;;  %v5701_v55 = vunpack.i.l.bf16 %v5700_v38 }
 0x28e   : > { %v2305_v25 = vsel %vm2300_vm5, %v2288_v56, %v5686_v4  ;;  %v2306_v57 = vsel %vm2300_vm5, %v2289_v36, %v5687_v27  ;;  %v2242_v18 = vsel %vm2234_vm1, %v7521_v33, %v5702_v12  ;;  %v2241_v21 = vsel %vm2234_vm1, %v7504_v11, %v5701_v55 }
 0x28f   : > { %v5695_v53 = vpop.permute.xlu0 %5694  ;;  %v5710_v8 = vpop.permute.xlu1 %5709  ;;  %v2322_v49 = vsel %vm2317_vm6, %v2305_v25, %v5691_v43  ;;  %v2323_v30 = vsel %vm2317_vm6, %v2306_v57, %v5692_v7 }
 0x290   : > { %v5697_v20 = vunpack.i.h.bf16 %v5695_v53  ;;  %v5696_v52 = vunpack.i.l.bf16 %v5695_v53  ;;  %v5712_v16 = vunpack.i.h.bf16 %v5710_v8  ;;  %v5711_v9 = vunpack.i.l.bf16 %v5710_v8 }
 0x292   : > { %v2339_v45 = vsel %vm2334_vm7, %v2322_v49, %v5696_v52  ;;  %v2340_v40 = vsel %vm2334_vm7, %v2323_v30, %v5697_v20 }
 0x293   : > { %v5705_v47 = vpop.permute.xlu0 %5704  ;;  %v5720_v19 = vpop.permute.xlu1 %5719  ;;  %v2355_v63 = vpack.c.bf16 %v2340_v40, %v2339_v45 }
 0x294   : > { %v5707_v46 = vunpack.i.h.bf16 %v5705_v47  ;;  %v5706_v60 = vunpack.i.l.bf16 %v5705_v47  ;;  %v5722_v22 = vunpack.i.h.bf16 %v5720_v19  ;;  %v5721_v34 = vunpack.i.l.bf16 %v5720_v19 }
 0x295   : > { %2512 = vmatmul.mubr.bf16.gmra.mxu0 %v2355_v63 }
 0x296   : > { %v2258_v29 = vsel %vm2250_vm2, %v2242_v18, %v5707_v46  ;;  %v2257_v10 = vsel %vm2250_vm2, %v2241_v21, %v5706_v60  ;;  %5077 = vmatprep.mubr.msk.bf16.mxu0 %vm2234_vm1, %v2358_v39 }
 0x297   : > { %v5715_v50 = vpop.permute.xlu0 %5714  ;;  %v5730_v14 = vpop.permute.xlu1 %5729  ;;  %v2273_v33 = vsel %vm2266_vm3, %v2257_v10, %v5711_v9  ;;  %v2274_v28 = vsel %vm2266_vm3, %v2258_v29, %v5712_v16 }
 0x298   : > { %v5717_v13 = vunpack.i.h.bf16 %v5715_v50  ;;  %v5716_v6 = vunpack.i.l.bf16 %v5715_v50  ;;  %v7813_v31 = vunpack.i.h.bf16 %v5730_v14  ;;  %v5731_v44 = vunpack.i.l.bf16 %v5730_v14 }
 0x29a   : > { %v2290_v11 = vsel %vm2283_vm4, %v2273_v33, %v5716_v6  ;;  %v2291_v15 = vsel %vm2283_vm4, %v2274_v28, %v5717_v13 }
 0x29b   : > { %v5725_v1 = vpop.permute.xlu0 %5724  ;;  %v5740_v38 = vpop.permute.xlu1 %5739  ;;  %v2308_v7 = vsel %vm2300_vm5, %v2291_v15, %v5722_v22  ;;  %v2307_v43 = vsel %vm2300_vm5, %v2290_v11, %v5721_v34 }
 0x29c   : > { %v7815_v27 = vunpack.i.h.bf16 %v5725_v1  ;;  %v5726_v4 = vunpack.i.l.bf16 %v5725_v1  ;;  %v5741_v52 = vunpack.i.l.bf16 %v5740_v38 }
 0x29e   : > { %v2324_v56 = vsel %vm2317_vm6, %v2307_v43, %v5726_v4  ;;  %v2325_v36 = vsel %vm2317_vm6, %v2308_v7, %v7815_v27  ;;  %v5742_v4 = vunpack.i.h.bf16 %v5740_v38 }
 0x29f   : > { %v5735_v25 = vpop.permute.xlu0 %5734  ;;  %v5750_v57 = vpop.permute.xlu1 %5749  ;;  %v2341_v53 = vsel %vm2334_vm7, %v2324_v56, %v5731_v44  ;;  %v2342_v8 = vsel %vm2334_vm7, %v2325_v36, %v7813_v31 }
 0x2a0   : > { %v5736_v20 = vunpack.i.l.bf16 %v5735_v25  ;;  %v2357_v12 = vpack.c.bf16 %v2342_v8, %v2341_v53  ;;  %v5752_v40 = vunpack.i.h.bf16 %v5750_v57  ;;  %v5751_v47 = vunpack.i.l.bf16 %v5750_v57 }
 0x2a1   : > { %v5737_v6 = vunpack.i.h.bf16 %v5735_v25 }
 0x2a2   : > { %v2243_v55 = vsel %vm2234_vm1, %v7574_v61, %v5736_v20  ;;  %2520 = vmatmul.mubr.bf16.gmra.mxu0 %v2357_v12 }
 0x2a3   : > { %v5745_v49 = vpop.permute.xlu0 %5744  ;;  %v5760_v30 = vpop.permute.xlu1 %5759  ;;  %5078 = vmatprep.mubr.msk.bf16.mxu0 %vm2234_vm1, %v2360_v24  ;;  %v2259_v19 = vsel %vm2250_vm2, %v2243_v55, %v5741_v52  ;;  %v2244_v43 = vsel %vm2234_vm1, %v7577_v62, %v5737_v6 }
 0x2a4   : > { %v5747_v39 = vunpack.i.h.bf16 %v5745_v49  ;;  %v5746_v45 = vunpack.i.l.bf16 %v5745_v49  ;;  %v5762_v16 = vunpack.i.h.bf16 %v5760_v30  ;;  %v5761_v9 = vunpack.i.l.bf16 %v5760_v30 }
 0x2a5   : > { %v2260_v38 = vsel %vm2250_vm2, %v2244_v43, %v5742_v4 }
 0x2a6   : > { %v2275_v63 = vsel %vm2266_vm3, %v7746_v48, %v5746_v45  ;;  %v2276_v46 = vsel %vm2266_vm3, %v2259_v19, %v5747_v39 }
 0x2a7   : > { %v5755_v61 = vpop.permute.xlu0 %5754  ;;  %v7835_v60 = vpop.permute.xlu1 %5769  ;;  %v2292_v23 = vsel %vm2283_vm4, %v2275_v63, %v5751_v47  ;;  %v2293_v54 = vsel %vm2283_vm4, %v2276_v46, %v5752_v40 }
 0x2a8   : > { %v5757_v18 = vunpack.i.h.bf16 %v5755_v61  ;;  %v5756_v21 = vunpack.i.l.bf16 %v5755_v61  ;;  %v5771_v22 = vunpack.i.l.bf16 %v7835_v60 }
 0x2aa   : > { %v2309_v24 = vsel %vm2300_vm5, %v2292_v23, %v5756_v21  ;;  %v2310_v29 = vsel %vm2300_vm5, %v2293_v54, %v5757_v18  ;;  %v2245_v56 = vsel %vm2234_vm1, %v7637_v17, %v5771_v22 }
 0x2ab   : > { %v5765_v10 = vpop.permute.xlu0 %5764  ;;  %v5780_v50 = vpop.permute.xlu1 %5779  ;;  %v2326_v34 = vsel %vm2317_vm6, %v2309_v24, %v5761_v9  ;;  %v2327_v33 = vsel %vm2317_vm6, %v2310_v29, %v5762_v16  ;;  %v5772_v9 = vunpack.i.h.bf16 %v7835_v60 }
 0x2ac   : > { %v5767_v14 = vunpack.i.h.bf16 %v5765_v10  ;;  %v5766_v13 = vunpack.i.l.bf16 %v5765_v10  ;;  %v5782_v36 = vunpack.i.h.bf16 %v5780_v50  ;;  %v5781_v25 = vunpack.i.l.bf16 %v5780_v50 }
 0x2ae   : > { %v2343_v28 = vsel %vm2334_vm7, %v2326_v34, %v5766_v13  ;;  %v2344_v11 = vsel %vm2334_vm7, %v2327_v33, %v5767_v14  ;;  %v2277_v62 = vsel %vm2266_vm3, %v2260_v38, %v5781_v25  ;;  %v2246_v13 = vsel %vm2234_vm1, %v7642_v3, %v5772_v9 }
 0x2af   : > { %v5775_v15 = vpop.permute.xlu0 %5774  ;;  %v5790_v44 = vpop.permute.xlu1 %5789  ;;  %v2359_v1 = vpack.c.bf16 %v2344_v11, %v2343_v28 }
 0x2b0   : > { %v5776_v7 = vunpack.i.l.bf16 %v5775_v15  ;;  %v5792_v12 = vunpack.i.h.bf16 %v5790_v44  ;;  %v5791_v17 = vunpack.i.l.bf16 %v5790_v44  ;;  %v5777_v54 = vunpack.i.h.bf16 %v5775_v15 }
 0x2b1   : > { %2528 = vmatmul.mubr.bf16.gmra.mxu0 %v2359_v1 }
 0x2b2   : > { %v2261_v57 = vsel %vm2250_vm2, %v2245_v56, %v5776_v7  ;;  %5079 = vmatprep.mubr.msk.bf16.mxu0 %vm2234_vm1, %v2362_v37  ;;  %v2262_v60 = vsel %vm2250_vm2, %v2246_v13, %v5777_v54  ;;  %v6114_v13 = vld [vmem:[%s6591_s15 + $0x28] sm:$0xff]  }
 0x2b3   : > { %v5785_v53 = vpop.permute.xlu0 %5784  ;;  %v5800_v8 = vpop.permute.xlu1 %5799  ;;  %v2278_v55 = vsel %vm2266_vm3, %v2261_v57, %v5782_v36 }
 0x2b4   : > { %v5787_v20 = vunpack.i.h.bf16 %v5785_v53  ;;  %v5786_v52 = vunpack.i.l.bf16 %v5785_v53  ;;  %v5802_v39 = vunpack.i.h.bf16 %v5800_v8  ;;  %v5801_v59 = vunpack.i.l.bf16 %v5800_v8 }
 0x2b6   : > { %v2294_v49 = vsel %vm2283_vm4, %v2277_v62, %v5786_v52  ;;  %v2295_v30 = vsel %vm2283_vm4, %v2278_v55, %v5787_v20  ;;  %v2366_v52 = vpack.c.bf16 %v7452_v58, %v7728_v35 }
 0x2b7   : > { %v5795_v41 = vpop.permute.xlu0 %5794  ;;  %v7860_v37 = vpop.permute.xlu1 %5809  ;;  %v2311_v47 = vsel %vm2300_vm5, %v2294_v49, %v5791_v17  ;;  %v2312_v19 = vsel %vm2300_vm5, %v2295_v30, %v5792_v12 }
 0x2b8   : > { %v5797_v45 = vunpack.i.h.bf16 %v5795_v41  ;;  %v5796_v40 = vunpack.i.l.bf16 %v5795_v41  ;;  %v5811_v24 = vunpack.i.l.bf16 %v7860_v37  ;;  %v5812_v30 = vunpack.i.h.bf16 %v7860_v37 }
 0x2ba   : > { %v2328_v63 = vsel %vm2317_vm6, %v2311_v47, %v5796_v40  ;;  %v2329_v46 = vsel %vm2317_vm6, %v2312_v19, %v5797_v45 }
 0x2bb   : > { %v5805_v61 = vpop.permute.xlu0 %5804  ;;  %v5820_v18 = vpop.permute.xlu1 %5819  ;;  %v2345_v21 = vsel %vm2334_vm7, %v2328_v63, %v5801_v59  ;;  %v2346_v16 = vsel %vm2334_vm7, %v2329_v46, %v5802_v39 }
 0x2bc   : > { %v5806_v23 = vunpack.i.l.bf16 %v5805_v61  ;;  %v2361_v29 = vpack.c.bf16 %v2346_v16, %v2345_v21  ;;  %v5822_v34 = vunpack.i.h.bf16 %v5820_v18  ;;  %v5821_v33 = vunpack.i.l.bf16 %v5820_v18 }
 0x2bd   : > { %v5807_v53 = vunpack.i.h.bf16 %v5805_v61 }
 0x2be   : > { %v2247_v10 = vsel %vm2234_vm1, %v7673_v42, %v5806_v23  ;;  %2536 = vmatmul.mubr.bf16.gmra.mxu0 %v2361_v29 }
 0x2bf   : > { %v5815_v50 = vpop.permute.xlu0 %5814  ;;  %v5830_v14 = vpop.permute.xlu1 %5829  ;;  %5080 = vmatprep.mubr.msk.bf16.mxu0 %vm2234_vm1, %v2364_v2  ;;  %v2263_v28 = vsel %vm2250_vm2, %v2247_v10, %v5811_v24 }
 0x2c0   : > { %v5817_v6 = vunpack.i.h.bf16 %v5815_v50  ;;  %v5816_v22 = vunpack.i.l.bf16 %v5815_v50  ;;  %v5832_v4 = vunpack.i.h.bf16 %v5830_v14  ;;  %v5831_v7 = vunpack.i.l.bf16 %v5830_v14  ;;  %v6112_v50 = vld [vmem:[%s6591_s15 + $0x38] sm:$0xff]   ;;  %v6113_v14 = vld [vmem:[%s6591_s15 + $0x30] sm:$0xff]  }
 0x2c1   : > { %3377 = vmatpush1.bf16.msra.mxu1 %v6112_v50 }
 0x2c2   : > { %v2279_v42 = vsel %vm2266_vm3, %v2262_v60, %v5816_v22  ;;  %v2280_v11 = vsel %vm2266_vm3, %v2263_v28, %v5817_v6  ;;  %3378 = vmatprep.subr.bf16.mxu1 %v6447_v51  ;;  %v6115_v6 = vld [vmem:[%s6591_s15 + $0x20] sm:$0xff]   ;;  %v6116_v28 = vld [vmem:[%s6591_s15 + $0x18] sm:$0xff]  }
 0x2c3   : > { %v5825_v15 = vpop.permute.xlu0 %5824  ;;  %v1862_v44 = vpop.permute.xlu1 %1861  ;;  %v2296_v26 = vsel %vm2283_vm4, %v2279_v42, %v5821_v33  ;;  %v2297_v5 = vsel %vm2283_vm4, %v2280_v11, %v5822_v34  ;;  %v7924_v22 = vld [vmem:[%s9202_s1] ss:$0 sm:$0xff]  ;;  %s9207_s1 = sld [smem:[#allocation10_spill]] (!%p5103_p6) }
 0x2c4   : > { %v5827_v3 = vunpack.i.h.bf16 %v5825_v15  ;;  %v5826_v1 = vunpack.i.l.bf16 %v5825_v15  ;;  %v2249_v8 = vsel %vm2234_vm1, %v7580_v0, %v1862_v44  ;;  %v2248_v0 = vsel %vm2234_vm1, %v7552_v32, %v5807_v53  ;;  %v7931_v60 = vld [vmem:[%s653_s20] ss:$0 sm:$0xff]  ;;  %s9203_s20 = scalar_lea.vmem %s9169_s8, %s6568_s28 }
 0x2c5   : > { %v2264_v19 = vsel %vm2250_vm2, %v2248_v0, %v5812_v30  ;;  %3379 = vmatpush1.bf16.msra.mxu1 %v6113_v14 }
 0x2c6   : > { %v2313_v2 = vsel %vm2300_vm5, %v2296_v26, %v5826_v1  ;;  %v2314_v43 = vsel %vm2300_vm5, %v2297_v5, %v5827_v3  ;;  %3380 = vmatprep.subr.bf16.mxu1 %v6447_v51  ;;  %v6117_v1 = vld [vmem:[%s6591_s15 + $0x10] sm:$0xff]  }
 0x2c7   : > { %v5835_v56 = vpop.permute.xlu0 %5834  ;;  %v5840_v57 = vpop.permute.xlu1 %5839  ;;  %v2330_v38 = vsel %vm2317_vm6, %v2313_v2, %v5831_v7  ;;  %v2331_v20 = vsel %vm2317_vm6, %v2314_v43, %v5832_v4 }
 0x2c8   : > { %v5837_v36 = vunpack.i.h.bf16 %v5835_v56  ;;  %v5836_v25 = vunpack.i.l.bf16 %v5835_v56  ;;  %v5842_v17 = vunpack.i.h.bf16 %v5840_v57  ;;  %v5841_v41 = vunpack.i.l.bf16 %v5840_v57  ;;  %v6118_v56 = vld [vmem:[%s6591_s15 + $0x8] sm:$0xff]  }
 0x2c9   : > { %3381 = vmatpush1.bf16.msra.mxu1 %v6114_v13 }
 0x2ca   : > { %v2347_v62 = vsel %vm2334_vm7, %v2330_v38, %v5836_v25  ;;  %v2348_v12 = vsel %vm2334_vm7, %v2331_v20, %v5837_v36  ;;  %v2281_v46 = vsel %vm2266_vm3, %v2264_v19, %v5841_v41  ;;  %3382 = vmatprep.subr.bf16.mxu1 %v6447_v51  ;;  %v6120_v19 = vld [vmem:[%s6591_s15 + $0x40] sm:$0xff]  }
 0x2cb   : > { %v1953_v55 = vpop.permute.xlu0 %1952  ;;  %v2363_v49 = vpack.c.bf16 %v2348_v12, %v2347_v62  ;;  %v5850_v59 = vpop.permute.xlu1 %5849 }
 0x2cc   : > { %v2265_v39 = vsel %vm2250_vm2, %v2249_v8, %v1953_v55  ;;  %v5852_v40 = vunpack.i.h.bf16 %v5850_v59  ;;  %v5851_v47 = vunpack.i.l.bf16 %v5850_v59 }
 0x2cd   : > { %2544 = vmatmul.mubr.bf16.gmra.mxu0 %v2363_v49  ;;  %v2282_v35 = vsel %vm2266_vm3, %v2265_v39, %v5842_v17  ;;  %3383 = vmatpush1.bf16.msra.mxu1 %v6115_v6 }
 0x2ce   : > { %5081 = vmatprep.mubr.msk.bf16.mxu0 %vm2234_vm1, %v2366_v52  ;;  %3384 = vmatprep.subr.bf16.mxu1 %v6447_v51  ;;  %v6119_v52 = vld [vmem:[%s6591_s15] sm:$0xff]  }
 0x2cf   : > { %v5845_v45 = vpop.permute.xlu0 %5844  ;;  %v2203_v18 = vpop.permute.xlu1 %2202 }
 0x2d0   : > { %v5847_v63 = vunpack.i.h.bf16 %v5845_v45  ;;  %v5846_v37 = vunpack.i.l.bf16 %v5845_v45 }
 0x2d1   : > { %3385 = vmatpush1.bf16.msra.mxu1 %v6116_v28 }
 0x2d2   : > { %v2299_v61 = vsel %vm2283_vm4, %v2282_v35, %v5847_v63  ;;  %v2298_v32 = vsel %vm2283_vm4, %v2281_v46, %v5846_v37  ;;  %3386 = vmatprep.subr.bf16.mxu1 %v6447_v51 }
 0x2d3   : > { %v2316_v21 = vsel %vm2300_vm5, %v2299_v61, %v5852_v40  ;;  %v2158_v16 = vpop.permute.xlu0 %2157  ;;  %v2315_v9 = vsel %vm2300_vm5, %v2298_v32, %v5851_v47 }
 0x2d4   : > { %v2332_v23 = vsel %vm2317_vm6, %v2315_v9, %v2158_v16  ;;  %v2333_v54 = vsel %vm2317_vm6, %v2316_v21, %v7815_v27 }
 0x2d5   : > { %v2349_v24 = vsel %vm2334_vm7, %v2332_v23, %v2203_v18  ;;  %v2350_v29 = vsel %vm2334_vm7, %v2333_v54, %v7813_v31  ;;  %3387 = vmatpush1.bf16.msra.mxu1 %v6117_v1 }
 0x2d6   : > { %v2365_v10 = vpack.c.bf16 %v2350_v29, %v2349_v24  ;;  %3388 = vmatprep.subr.bf16.mxu1 %v6447_v51 }
 0x2d8   : > { %2552 = vmatmul.mubr.bf16.gmra.mxu0 %v2365_v10 }
 0x2d9   : > { %3389 = vmatpush1.bf16.msra.mxu1 %v6118_v56 }
 0x2da   : > { %3390 = vmatprep.subr.bf16.mxu1 %v6447_v51 }
 0x2dd   : > { %3391 = vmatpush1.bf16.msra.mxu1 %v6119_v52 }
 0x2de   : > { %3406 = vmatprep.subr.bf16.mxu1 %v6447_v51 }
 0x2e1   : > { %3407 = vmatpush2.bf16.msra.mxu1 %v6120_v19 }
 0x339   : > { %v2497_v34 = vpop.f32.mrf.mxu0 }
 0x33a   : > { %v2566_v33 = vmul.f32 %v7924_v22, %v2497_v34 }
 0x33b   : > { %v2499_v42 = vpop.f32.mrf.mxu0 }
 0x33c   : > { %v2588_v11 = vadd.f32 %v7931_v60, %v2566_v33 }
 0x33d   : > { %v2500_v15 = vpop.f32.mrf.mxu0 }
 0x33e   : > { %v2604_v44 = vmax.f32 %v2588_v11, 0.0  ;;  %v2567_v3 = vmul.f32 %v7924_v22, %v2500_v15 }
 0x33f   : > { %v2502_v4 = vpop.f32.mrf.mxu0 }
 0x340   : > { %v2638_v7 = vrot.slane %v2604_v44, 7  ;;  %v2589_v26 = vadd.f32 %v7931_v60, %v2567_v3 }
 0x342   : > { %v7943_v5 = vsel %vm1722_vm14, 0.0, %v2638_v7  ;;  %v2686_v2 = vsel %vm1722_vm14, %v2638_v7, 0.0  ;;  %v2605_v43 = vmax.f32 %v2589_v26, 0.0 }
 0x343   : > { %v2815_v25 = vrot.slane %v2686_v2, 2  ;;  %v2814_v57 = vrot.slane %v7943_v5, 2  ;;  %v2731_v53 = vrot.slane %v2686_v2, 1  ;;  %v2730_v20 = vrot.slane %v7943_v5, 1 }
 0x344   : > { %v2639_v36 = vrot.slane %v2605_v43, 7 }
 0x345   : > { %v2816_v0 = vsel %vm1878_vm0, %v2814_v57, %v2815_v25  ;;  %v2732_v40 = vsel %vm1787_vm15, %v2730_v20, %v2731_v53 }
 0x346   : > { %v7950_v8 = vsel %vm1722_vm14, 0.0, %v2639_v36  ;;  %v2687_v38 = vsel %vm1722_vm14, %v2639_v36, 0.0  ;;  %v2505_v17 = vpop.f32.mrf.mxu0 }
 0x347   : > { %v2734_v62 = vrot.slane %v2687_v38, 1  ;;  %v2818_v12 = vrot.slane %v2687_v38, 2  ;;  %v5853_v55 = vpack.i.bf16 %v7950_v8, %v7943_v5  ;;  %v2817_v49 = vrot.slane %v7950_v8, 2 }
 0x348   : > { %v2568_v30 = vmul.f32 %v7924_v22, %v2505_v17  ;;  %v2733_v39 = vrot.slane %v7950_v8, 1  ;;  %v2507_v59 = vpop.f32.mrf.mxu0 }
 0x349   : > { %5854 = vrot.lane.b32.xlu0 %v5853_v55, %s6440_s25  ;;  %v2819_v41 = vsel %vm1878_vm0, %v2817_v49, %v2818_v12 }
 0x34a   : > { %v2590_v35 = vadd.f32 %v7931_v60, %v2568_v30  ;;  %v5863_v45 = vpack.i.bf16 %v2819_v41, %v2816_v0  ;;  %v2735_v47 = vsel %vm1787_vm15, %v2733_v39, %v2734_v62  ;;  %v2508_v63 = vpop.f32.mrf.mxu0 }
 0x34b   : > { %v5858_v37 = vpack.i.bf16 %v2735_v47, %v2732_v40  ;;  %v2569_v61 = vmul.f32 %v7924_v22, %v2508_v63 }
 0x34c   : > { %v2606_v46 = vmax.f32 %v2590_v35, 0.0  ;;  %5864 = vrot.lane.b32.xlu1 %v5863_v45, %s6443_s29  ;;  %v2510_v32 = vpop.f32.mrf.mxu0 }
 0x34d   : > { %5859 = vrot.lane.b32.xlu0 %v5858_v37, %s6441_s16  ;;  %v2591_v18 = vadd.f32 %v7931_v60, %v2569_v61 }
 0x34e   : > { %v2640_v51 = vrot.slane %v2606_v46, 7 }
 0x34f   : > { %v2607_v9 = vmax.f32 %v2591_v18, 0.0 }
 0x350   : > { %v7973_v21 = vsel %vm1722_vm14, 0.0, %v2640_v51  ;;  %v2688_v16 = vsel %vm1722_vm14, %v2640_v51, 0.0  ;;  %5869 = vrot.lane.b32.xlu1 %v5858_v37, %s6442_s19 }
 0x351   : > { %v2737_v23 = vrot.slane %v2688_v16, 1  ;;  %v2821_v54 = vrot.slane %v2688_v16, 2  ;;  %5874 = vrot.lane.b32.xlu0 %v5863_v45, %s6445_s27  ;;  %v2820_v24 = vrot.slane %v7973_v21, 2  ;;  %v2641_v29 = vrot.slane %v2607_v9, 7 }
 0x352   : > { %v5878_v10 = vpack.i.bf16 %v7973_v21, %v7950_v8  ;;  %v2736_v50 = vrot.slane %v7973_v21, 1 }
 0x353   : > { %v2822_v14 = vsel %vm1878_vm0, %v2820_v24, %v2821_v54  ;;  %v7984_v13 = vsel %vm1722_vm14, 0.0, %v2641_v29  ;;  %v2689_v6 = vsel %vm1722_vm14, %v2641_v29, 0.0 }
 0x354   : > { %5879 = vrot.lane.b32.xlu1 %v5878_v10, %s6444_s17  ;;  %v3265_v34 = vpack.c.bf16 %v2822_v14, %v2819_v41  ;;  %v2738_v33 = vsel %vm1787_vm15, %v2736_v50, %v2737_v23  ;;  %v2740_v28 = vrot.slane %v2689_v6, 1  ;;  %v2824_v42 = vrot.slane %v2689_v6, 2 }
 0x355   : > { %v5883_v11 = vpack.i.bf16 %v2738_v33, %v2735_v47  ;;  %v2513_v15 = vpop.f32.mrf.mxu0  ;;  %v5888_v3 = vpack.i.bf16 %v7984_v13, %v7973_v21  ;;  %v2823_v1 = vrot.slane %v7984_v13, 2  ;;  %v2739_v4 = vrot.slane %v7984_v13, 1 }
 0x356   : > { %5093 = vmatprep.mubr.msk.bf16.mxu1 %vm2234_vm1, %v3265_v34  ;;  %v2570_v44 = vmul.f32 %v7924_v22, %v2513_v15 }
 0x357   : > { %5884 = vrot.lane.b32.xlu0 %v5883_v11, %s6446_s30  ;;  %v2515_v7 = vpop.f32.mrf.mxu0  ;;  %v7999_v2 = vsel %vm1878_vm0, %v2823_v1, %v2824_v42  ;;  %v2741_v43 = vsel %vm1787_vm15, %v2739_v4, %v2740_v28 }
 0x358   : > { %v2592_v26 = vadd.f32 %v7931_v60, %v2570_v44  ;;  %5889 = vrot.lane.b32.xlu1 %v5888_v3, %s6440_s25  ;;  %v5898_v56 = vpack.i.bf16 %v7999_v2, %v2822_v14  ;;  %v5893_v53 = vpack.i.bf16 %v2741_v43, %v2738_v33 }
 0x359   : > { %v2516_v36 = vpop.f32.mrf.mxu0 }
 0x35a   : > { %v2608_v25 = vmax.f32 %v2592_v26, 0.0  ;;  %v2571_v57 = vmul.f32 %v7924_v22, %v2516_v36 }
 0x35b   : > { %5899 = vrot.lane.b32.xlu0 %v5898_v56, %s6443_s29  ;;  %v2518_v38 = vpop.f32.mrf.mxu0 }
 0x35c   : > { %v2642_v20 = vrot.slane %v2608_v25, 7  ;;  %v2593_v52 = vadd.f32 %v7931_v60, %v2571_v57  ;;  %5894 = vrot.lane.b32.xlu1 %v5893_v53, %s6441_s16 }
 0x35e   : > { %v8008_v62 = vsel %vm1722_vm14, 0.0, %v2642_v20  ;;  %v2690_v12 = vsel %vm1722_vm14, %v2642_v20, 0.0  ;;  %v2609_v17 = vmax.f32 %v2593_v52, 0.0 }
 0x35f   : > { %v2743_v55 = vrot.slane %v2690_v12, 1  ;;  %v2827_v49 = vrot.slane %v2690_v12, 2  ;;  %5904 = vrot.lane.b32.xlu0 %v5893_v53, %s6442_s19  ;;  %v5913_v30 = vpack.i.bf16 %v8008_v62, %v7984_v13  ;;  %v2742_v39 = vrot.slane %v8008_v62, 1 }
 0x360   : > { %v2643_v59 = vrot.slane %v2609_v17, 7  ;;  %5909 = vrot.lane.b32.xlu1 %v5898_v56, %s6445_s27  ;;  %v2826_v0 = vrot.slane %v8008_v62, 2 }
 0x361   : > { %v2744_v41 = vsel %vm1787_vm15, %v2742_v39, %v2743_v55 }
 0x362   : > { %v8019_v35 = vsel %vm1722_vm14, 0.0, %v2643_v59  ;;  %v2691_v45 = vsel %vm1722_vm14, %v2643_v59, 0.0  ;;  %v5918_v40 = vpack.i.bf16 %v2744_v41, %v2741_v43  ;;  %v8023_v47 = vsel %vm1878_vm0, %v2826_v0, %v2827_v49  ;;  %v2521_v37 = vpop.f32.mrf.mxu0 }
 0x363   : > { %v2746_v19 = vrot.slane %v2691_v45, 1  ;;  %v2830_v63 = vrot.slane %v2691_v45, 2  ;;  %5914 = vrot.lane.b32.xlu0 %v5913_v30, %s6444_s17  ;;  %v5923_v46 = vpack.i.bf16 %v8019_v35, %v8008_v62  ;;  %v2829_v61 = vrot.slane %v8019_v35, 2 }
 0x364   : > { %v2572_v32 = vmul.f32 %v7924_v22, %v2521_v37  ;;  %5919 = vrot.lane.b32.xlu1 %v5918_v40, %s6446_s30  ;;  %v2745_v51 = vrot.slane %v8019_v35, 1  ;;  %v3267_v18 = vpack.c.bf16 %v8023_v47, %v7999_v2  ;;  %v2523_v16 = vpop.f32.mrf.mxu0 }
 0x365   : > { %v8035_v9 = vsel %vm1878_vm0, %v2829_v61, %v2830_v63 }
 0x366   : > { %v2594_v23 = vadd.f32 %v7931_v60, %v2572_v32  ;;  %v5933_v54 = vpack.i.bf16 %v8035_v9, %v8023_v47  ;;  %v2747_v24 = vsel %vm1787_vm15, %v2745_v51, %v2746_v19  ;;  %v2524_v29 = vpop.f32.mrf.mxu0 }
 0x367   : > { %5924 = vrot.lane.b32.xlu0 %v5923_v46, %s6440_s25  ;;  %v5928_v10 = vpack.i.bf16 %v2747_v24, %v2744_v41  ;;  %v2573_v14 = vmul.f32 %v7924_v22, %v2524_v29 }
 0x368   : > { %v2610_v50 = vmax.f32 %v2594_v23, 0.0  ;;  %5934 = vrot.lane.b32.xlu1 %v5933_v54, %s6443_s29  ;;  %v2526_v6 = vpop.f32.mrf.mxu0 }
 0x369   : > { %v2595_v33 = vadd.f32 %v7931_v60, %v2573_v14 }
 0x36a   : > { %v2644_v34 = vrot.slane %v2610_v50, 7 }
 0x36b   : > { %5929 = vrot.lane.b32.xlu0 %v5928_v10, %s6441_s16  ;;  %v2611_v11 = vmax.f32 %v2595_v33, 0.0 }
 0x36c   : > { %v8047_v28 = vsel %vm1722_vm14, 0.0, %v2644_v34  ;;  %v2692_v42 = vsel %vm1722_vm14, %v2644_v34, 0.0  ;;  %5939 = vrot.lane.b32.xlu1 %v5928_v10, %s6442_s19 }
 0x36d   : > { %v2749_v15 = vrot.slane %v2692_v42, 1  ;;  %v2833_v44 = vrot.slane %v2692_v42, 2  ;;  %v2748_v3 = vrot.slane %v8047_v28, 1  ;;  %v2645_v1 = vrot.slane %v2611_v11, 7 }
 0x36e   : > { %v5948_v4 = vpack.i.bf16 %v8047_v28, %v8019_v35  ;;  %v2832_v7 = vrot.slane %v8047_v28, 2 }
 0x36f   : > { %5944 = vrot.lane.b32.xlu0 %v5933_v54, %s6445_s27  ;;  %v2750_v26 = vsel %vm1787_vm15, %v2748_v3, %v2749_v15  ;;  %v2677_v43 = vsel %vm1722_vm14, 0.0, %v2645_v1  ;;  %v2693_v56 = vsel %vm1722_vm14, %v2645_v1, 0.0 }
 0x370   : > { %5949 = vrot.lane.b32.xlu1 %v5948_v4, %s6444_s17  ;;  %v5953_v36 = vpack.i.bf16 %v2750_v26, %v2747_v24  ;;  %v8061_v25 = vsel %vm1878_vm0, %v2832_v7, %v2833_v44  ;;  %v2951_v57 = vrot.slane %v2693_v56, 1  ;;  %v3005_v53 = vrot.slane %v2693_v56, 2 }
 0x371   : > { %v2529_v38 = vpop.f32.mrf.mxu0  ;;  %v2950_v20 = vrot.slane %v2677_v43, 1  ;;  %v5958_v12 = vpack.i.bf16 %v2677_v43, %v8047_v28  ;;  %v3004_v17 = vrot.slane %v2677_v43, 2  ;;  %v3269_v55 = vpack.c.bf16 %v8061_v25, %v8035_v9 }
 0x372   : > { %v2574_v52 = vmul.f32 %v7924_v22, %v2529_v38 }
 0x373   : > { %5954 = vrot.lane.b32.xlu0 %v5953_v36, %s6446_s30  ;;  %v2531_v49 = vpop.f32.mrf.mxu0  ;;  %v2952_v30 = vsel %vm1787_vm15, %v2950_v20, %v2951_v57  ;;  %v8072_v0 = vsel %vm1878_vm0, %v3004_v17, %v3005_v53 }
 0x374   : > { %v2596_v39 = vadd.f32 %v7931_v60, %v2574_v52  ;;  %5959 = vrot.lane.b32.xlu1 %v5958_v12, %s6440_s25  ;;  %v5963_v59 = vpack.i.bf16 %v2952_v30, %v2750_v26  ;;  %v5968_v19 = vpack.i.bf16 %v8072_v0, %v8061_v25 }
 0x375   : > { %v2532_v41 = vpop.f32.mrf.mxu0 }
 0x376   : > { %v2612_v45 = vmax.f32 %v2596_v39, 0.0  ;;  %v2575_v40 = vmul.f32 %v7924_v22, %v2532_v41 }
 0x377   : > { %5964 = vrot.lane.b32.xlu0 %v5963_v59, %s6442_s19  ;;  %v2534_v63 = vpop.f32.mrf.mxu0 }
 0x378   : > { %v2646_v37 = vrot.slane %v2612_v45, 7  ;;  %v2597_v46 = vadd.f32 %v7931_v60, %v2575_v40  ;;  %5969 = vrot.lane.b32.xlu1 %v5968_v19, %s6445_s27 }
 0x37a   : > { %v8081_v61 = vsel %vm1722_vm14, 0.0, %v2646_v37  ;;  %v2694_v32 = vsel %vm1722_vm14, %v2646_v37, 0.0  ;;  %v2613_v51 = vmax.f32 %v2597_v46, 0.0 }
 0x37b   : > { %v2752_v16 = vrot.slane %v2694_v32, 1  ;;  %v2836_v23 = vrot.slane %v2694_v32, 2  ;;  %v2835_v54 = vrot.slane %v8081_v61, 2  ;;  %v2751_v24 = vrot.slane %v8081_v61, 1 }
 0x37c   : > { %v2647_v29 = vrot.slane %v2613_v51, 7 }
 0x37d   : > { %v2837_v10 = vsel %vm1878_vm0, %v2835_v54, %v2836_v23  ;;  %v2753_v50 = vsel %vm1787_vm15, %v2751_v24, %v2752_v16 }
 0x37e   : > { %v8089_v14 = vsel %vm1722_vm14, 0.0, %v2647_v29  ;;  %v2695_v6 = vsel %vm1722_vm14, %v2647_v29, 0.0  ;;  %v5978_v34 = vpack.i.bf16 %v2837_v10, %v8061_v25  ;;  %v5973_v33 = vpack.i.bf16 %v2753_v50, %v2750_v26  ;;  %v2537_v11 = vpop.f32.mrf.mxu0 }
 0x37f   : > { %v2755_v42 = vrot.slane %v2695_v6, 1  ;;  %v2754_v15 = vrot.slane %v8089_v14, 1  ;;  %v2576_v44 = vmul.f32 %v7924_v22, %v2537_v11  ;;  %v5983_v7 = vpack.i.bf16 %v8089_v14, %v2677_v43 }
 0x380   : > { %5979 = vrot.lane.b32.xlu0 %v5978_v34, %s6443_s29  ;;  %5974 = vrot.lane.b32.xlu1 %v5973_v33, %s6441_s16  ;;  %v2539_v3 = vpop.f32.mrf.mxu0  ;;  %v2839_v36 = vrot.slane %v2695_v6, 2  ;;  %v2838_v57 = vrot.slane %v8089_v14, 2  ;;  %v5988_v17 = vpack.i.bf16 %v8089_v14, %v8081_v61 }
 0x381   : > { %v2756_v1 = vsel %vm1787_vm15, %v2754_v15, %v2755_v42  ;;  %v2598_v4 = vadd.f32 %v7931_v60, %v2576_v44 }
 0x382   : > { %v5993_v56 = vpack.i.bf16 %v2756_v1, %v2952_v30  ;;  %v2540_v26 = vpop.f32.mrf.mxu0  ;;  %v5998_v43 = vpack.i.bf16 %v2756_v1, %v2753_v50  ;;  %v8108_v49 = vsel %vm1878_vm0, %v2838_v57, %v2839_v36 }
 0x383   : > { %v2614_v53 = vmax.f32 %v2598_v4, 0.0  ;;  %v2577_v38 = vmul.f32 %v7924_v22, %v2540_v26  ;;  %v6003_v37 = vpack.i.bf16 %v8108_v49, %v2837_v10 }
 0x384   : > { %5984 = vrot.lane.b32.xlu0 %v5983_v7, %s6444_s17  ;;  %5994 = vrot.lane.b32.xlu1 %v5993_v56, %s6446_s30  ;;  %v2542_v20 = vpop.f32.mrf.mxu0 }
 0x385   : > { %v2648_v52 = vrot.slane %v2614_v53, 7  ;;  %v2599_v12 = vadd.f32 %v7931_v60, %v2577_v38 }
 0x387   : > { %v8111_v30 = vsel %vm1722_vm14, 0.0, %v2648_v52  ;;  %v2696_v39 = vsel %vm1722_vm14, %v2648_v52, 0.0  ;;  %v2615_v59 = vmax.f32 %v2599_v12, 0.0 }
 0x388   : > { %5989 = vrot.lane.b32.xlu0 %v5988_v17, %s6440_s25  ;;  %5999 = vrot.lane.b32.xlu1 %v5998_v43, %s6442_s19  ;;  %v2758_v41 = vrot.slane %v2696_v39, 1  ;;  %v2842_v45 = vrot.slane %v2696_v39, 2  ;;  %v2757_v40 = vrot.slane %v8111_v30, 1  ;;  %v2841_v19 = vrot.slane %v8111_v30, 2 }
 0x389   : > { %v2649_v63 = vrot.slane %v2615_v59, 7 }
 0x38a   : > { %v2759_v46 = vsel %vm1787_vm15, %v2757_v40, %v2758_v41  ;;  %v8121_v32 = vsel %vm1878_vm0, %v2841_v19, %v2842_v45 }
 0x38b   : > { %v8124_v51 = vsel %vm1722_vm14, 0.0, %v2649_v63  ;;  %v2697_v16 = vsel %vm1722_vm14, %v2649_v63, 0.0  ;;  %v6008_v23 = vpack.i.bf16 %v2759_v46, %v2756_v1  ;;  %v6013_v50 = vpack.i.bf16 %v8121_v32, %v8108_v49 }
 0x38c   : > { %6004 = vrot.lane.b32.xlu0 %v6003_v37, %s6445_s27  ;;  %v2761_v54 = vrot.slane %v2697_v16, 1  ;;  %v2760_v29 = vrot.slane %v8124_v51, 1  ;;  %v3273_v6 = vpack.c.bf16 %v8121_v32, %v8108_v49  ;;  %v6018_v11 = vpack.i.bf16 %v8124_v51, %v8111_v30 }
 0x38d   : > { %v2545_v24 = vpop.f32.mrf.mxu0  ;;  %6009 = vrot.lane.b32.xlu1 %v6008_v23, %s6441_s16  ;;  %v2845_v15 = vrot.slane %v2697_v16, 2  ;;  %v2844_v3 = vrot.slane %v8124_v51, 2 }
 0x38e   : > { %v2578_v10 = vmul.f32 %v7924_v22, %v2545_v24  ;;  %v2762_v33 = vsel %vm1787_vm15, %v2760_v29, %v2761_v54 }
 0x38f   : > { %v2547_v34 = vpop.f32.mrf.mxu0  ;;  %v6028_v7 = vpack.i.bf16 %v2762_v33, %v2759_v46  ;;  %v8146_v57 = vsel %vm1878_vm0, %v2844_v3, %v2845_v15 }
 0x390   : > { %v2600_v42 = vadd.f32 %v7931_v60, %v2578_v10  ;;  %6014 = vrot.lane.b32.xlu0 %v6013_v50, %s6443_s29  ;;  %v6038_v41 = vpack.i.bf16 %v8146_v57, %v8121_v32 }
 0x391   : > { %v2548_v44 = vpop.f32.mrf.mxu0  ;;  %6019 = vrot.lane.b32.xlu1 %v6018_v11, %s6444_s17 }
 0x392   : > { %v2616_v1 = vmax.f32 %v2600_v42, 0.0  ;;  %v2579_v4 = vmul.f32 %v7924_v22, %v2548_v44 }
 0x393   : > { %v2550_v56 = vpop.f32.mrf.mxu0 }
 0x394   : > { %v2650_v36 = vrot.slane %v2616_v1, 7  ;;  %v2601_v26 = vadd.f32 %v7931_v60, %v2579_v4  ;;  %6029 = vrot.lane.b32.xlu0 %v6028_v7, %s6446_s30 }
 0x395   : > { %6024 = vrot.lane.b32.xlu1 %v6018_v11, %s6440_s25 }
 0x396   : > { %v8149_v53 = vsel %vm1722_vm14, 0.0, %v2650_v36  ;;  %v2698_v38 = vsel %vm1722_vm14, %v2650_v36, 0.0  ;;  %v2617_v20 = vmax.f32 %v2601_v26, 0.0 }
 0x397   : > { %v2764_v52 = vrot.slane %v2698_v38, 1  ;;  %v2848_v12 = vrot.slane %v2698_v38, 2  ;;  %v2763_v17 = vrot.slane %v8149_v53, 1  ;;  %v2847_v43 = vrot.slane %v8149_v53, 2 }
 0x398   : > { %v2651_v39 = vrot.slane %v2617_v20, 7  ;;  %6034 = vrot.lane.b32.xlu0 %v6028_v7, %s6442_s19  ;;  %v2553_v59 = vpop.f32.mrf.mxu0 }
 0x399   : > { %v2580_v45 = vmul.f32 %v7924_v22, %v2553_v59  ;;  %v2765_v40 = vsel %vm1787_vm15, %v2763_v17, %v2764_v52  ;;  %v8161_v19 = vsel %vm1878_vm0, %v2847_v43, %v2848_v12  ;;  %6039 = vrot.lane.b32.xlu1 %v6038_v41, %s6445_s27 }
 0x39a   : > { %v8164_v63 = vsel %vm1722_vm14, 0.0, %v2651_v39  ;;  %v2699_v37 = vsel %vm1722_vm14, %v2651_v39, 0.0  ;;  %v2555_v46 = vpop.f32.mrf.mxu0  ;;  %v6043_v16 = vpack.i.bf16 %v2765_v40, %v2762_v33  ;;  %v6048_v23 = vpack.i.bf16 %v8161_v19, %v8146_v57 }
 0x39b   : > { %v2767_v54 = vrot.slane %v2699_v37, 1  ;;  %v2602_v24 = vadd.f32 %v7931_v60, %v2580_v45  ;;  %v2766_v10 = vrot.slane %v8164_v63, 1  ;;  %v3275_v50 = vpack.c.bf16 %v8161_v19, %v8146_v57 }
 0x39c   : > { %6044 = vrot.lane.b32.xlu0 %v6043_v16, %s6441_s16  ;;  %v2556_v29 = vpop.f32.mrf.mxu0  ;;  %v2850_v11 = vrot.slane %v8164_v63, 2  ;;  %v6053_v15 = vpack.i.bf16 %v8164_v63, %v8149_v53  ;;  %v2851_v3 = vrot.slane %v2699_v37, 2 }
 0x39d   : > { %v2618_v34 = vmax.f32 %v2602_v24, 0.0  ;;  %v2581_v42 = vmul.f32 %v7924_v22, %v2556_v29  ;;  %6049 = vrot.lane.b32.xlu1 %v6048_v23, %s6443_s29  ;;  %v2768_v44 = vsel %vm1787_vm15, %v2766_v10, %v2767_v54 }
 0x39e   : > { %v2558_v33 = vpop.f32.mrf.mxu0  ;;  %v6063_v7 = vpack.i.bf16 %v2768_v44, %v2765_v40  ;;  %v8190_v20 = vsel %vm1878_vm0, %v2850_v11, %v2851_v3 }
 0x39f   : > { %v2652_v1 = vrot.slane %v2618_v34, 7  ;;  %v2603_v4 = vadd.f32 %v7931_v60, %v2581_v42  ;;  %v6073_v43 = vpack.i.bf16 %v8190_v20, %v8161_v19 }
 0x3a0   : > { %6054 = vrot.lane.b32.xlu0 %v6053_v15, %s6444_s17 }
 0x3a1   : > { %v8184_v56 = vsel %vm1722_vm14, 0.0, %v2652_v1  ;;  %v2700_v22 = vsel %vm1722_vm14, %v2652_v1, 0.0  ;;  %v2619_v36 = vmax.f32 %v2603_v4, 0.0  ;;  %6064 = vrot.lane.b32.xlu1 %v6063_v7, %s6446_s30 }
 0x3a2   : > { %v2853_v26 = vrot.slane %v8184_v56, 2  ;;  %v2854_v38 = vrot.slane %v2700_v22, 2  ;;  %v2770_v12 = vrot.slane %v2700_v22, 1  ;;  %v2769_v17 = vrot.slane %v8184_v56, 1 }
 0x3a3   : > { %v2653_v52 = vrot.slane %v2619_v36, 7 }
 0x3a4   : > { %6059 = vrot.lane.b32.xlu0 %v6053_v15, %s6440_s25  ;;  %v8194_v60 = vsel %vm1878_vm0, %v2853_v26, %v2854_v38  ;;  %v2771_v45 = vsel %vm1787_vm15, %v2769_v17, %v2770_v12 }
 0x3a5   : > { %6069 = vrot.lane.b32.xlu1 %v6063_v7, %s6442_s19  ;;  %v3277_v39 = vpack.c.bf16 %v8194_v60, %v8190_v20  ;;  %v2685_v59 = vsel %vm1722_vm14, 0.0, %v2653_v52  ;;  %v2701_v41 = vsel %vm1722_vm14, %v2653_v52, 0.0  ;;  %v6078_v46 = vpack.i.bf16 %v2771_v45, %v2768_v44 }
 0x3a6   : > { %v2953_v40 = vrot.slane %v2685_v59, 1  ;;  %v2954_v37 = vrot.slane %v2701_v41, 1  ;;  %v3007_v16 = vrot.slane %v2685_v59, 2  ;;  %v3008_v23 = vrot.slane %v2701_v41, 2 }
 0x3a7   : > { %v6083_v54 = vpack.i.bf16 %v8194_v60, %v8190_v20  ;;  %v6088_v29 = vpack.i.bf16 %v2685_v59, %v8184_v56 }
 0x3a8   : > { %6074 = vrot.lane.b32.xlu0 %v6073_v43, %s6445_s27  ;;  %v2955_v24 = vsel %vm1787_vm15, %v2953_v40, %v2954_v37  ;;  %v8216_v10 = vsel %vm1878_vm0, %v3007_v16, %v3008_v23 }
 0x3a9   : > { %3082 = vrot.lane.b32.xlu1 %v8184_v56, %s6444_s17  ;;  %v6093_v34 = vpack.i.bf16 %v2955_v24, %v2771_v45  ;;  %v6098_v42 = vpack.i.bf16 %v8216_v10, %v8194_v60 }
 0x3ac   : > { %3124 = vrot.lane.b32.xlu0 %v2771_v45, %s6446_s30 }
 0x3ad   : > { %6079 = vrot.lane.b32.xlu1 %v6078_v46, %s6441_s16  ;;  %s9204_s16 = scalar_lea.vmem %s9170_s9, %s6568_s28 }
 0x3b0   : > { %6084 = vrot.lane.b32.xlu0 %v6083_v54, %s6443_s29  ;;  %s9206_s29 = sld [smem:[#allocation9_spill]] (!%p5103_p6) }
 0x3b1   : > { %6089 = vrot.lane.b32.xlu1 %v6088_v29, %s6440_s25  ;;  %s6453_s25 = smov (!%p5103_p6), 96  }
 0x3b4   : > { %6094 = vrot.lane.b32.xlu0 %v6093_v34, %s6442_s19 }
 0x3b5   : > { %6099 = vrot.lane.b32.xlu1 %v6098_v42, %s6445_s27  ;;  %s6450_s27 = smov (!%p5103_p6), 16  }
 0x3b8   : > { %3084 = vrot.lane.b32.xlu0 %v2685_v59, %s6444_s17 }
 0x3b9   : > { %3126 = vrot.lane.b32.xlu1 %v2955_v24, %s6446_s30  ;;  %s6451_s30 = smov (!%p5103_p6), 64  }
 0x3bb   : > { %v5855_v11 = vpop.permute.xlu0 %5854 }
 0x3bc   : > { %v5856_v44 = vunpack.i.l.bf16 %v5855_v11  ;;  %v5857_v4 = vunpack.i.h.bf16 %v5855_v11 }
 0x3be   : > { %v5865_v33 = vpop.permute.xlu1 %5864  ;;  %v3184_v12 = vsel %vm2266_vm3, %v7746_v48, %v5856_v44 }
 0x3bf   : > { %v5860_v15 = vpop.permute.xlu0 %5859  ;;  %v5866_v1 = vunpack.i.l.bf16 %v5865_v33 }
 0x3c0   : > { %v5861_v3 = vunpack.i.l.bf16 %v5860_v15  ;;  %v5862_v11 = vunpack.i.h.bf16 %v5860_v15 }
 0x3c2   : > { %v3156_v7 = vsel %vm2234_vm1, %v7943_v5, %v5861_v3  ;;  %v5870_v22 = vpop.permute.xlu1 %5869 }
 0x3c3   : > { %v3170_v36 = vsel %vm2250_vm2, %v3156_v7, %v5866_v1  ;;  %v5872_v26 = vunpack.i.h.bf16 %v5870_v22  ;;  %v5871_v38 = vunpack.i.l.bf16 %v5870_v22  ;;  %v5875_v52 = vpop.permute.xlu0 %5874  ;;  %v3157_v22 = vsel %vm2234_vm1, %v7950_v8, %v5862_v11 }
 0x3c4   : > { %v3185_v17 = vsel %vm2266_vm3, %v3170_v36, %v5857_v4  ;;  %v5877_v43 = vunpack.i.h.bf16 %v5875_v52  ;;  %v5876_v59 = vunpack.i.l.bf16 %v5875_v52 }
 0x3c5   : > { %v3200_v41 = vsel %vm2283_vm4, %v3184_v12, %v5871_v38  ;;  %v3201_v45 = vsel %vm2283_vm4, %v3185_v17, %v5872_v26  ;;  %v5867_v38 = vunpack.i.h.bf16 %v5865_v33 }
 0x3c6   : > { %v5880_v40 = vpop.permute.xlu1 %5879  ;;  %v3216_v46 = vsel %vm2300_vm5, %v3200_v41, %v5876_v59  ;;  %v3217_v16 = vsel %vm2300_vm5, %v3201_v45, %v5877_v43 }
 0x3c7   : > { %v5882_v37 = vunpack.i.h.bf16 %v5880_v40  ;;  %v5881_v5 = vunpack.i.l.bf16 %v5880_v40  ;;  %v3171_v43 = vsel %vm2250_vm2, %v3157_v22, %v5867_v38 }
 0x3c9   : > { %v3233_v23 = vsel %vm2317_vm6, %v3217_v16, %v5882_v37  ;;  %v3232_v54 = vsel %vm2317_vm6, %v3216_v46, %v5881_v5  ;;  %v5885_v24 = vpop.permute.xlu0 %5884 }
 0x3ca   : > { %v5887_v29 = vunpack.i.h.bf16 %v5885_v24  ;;  %v5886_v34 = vunpack.i.l.bf16 %v5885_v24  ;;  %v5890_v42 = vpop.permute.xlu1 %5889 }
 0x3cb   : > { %v5891_v36 = vunpack.i.l.bf16 %v5890_v42  ;;  %v5892_v15 = vunpack.i.h.bf16 %v5890_v42 }
 0x3cc   : > { %v3248_v44 = vsel %vm2334_vm7, %v3232_v54, %v5886_v34  ;;  %v3249_v3 = vsel %vm2334_vm7, %v3233_v23, %v5887_v29 }
 0x3cd   : > { %v5900_v1 = vpop.permute.xlu0 %5899  ;;  %v3264_v4 = vpack.c.bf16 %v3249_v3, %v3248_v44  ;;  %v3186_v33 = vsel %vm2266_vm3, %v3171_v43, %v5891_v36 }
 0x3ce   : > { %v5895_v7 = vpop.permute.xlu1 %5894  ;;  %v5901_v52 = vunpack.i.l.bf16 %v5900_v1 }
 0x3cf   : > { %3409 = vmatmul.mubr.bf16.vlgmr.msra.gmra.mxu1 %v3264_v4  ;;  %v5896_v26 = vunpack.i.l.bf16 %v5895_v7  ;;  %v5897_v34 = vunpack.i.h.bf16 %v5895_v7 }
 0x3d0   : > { %5094 = vmatprep.mubr.msk.bf16.mxu1 %vm2234_vm1, %v3267_v18 }
 0x3d1   : > { %v3158_v12 = vsel %vm2234_vm1, %v7973_v21, %v5896_v26  ;;  %v5905_v17 = vpop.permute.xlu0 %5904  ;;  %v3159_v26 = vsel %vm2234_vm1, %v7984_v13, %v5897_v34 }
 0x3d2   : > { %v3172_v59 = vsel %vm2250_vm2, %v3158_v12, %v5901_v52  ;;  %v5907_v8 = vunpack.i.h.bf16 %v5905_v17  ;;  %v5906_v41 = vunpack.i.l.bf16 %v5905_v17  ;;  %v5910_v45 = vpop.permute.xlu1 %5909  ;;  %v5902_v52 = vunpack.i.h.bf16 %v5900_v1 }
 0x3d3   : > { %v3187_v40 = vsel %vm2266_vm3, %v3172_v59, %v5892_v15  ;;  %v5912_v37 = vunpack.i.h.bf16 %v5910_v45  ;;  %v5911_v2 = vunpack.i.l.bf16 %v5910_v45 }
 0x3d4   : > { %v3202_v47 = vsel %vm2283_vm4, %v3186_v33, %v5906_v41  ;;  %v3203_v18 = vsel %vm2283_vm4, %v3187_v40, %v5907_v8  ;;  %v3173_v17 = vsel %vm2250_vm2, %v3159_v26, %v5902_v52 }
 0x3d5   : > { %v3218_v21 = vsel %vm2300_vm5, %v3202_v47, %v5911_v2  ;;  %v3219_v5 = vsel %vm2300_vm5, %v3203_v18, %v5912_v37  ;;  %v5915_v46 = vpop.permute.xlu0 %5914 }
 0x3d6   : > { %v5917_v16 = vunpack.i.h.bf16 %v5915_v46  ;;  %v5916_v23 = vunpack.i.l.bf16 %v5915_v46  ;;  %v5920_v54 = vpop.permute.xlu1 %5919 }
 0x3d7   : > { %v5922_v24 = vunpack.i.h.bf16 %v5920_v54  ;;  %v5921_v29 = vunpack.i.l.bf16 %v5920_v54 }
 0x3d8   : > { %v3235_v42 = vsel %vm2317_vm6, %v3219_v5, %v5917_v16  ;;  %v3234_v11 = vsel %vm2317_vm6, %v3218_v21, %v5916_v23 }
 0x3d9   : > { %v5925_v44 = vpop.permute.xlu0 %5924  ;;  %v3250_v3 = vsel %vm2334_vm7, %v3234_v11, %v5921_v29  ;;  %v3251_v4 = vsel %vm2334_vm7, %v3235_v42, %v5922_v24  ;;  %v3271_v11 = vpack.c.bf16 %v7452_v58, %v8072_v0 }
 0x3da   : > { %v5935_v22 = vpop.permute.xlu1 %5934  ;;  %v3266_v36 = vpack.c.bf16 %v3251_v4, %v3250_v3  ;;  %v5926_v38 = vunpack.i.l.bf16 %v5925_v44  ;;  %v5927_v41 = vunpack.i.h.bf16 %v5925_v44 }
 0x3db   : > { %v5936_v43 = vunpack.i.l.bf16 %v5935_v22 }
 0x3dc   : > { %3417 = vmatmul.mubr.bf16.gmra.mxu1 %v3266_v36  ;;  %v3188_v45 = vsel %vm2266_vm3, %v3173_v17, %v5926_v38  ;;  %v5937_v38 = vunpack.i.h.bf16 %v5935_v22 }
 0x3dd   : > { %v5930_v15 = vpop.permute.xlu0 %5929  ;;  %5095 = vmatprep.mubr.msk.bf16.mxu1 %vm2234_vm1, %v3269_v55 }
 0x3de   : > { %v5931_v7 = vunpack.i.l.bf16 %v5930_v15  ;;  %v5940_v12 = vpop.permute.xlu1 %5939  ;;  %v5932_v44 = vunpack.i.h.bf16 %v5930_v15 }
 0x3df   : > { %v5942_v59 = vunpack.i.h.bf16 %v5940_v12  ;;  %v5941_v8 = vunpack.i.l.bf16 %v5940_v12 }
 0x3e0   : > { %v3160_v13 = vsel %vm2234_vm1, %v8008_v62, %v5931_v7  ;;  %v3161_v36 = vsel %vm2234_vm1, %v8019_v35, %v5932_v44 }
 0x3e1   : > { %v3174_v1 = vsel %vm2250_vm2, %v3160_v13, %v5936_v43  ;;  %v3204_v33 = vsel %vm2283_vm4, %v3188_v45, %v5941_v8  ;;  %v5945_v9 = vpop.permute.xlu0 %5944  ;;  %v3175_v12 = vsel %vm2250_vm2, %v3161_v36, %v5937_v38 }
 0x3e2   : > { %v3189_v25 = vsel %vm2266_vm3, %v3174_v1, %v5927_v41  ;;  %v5947_v55 = vunpack.i.h.bf16 %v5945_v9  ;;  %v5946_v40 = vunpack.i.l.bf16 %v5945_v9  ;;  %v5950_v37 = vpop.permute.xlu1 %5949 }
 0x3e3   : > { %v3205_v2 = vsel %vm2283_vm4, %v3189_v25, %v5942_v59  ;;  %v5952_v47 = vunpack.i.h.bf16 %v5950_v37  ;;  %v5951_v18 = vunpack.i.l.bf16 %v5950_v37 }
 0x3e4   : > { %v3220_v21 = vsel %vm2300_vm5, %v3204_v33, %v5946_v40  ;;  %v3221_v5 = vsel %vm2300_vm5, %v3205_v2, %v5947_v55 }
 0x3e5   : > { %v3237_v62 = vsel %vm2317_vm6, %v3221_v5, %v5952_v47  ;;  %v3236_v46 = vsel %vm2317_vm6, %v3220_v21, %v5951_v18  ;;  %v5955_v16 = vpop.permute.xlu0 %5954 }
 0x3e6   : > { %v5957_v23 = vunpack.i.h.bf16 %v5955_v16  ;;  %v5956_v54 = vunpack.i.l.bf16 %v5955_v16  ;;  %v5960_v24 = vpop.permute.xlu1 %5959 }
 0x3e7   : > { %v5961_v26 = vunpack.i.l.bf16 %v5960_v24  ;;  %v5962_v15 = vunpack.i.h.bf16 %v5960_v24 }
 0x3e8   : > { %v3252_v29 = vsel %vm2334_vm7, %v3236_v46, %v5956_v54  ;;  %v3253_v34 = vsel %vm2334_vm7, %v3237_v62, %v5957_v23 }
 0x3e9   : > { %v3268_v42 = vpack.c.bf16 %v3253_v34, %v3252_v29  ;;  %v5965_v3 = vpop.permute.xlu0 %5964  ;;  %v3190_v0 = vsel %vm2266_vm3, %v3175_v12, %v5961_v26 }
 0x3ea   : > { %v5970_v4 = vpop.permute.xlu1 %5969  ;;  %v5966_v17 = vunpack.i.l.bf16 %v5965_v3  ;;  %v5967_v45 = vunpack.i.h.bf16 %v5965_v3 }
 0x3eb   : > { %3425 = vmatmul.mubr.bf16.gmra.mxu1 %v3268_v42  ;;  %v5971_v8 = vunpack.i.l.bf16 %v5970_v4  ;;  %v5972_v33 = vunpack.i.h.bf16 %v5970_v4 }
 0x3ec   : > { %5096 = vmatprep.mubr.msk.bf16.mxu1 %vm2234_vm1, %v3271_v11  ;;  %v3206_v22 = vsel %vm2283_vm4, %v3190_v0, %v5966_v17 }
 0x3ed   : > { %v3222_v55 = vsel %vm2300_vm5, %v3206_v22, %v5971_v8 }
 0x3f2   : > { %v5980_v52 = vpop.permute.xlu0 %5979  ;;  %v5975_v7 = vpop.permute.xlu1 %5974 }
 0x3f3   : > { %v5981_v43 = vunpack.i.l.bf16 %v5980_v52  ;;  %v5976_v59 = vunpack.i.l.bf16 %v5975_v7  ;;  %v5977_v62 = vunpack.i.h.bf16 %v5975_v7  ;;  %v5982_v54 = vunpack.i.h.bf16 %v5980_v52 }
 0x3f5   : > { %v3162_v41 = vsel %vm2234_vm1, %v8047_v28, %v5976_v59  ;;  %v3163_v34 = vsel %vm2234_vm1, %v8081_v61, %v5977_v62 }
 0x3f6   : > { %v3176_v13 = vsel %vm2250_vm2, %v3162_v41, %v5981_v43  ;;  %v5985_v35 = vpop.permute.xlu0 %5984  ;;  %v5995_v1 = vpop.permute.xlu1 %5994  ;;  %v3177_v4 = vsel %vm2250_vm2, %v3163_v34, %v5982_v54 }
 0x3f7   : > { %v3191_v9 = vsel %vm2266_vm3, %v3176_v13, %v5962_v15  ;;  %v5986_v25 = vunpack.i.l.bf16 %v5985_v35  ;;  %v5996_v40 = vunpack.i.l.bf16 %v5995_v1  ;;  %v5987_v12 = vunpack.i.h.bf16 %v5985_v35 }
 0x3f8   : > { %v3207_v37 = vsel %vm2283_vm4, %v3191_v9, %v5967_v45 }
 0x3f9   : > { %v3238_v2 = vsel %vm2317_vm6, %v3222_v55, %v5986_v25  ;;  %v3223_v28 = vsel %vm2300_vm5, %v3207_v37, %v5972_v33 }
 0x3fa   : > { %v5990_v47 = vpop.permute.xlu0 %5989  ;;  %v6000_v18 = vpop.permute.xlu1 %5999  ;;  %v3239_v21 = vsel %vm2317_vm6, %v3223_v28, %v7815_v27  ;;  %v3254_v5 = vsel %vm2334_vm7, %v3238_v2, %v5996_v40 }
 0x3fb   : > { %v5991_v46 = vunpack.i.l.bf16 %v5990_v47  ;;  %v3255_v16 = vsel %vm2334_vm7, %v3239_v21, %v7813_v31  ;;  %v6001_v24 = vunpack.i.l.bf16 %v6000_v18  ;;  %v5992_v42 = vunpack.i.h.bf16 %v5990_v47 }
 0x3fc   : > { %v3270_v23 = vpack.c.bf16 %v3255_v16, %v3254_v5  ;;  %v6002_v36 = vunpack.i.h.bf16 %v6000_v18 }
 0x3fd   : > { %v3192_v11 = vsel %vm2266_vm3, %v7746_v48, %v5991_v46  ;;  %v3193_v61 = vsel %vm2266_vm3, %v3177_v4, %v5992_v42 }
 0x3fe   : > { %v6005_v29 = vpop.permute.xlu0 %6004  ;;  %3433 = vmatmul.mubr.bf16.gmra.mxu1 %v3270_v23  ;;  %v3208_v26 = vsel %vm2283_vm4, %v3192_v11, %v6001_v24  ;;  %v3209_v59 = vsel %vm2283_vm4, %v3193_v61, %v6002_v36 }
 0x3ff   : > { %v6006_v44 = vunpack.i.l.bf16 %v6005_v29  ;;  %5097 = vmatprep.mubr.msk.bf16.mxu1 %vm2234_vm1, %v3273_v6  ;;  %v6010_v3 = vpop.permute.xlu1 %6009  ;;  %v6007_v52 = vunpack.i.h.bf16 %v6005_v29  ;;  %v5997_v6 = vunpack.i.h.bf16 %v5995_v1 }
 0x400   : > { %v6011_v8 = vunpack.i.l.bf16 %v6010_v3  ;;  %v6012_v9 = vunpack.i.h.bf16 %v6010_v3 }
 0x401   : > { %v3224_v7 = vsel %vm2300_vm5, %v3208_v26, %v6006_v44  ;;  %v3225_v0 = vsel %vm2300_vm5, %v3209_v59, %v6007_v52 }
 0x402   : > { %v6015_v38 = vpop.permute.xlu0 %6014  ;;  %v3240_v32 = vsel %vm2317_vm6, %v3224_v7, %v5987_v12  ;;  %v3164_v40 = vsel %vm2234_vm1, %v8089_v14, %v6011_v8  ;;  %v3165_v62 = vsel %vm2234_vm1, %v8111_v30, %v6012_v9 }
 0x403   : > { %v6020_v17 = vpop.permute.xlu1 %6019  ;;  %v6016_v41 = vunpack.i.l.bf16 %v6015_v38  ;;  %v3256_v33 = vsel %vm2334_vm7, %v3240_v32, %v5997_v6  ;;  %v6017_v1 = vunpack.i.h.bf16 %v6015_v38 }
 0x404   : > { %v6021_v43 = vunpack.i.l.bf16 %v6020_v17  ;;  %v6022_v19 = vunpack.i.h.bf16 %v6020_v17 }
 0x405   : > { %v3178_v2 = vsel %vm2250_vm2, %v3164_v40, %v6016_v41  ;;  %v3179_v16 = vsel %vm2250_vm2, %v3165_v62, %v6017_v1 }
 0x406   : > { %v6030_v49 = vpop.permute.xlu0 %6029  ;;  %v3241_v45 = vsel %vm2317_vm6, %v3225_v0, %v6021_v43 }
 0x407   : > { %v6031_v15 = vunpack.i.l.bf16 %v6030_v49  ;;  %v6025_v13 = vpop.permute.xlu1 %6024  ;;  %v6032_v11 = vunpack.i.h.bf16 %v6030_v49 }
 0x408   : > { %v6026_v22 = vunpack.i.l.bf16 %v6025_v13  ;;  %v6027_v28 = vunpack.i.h.bf16 %v6025_v13 }
 0x409   : > { %v3257_v35 = vsel %vm2334_vm7, %v3241_v45, %v6031_v15 }
 0x40a   : > { %v6035_v25 = vpop.permute.xlu0 %6034  ;;  %v3272_v55 = vpack.c.bf16 %v3257_v35, %v3256_v33  ;;  %v3194_v18 = vsel %vm2266_vm3, %v3178_v2, %v6026_v22  ;;  %v3195_v23 = vsel %vm2266_vm3, %v3179_v16, %v6027_v28 }
 0x40b   : > { %v6036_v37 = vunpack.i.l.bf16 %v6035_v25  ;;  %v6040_v47 = vpop.permute.xlu1 %6039  ;;  %v6037_v21 = vunpack.i.h.bf16 %v6035_v25 }
 0x40c   : > { %3441 = vmatmul.mubr.bf16.gmra.mxu1 %v3272_v55  ;;  %v6041_v5 = vunpack.i.l.bf16 %v6040_v47  ;;  %v6042_v54 = vunpack.i.h.bf16 %v6040_v47 }
 0x40d   : > { %5098 = vmatprep.mubr.msk.bf16.mxu1 %vm2234_vm1, %v3275_v50  ;;  %v3210_v14 = vsel %vm2283_vm4, %v3194_v18, %v6036_v37  ;;  %v3211_v29 = vsel %vm2283_vm4, %v3195_v23, %v6037_v21 }
 0x40e   : > { %v6045_v46 = vpop.permute.xlu0 %6044  ;;  %v3226_v34 = vsel %vm2300_vm5, %v3210_v14, %v6041_v5  ;;  %v3227_v30 = vsel %vm2300_vm5, %v3211_v29, %v6042_v54  ;;  %v3279_v5 = vpack.c.bf16 %v7452_v58, %v8216_v10 }
 0x40f   : > { %v6050_v24 = vpop.permute.xlu1 %6049  ;;  %v6047_v42 = vunpack.i.h.bf16 %v6045_v46  ;;  %v6046_v57 = vunpack.i.l.bf16 %v6045_v46  ;;  %v3242_v26 = vsel %vm2317_vm6, %v3226_v34, %v6022_v19 }
 0x410   : > { %v6052_v3 = vunpack.i.h.bf16 %v6050_v24  ;;  %v6051_v4 = vunpack.i.l.bf16 %v6050_v24  ;;  %v3258_v59 = vsel %vm2334_vm7, %v3242_v26, %v6032_v11 }
 0x411   : > { %v3167_v38 = vsel %vm2234_vm1, %v8149_v53, %v6047_v42  ;;  %v3166_v61 = vsel %vm2234_vm1, %v8124_v51, %v6046_v57 }
 0x412   : > { %v6055_v50 = vpop.permute.xlu0 %6054  ;;  %v3180_v32 = vsel %vm2250_vm2, %v3166_v61, %v6051_v4  ;;  %v3181_v6 = vsel %vm2250_vm2, %v3167_v38, %v6052_v3 }
 0x413   : > { %v6056_v44 = vunpack.i.l.bf16 %v6055_v50  ;;  %v6065_v36 = vpop.permute.xlu1 %6064  ;;  %v6057_v33 = vunpack.i.h.bf16 %v6055_v50 }
 0x414   : > { %v6066_v7 = vunpack.i.l.bf16 %v6065_v36  ;;  %v6067_v55 = vunpack.i.h.bf16 %v6065_v36 }
 0x415   : > { %v3243_v52 = vsel %vm2317_vm6, %v3227_v30, %v6056_v44 }
 0x416   : > { %v6060_v12 = vpop.permute.xlu0 %6059  ;;  %v3259_v49 = vsel %vm2334_vm7, %v3243_v52, %v6066_v7 }
 0x417   : > { %v6062_v17 = vunpack.i.h.bf16 %v6060_v12  ;;  %v6061_v43 = vunpack.i.l.bf16 %v6060_v12  ;;  %v6070_v0 = vpop.permute.xlu1 %6069  ;;  %v3274_v8 = vpack.c.bf16 %v3259_v49, %v3258_v59  ;;  %v8391_v59 = vld [vmem:[%s9204_s16] ss:$0 sm:$0xff]  ;;  %s6455_s16 = smov (!%p5103_p6), 112  }
 0x418   : > { %v6072_v15 = vunpack.i.h.bf16 %v6070_v0  ;;  %v6071_v41 = vunpack.i.l.bf16 %v6070_v0 }
 0x419   : > { %v3197_v53 = vsel %vm2266_vm3, %v3181_v6, %v6062_v17  ;;  %v3196_v51 = vsel %vm2266_vm3, %v3180_v32, %v6061_v43  ;;  %3449 = vmatmul.mubr.bf16.gmra.mxu1 %v3274_v8  ;;  %v8384_v43 = vld [vmem:[%s9203_s20] ss:$0 sm:$0xff]  ;;  %s9205_s20 = sld [smem:[#allocation8_spill]] (!%p5103_p6) }
 0x41a   : > { %v6075_v45 = vpop.permute.xlu0 %6074  ;;  %5099 = vmatprep.mubr.msk.bf16.mxu1 %vm2234_vm1, %v3277_v39  ;;  %v3212_v35 = vsel %vm2283_vm4, %v3196_v51, %v6071_v41  ;;  %v3213_v9 = vsel %vm2283_vm4, %v3197_v53, %v6072_v15  ;;  %v6121_v53 = vld [vmem:[#allocation2] sm:$0xff] }
 0x41b   : > { %v6077_v13 = vunpack.i.h.bf16 %v6075_v45  ;;  %v6076_v22 = vunpack.i.l.bf16 %v6075_v45  ;;  %v3083_v25 = vpop.permute.xlu1 %3082 }
 0x41d   : > { %v3228_v40 = vsel %vm2300_vm5, %v3212_v35, %v6076_v22  ;;  %v3229_v1 = vsel %vm2300_vm5, %v3213_v9, %v6077_v13  ;;  %v6122_v22 = vld [vmem:[#allocation2 + $0x8] sm:$0xff] }
 0x41e   : > { %v3245_v37 = vsel %vm2317_vm6, %v3229_v1, %v3083_v25  ;;  %v3244_v2 = vsel %vm2317_vm6, %v3228_v40, %v6057_v33  ;;  %v3125_v28 = vpop.permute.xlu0 %3124 }
 0x41f   : > { %v3260_v20 = vsel %vm2334_vm7, %v3244_v2, %v6067_v55  ;;  %v3261_v60 = vsel %vm2334_vm7, %v3245_v37, %v3125_v28  ;;  %v6080_v47 = vpop.permute.xlu1 %6079  ;;  %v6123_v37 = vld [vmem:[#allocation2 + $0x10] sm:$0xff] }
 0x420   : > { %v3276_v39 = vpack.c.bf16 %v3261_v60, %v3260_v20  ;;  %v6082_v18 = vunpack.i.h.bf16 %v6080_v47  ;;  %v6081_v21 = vunpack.i.l.bf16 %v6080_v47  ;;  %v6124_v47 = vld [vmem:[#allocation2 + $0x18] sm:$0xff] }
 0x422   : > { %3457 = vmatmul.mubr.bf16.gmra.mxu1 %v3276_v39  ;;  %v6085_v62 = vpop.permute.xlu0 %6084  ;;  %v3169_v16 = vsel %vm2234_vm1, %v8184_v56, %v6082_v18  ;;  %v3168_v23 = vsel %vm2234_vm1, %v8164_v63, %v6081_v21 }
 0x423   : > { %v6087_v14 = vunpack.i.h.bf16 %v6085_v62  ;;  %v6086_v46 = vunpack.i.l.bf16 %v6085_v62  ;;  %5100 = vmatprep.mubr.msk.bf16.mxu1 %vm2234_vm1, %v3279_v5  ;;  %v6090_v54 = vpop.permute.xlu1 %6089 }
 0x424   : > { %v6092_v34 = vunpack.i.h.bf16 %v6090_v54  ;;  %v6091_v42 = vunpack.i.l.bf16 %v6090_v54 }
 0x425   : > { %v3183_v24 = vsel %vm2250_vm2, %v3169_v16, %v6087_v14  ;;  %v3182_v29 = vsel %vm2250_vm2, %v3168_v23, %v6086_v46  ;;  %v6125_v23 = vld [vmem:[#allocation2 + $0x20] sm:$0xff] }
 0x426   : > { %v6095_v10 = vpop.permute.xlu0 %6094  ;;  %v3199_v50 = vsel %vm2266_vm3, %v3183_v24, %v6092_v34  ;;  %v3198_v11 = vsel %vm2266_vm3, %v3182_v29, %v6091_v42 }
 0x427   : > { %v6097_v57 = vunpack.i.h.bf16 %v6095_v10  ;;  %v6096_v19 = vunpack.i.l.bf16 %v6095_v10  ;;  %v6100_v44 = vpop.permute.xlu1 %6099  ;;  %v6126_v10 = vld [vmem:[#allocation2 + $0x28] sm:$0xff] }
 0x428   : > { %v6102_v63 = vunpack.i.h.bf16 %v6100_v44  ;;  %v6101_v30 = vunpack.i.l.bf16 %v6100_v44 }
 0x429   : > { %v3215_v56 = vsel %vm2283_vm4, %v3199_v50, %v6097_v57  ;;  %v3214_v3 = vsel %vm2283_vm4, %v3198_v11, %v6096_v19 }
 0x42a   : > { %v3085_v4 = vpop.permute.xlu0 %3084  ;;  %v3231_v36 = vsel %vm2300_vm5, %v3215_v56, %v6102_v63  ;;  %v3230_v26 = vsel %vm2300_vm5, %v3214_v3, %v6101_v30  ;;  %v6127_v30 = vld [vmem:[#allocation2 + $0x30] sm:$0xff] }
 0x42b   : > { %v3246_v38 = vsel %vm2317_vm6, %v3230_v26, %v3085_v4  ;;  %v3127_v61 = vpop.permute.xlu1 %3126  ;;  %v3247_v52 = vsel %vm2317_vm6, %v3231_v36, %v7815_v27 }
 0x42c   : > { %v3262_v7 = vsel %vm2334_vm7, %v3246_v38, %v3127_v61  ;;  %v3263_v12 = vsel %vm2334_vm7, %v3247_v52, %v7813_v31  ;;  %v6128_v61 = vld [vmem:[#allocation2 + $0x38] sm:$0xff] }
 0x42d   : > { %v3278_v17 = vpack.c.bf16 %v3263_v12, %v3262_v7 }
 0x42f   : > { %3465 = vmatmul.mubr.bf16.gmra.mxu1 %v3278_v17 }
 0x48f   : > { %v3410_v49 = vpop.f32.mrf.mxu1 }
 0x490   : > { %v3479_v32 = vmul.f32 %v8384_v43, %v3410_v49 }
 0x491   : > { %v3412_v6 = vpop.f32.mrf.mxu1 }
 0x492   : > { %v3501_v0 = vadd.f32 %v8391_v59, %v3479_v32 }
 0x493   : > { %v3413_v8 = vpop.f32.mrf.mxu1 }
 0x494   : > { %v3517_v51 = vadd.f32 %v6121_v53, %v3501_v0  ;;  %v3480_v15 = vmul.f32 %v8384_v43, %v3413_v8  ;;  %v6129_v0 = vld [vmem:[#allocation2 + $0x40] sm:$0xff] }
 0x495   : > { %v3415_v41 = vpop.f32.mrf.mxu1 }
 0x496   : > { %v3533_v45 = vmax.f32 %v3517_v51, 0.0  ;;  %v3502_v13 = vadd.f32 %v8391_v59, %v3480_v15 }
 0x498   : > { %3549 = vst.msk [vmem:[#allocation2] sm:$0xff] %vm2234_vm1, %v3533_v45  ;;  %v3518_v33 = vadd.f32 %v6122_v22, %v3502_v13  ;;  %v6130_v45 = vld [vmem:[#allocation2 + $0x48] sm:$0xff] }
 0x49a   : > { %v3534_v35 = vmax.f32 %v3518_v33, 0.0 }
 0x49c   : > { %3550 = vst.msk [vmem:[#allocation2 + $0x8] sm:$0xff] %vm2234_vm1, %v3534_v35  ;;  %v3418_v9 = vpop.f32.mrf.mxu1 }
 0x49d   : > { %v3481_v25 = vmul.f32 %v8384_v43, %v3418_v9 }
 0x49e   : > { %v3420_v55 = vpop.f32.mrf.mxu1 }
 0x49f   : > { %v3503_v40 = vadd.f32 %v8391_v59, %v3481_v25 }
 0x4a0   : > { %v3421_v1 = vpop.f32.mrf.mxu1 }
 0x4a1   : > { %v3519_v2 = vadd.f32 %v6123_v37, %v3503_v40  ;;  %v3482_v28 = vmul.f32 %v8384_v43, %v3421_v1  ;;  %v6131_v40 = vld [vmem:[#allocation2 + $0x50] sm:$0xff] }
 0x4a2   : > { %v3423_v20 = vpop.f32.mrf.mxu1 }
 0x4a3   : > { %v3535_v60 = vmax.f32 %v3519_v2, 0.0  ;;  %v3504_v39 = vadd.f32 %v8391_v59, %v3482_v28 }
 0x4a5   : > { %3551 = vst.msk [vmem:[#allocation2 + $0x10] sm:$0xff] %vm2234_vm1, %v3535_v60  ;;  %v3520_v18 = vadd.f32 %v6124_v47, %v3504_v39  ;;  %v6132_v39 = vld [vmem:[#allocation2 + $0x58] sm:$0xff] }
 0x4a7   : > { %v3536_v21 = vmax.f32 %v3520_v18, 0.0 }
 0x4a9   : > { %3552 = vst.msk [vmem:[#allocation2 + $0x18] sm:$0xff] %vm2234_vm1, %v3536_v21 }
 0x4ab   : > { %v3426_v5 = vpop.f32.mrf.mxu1 }
 0x4ac   : > { %v3483_v62 = vmul.f32 %v8384_v43, %v3426_v5 }
 0x4ad   : > { %v3428_v14 = vpop.f32.mrf.mxu1 }
 0x4ae   : > { %v3505_v46 = vadd.f32 %v8391_v59, %v3483_v62 }
 0x4af   : > { %v3429_v16 = vpop.f32.mrf.mxu1 }
 0x4b0   : > { %v3521_v54 = vadd.f32 %v6125_v23, %v3505_v46  ;;  %v3484_v24 = vmul.f32 %v8384_v43, %v3429_v16  ;;  %v6133_v46 = vld [vmem:[#allocation2 + $0x60] sm:$0xff] }
 0x4b1   : > { %v3431_v29 = vpop.f32.mrf.mxu1 }
 0x4b2   : > { %v3537_v34 = vmax.f32 %v3521_v54, 0.0  ;;  %v3506_v42 = vadd.f32 %v8391_v59, %v3484_v24 }
 0x4b4   : > { %3553 = vst.msk [vmem:[#allocation2 + $0x20] sm:$0xff] %vm2234_vm1, %v3537_v34  ;;  %v3522_v57 = vadd.f32 %v6126_v10, %v3506_v42  ;;  %v6134_v34 = vld [vmem:[#allocation2 + $0x68] sm:$0xff] }
 0x4b6   : > { %v3538_v19 = vmax.f32 %v3522_v57, 0.0 }
 0x4b8   : > { %3554 = vst.msk [vmem:[#allocation2 + $0x28] sm:$0xff] %vm2234_vm1, %v3538_v19 }
 0x4be   : > { %v3434_v50 = vpop.f32.mrf.mxu1 }
 0x4bf   : > { %v3485_v11 = vmul.f32 %v8384_v43, %v3434_v50 }
 0x4c0   : > { %v3436_v44 = vpop.f32.mrf.mxu1 }
 0x4c1   : > { %v3507_v56 = vadd.f32 %v8391_v59, %v3485_v11 }
 0x4c2   : > { %v3437_v63 = vpop.f32.mrf.mxu1 }
 0x4c3   : > { %v3523_v3 = vadd.f32 %v6127_v30, %v3507_v56  ;;  %v3486_v4 = vmul.f32 %v8384_v43, %v3437_v63  ;;  %v6135_v56 = vld [vmem:[#allocation2 + $0x70] sm:$0xff] }
 0x4c4   : > { %v3439_v36 = vpop.f32.mrf.mxu1 }
 0x4c5   : > { %v3539_v26 = vmax.f32 %v3523_v3, 0.0  ;;  %v3508_v38 = vadd.f32 %v8391_v59, %v3486_v4 }
 0x4c7   : > { %3555 = vst.msk [vmem:[#allocation2 + $0x30] sm:$0xff] %vm2234_vm1, %v3539_v26  ;;  %v3524_v52 = vadd.f32 %v6128_v61, %v3508_v38  ;;  %v6136_v26 = vld [vmem:[#allocation2 + $0x78] sm:$0xff] }
 0x4c9   : > { %v3540_v7 = vmax.f32 %v3524_v52, 0.0 }
 0x4cb   : > { %3556 = vst.msk [vmem:[#allocation2 + $0x38] sm:$0xff] %vm2234_vm1, %v3540_v7 }
 0x4cc   : > { %v3442_v12 = vpop.f32.mrf.mxu1 }
 0x4cd   : > { %v3487_v17 = vmul.f32 %v8384_v43, %v3442_v12 }
 0x4ce   : > { %v3444_v49 = vpop.f32.mrf.mxu1 }
 0x4cf   : > { %v3509_v32 = vadd.f32 %v8391_v59, %v3487_v17 }
 0x4d0   : > { %v3445_v6 = vpop.f32.mrf.mxu1 }
 0x4d1   : > { %v3525_v8 = vadd.f32 %v6129_v0, %v3509_v32  ;;  %v3488_v53 = vmul.f32 %v8384_v43, %v3445_v6 }
 0x4d2   : > { %v3447_v51 = vpop.f32.mrf.mxu1 }
 0x4d3   : > { %v3541_v15 = vmax.f32 %v3525_v8, 0.0  ;;  %v3510_v41 = vadd.f32 %v8391_v59, %v3488_v53 }
 0x4d5   : > { %3557 = vst.msk [vmem:[#allocation2 + $0x40] sm:$0xff] %vm2234_vm1, %v3541_v15  ;;  %v3526_v13 = vadd.f32 %v6130_v45, %v3510_v41 }
 0x4d7   : > { %v3542_v22 = vmax.f32 %v3526_v13, 0.0 }
 0x4d9   : > { %3558 = vst.msk [vmem:[#allocation2 + $0x48] sm:$0xff] %vm2234_vm1, %v3542_v22  ;;  %v3450_v33 = vpop.f32.mrf.mxu1 }
 0x4da   : > { %v3489_v35 = vmul.f32 %v8384_v43, %v3450_v33 }
 0x4db   : > { %v3452_v9 = vpop.f32.mrf.mxu1 }
 0x4dc   : > { %v3511_v25 = vadd.f32 %v8391_v59, %v3489_v35 }
 0x4dd   : > { %v3453_v55 = vpop.f32.mrf.mxu1 }
 0x4de   : > { %v3527_v1 = vadd.f32 %v6131_v40, %v3511_v25  ;;  %v3490_v37 = vmul.f32 %v8384_v43, %v3453_v55 }
 0x4df   : > { %v3455_v2 = vpop.f32.mrf.mxu1 }
 0x4e0   : > { %v3543_v28 = vmax.f32 %v3527_v1, 0.0  ;;  %v3512_v20 = vadd.f32 %v8391_v59, %v3490_v37 }
 0x4e2   : > { %v3458_v60 = vpop.f32.mrf.mxu1  ;;  %3559 = vst.msk [vmem:[#allocation2 + $0x50] sm:$0xff] %vm2234_vm1, %v3543_v28  ;;  %v3528_v47 = vadd.f32 %v6132_v39, %v3512_v20 }
 0x4e3   : > { %v3491_v18 = vmul.f32 %v8384_v43, %v3458_v60 }
 0x4e4   : > { %v3460_v21 = vpop.f32.mrf.mxu1  ;;  %v3544_v5 = vmax.f32 %v3528_v47, 0.0 }
 0x4e5   : > { %v3513_v62 = vadd.f32 %v8391_v59, %v3491_v18 }
 0x4e6   : > { %v3461_v14 = vpop.f32.mrf.mxu1  ;;  %3560 = vst.msk [vmem:[#allocation2 + $0x58] sm:$0xff] %vm2234_vm1, %v3544_v5 }
 0x4e7   : > { %v3529_v16 = vadd.f32 %v6133_v46, %v3513_v62  ;;  %v3492_v23 = vmul.f32 %v8384_v43, %v3461_v14 }
 0x4e8   : > { %v3463_v54 = vpop.f32.mrf.mxu1 }
 0x4e9   : > { %v3545_v24 = vmax.f32 %v3529_v16, 0.0  ;;  %v3514_v29 = vadd.f32 %v8391_v59, %v3492_v23 }
 0x4eb   : > { %3561 = vst.msk [vmem:[#allocation2 + $0x60] sm:$0xff] %vm2234_vm1, %v3545_v24  ;;  %v3530_v42 = vadd.f32 %v6134_v34, %v3514_v29 }
 0x4ed   : > { %v3546_v10 = vmax.f32 %v3530_v42, 0.0 }
 0x4ef   : > { %3562 = vst.msk [vmem:[#allocation2 + $0x68] sm:$0xff] %vm2234_vm1, %v3546_v10  ;;  %v3466_v57 = vpop.f32.mrf.mxu1 }
 0x4f0   : > { %v3493_v19 = vmul.f32 %v8384_v43, %v3466_v57 }
 0x4f1   : > { %v3468_v50 = vpop.f32.mrf.mxu1 }
 0x4f2   : > { %v3515_v11 = vadd.f32 %v8391_v59, %v3493_v19 }
 0x4f3   : > { %v3469_v44 = vpop.f32.mrf.mxu1 }
 0x4f4   : > { %v3531_v63 = vadd.f32 %v6135_v56, %v3515_v11  ;;  %v3494_v30 = vmul.f32 %v8384_v43, %v3469_v44 }
 0x4f5   : > { %v3471_v3 = vpop.f32.mrf.mxu1 }
 0x4f6   : > { %v3547_v4 = vmax.f32 %v3531_v63, 0.0  ;;  %v3516_v36 = vadd.f32 %v8391_v59, %v3494_v30 }
 0x4f8   : > { %3563 = vst.msk [vmem:[#allocation2 + $0x70] sm:$0xff] %vm2234_vm1, %v3547_v4  ;;  %v3532_v38 = vadd.f32 %v6136_v26, %v3516_v36  ;;  %3568 = sbr.rel (%p5103_p6) target bundleno = 1717 (0x6b5), region = 92 }
 0x4fa   : > { %v3548_v61 = vmax.f32 %v3532_v38, 0.0 }
 0x4fc   : > { %3564 = vst.msk [vmem:[#allocation2 + $0x78] sm:$0xff] %vm2234_vm1, %v3548_v61 }
 0x4fd   : > { %v3569_v52 = vld [vmem:[#allocation2] sm:$0xff]  ;;  %v3570_v7 = vld [vmem:[#allocation2 + $0x8] sm:$0xff]  ;;  %v3571_v12 = vld [vmem:[#allocation2 + $0x10] sm:$0xff]  ;;  %v6448_v32 = vmov 0   ;;  %vm4562_vm8 = vcmask 257024   ;;  %vm4874_vm9 = vcmask 19456  }
 0x4fe   : > { %v3601_v17 = vrot.slane %v3569_v52, 7  ;;  %v3602_v49 = vrot.slane %v3570_v7, 7  ;;  %v3572_v43 = vld [vmem:[#allocation2 + $0x18] sm:$0xff]  ;;  %4339 = vmatprep.subr.bf16.mxu0 %v6448_v32  ;;  %4651 = vmatprep.subr.bf16.mxu1 %v6448_v32  ;;  %v3603_v59 = vrot.slane %v3571_v12, 7  ;;  %v3573_v21 = vld [vmem:[#allocation2 + $0x20] sm:$0xff]  ;;  %v6389_v54 = vld [vmem:[%s9171_s10 + $0x30] sm:$0xff]  }
 0x4ff   : > { %v3604_v6 = vrot.slane %v3572_v43, 7  ;;  %v6387_v37 = vld [vmem:[%s9171_s10 + $0x38] sm:$0xff]   ;;  %v6390_v29 = vld [vmem:[%s9174_s13 + $0x30] sm:$0xff]   ;;  %v3605_v42 = vrot.slane %v3573_v21, 7  ;;  %v3574_v10 = vld [vmem:[#allocation2 + $0x28] sm:$0xff] }
 0x500   : > { %v8445_v0 = vsel %vm1722_vm14, 0.0, %v3601_v17  ;;  %v8448_v8 = vsel %vm1722_vm14, 0.0, %v3602_v49  ;;  %v3649_v53 = vsel %vm1722_vm14, %v3601_v17, 0.0  ;;  %v3650_v51 = vsel %vm1722_vm14, %v3602_v49, 0.0  ;;  %v6388_v60 = vld [vmem:[%s9174_s13 + $0x38] sm:$0xff]   ;;  %4340 = vmatpush1.bf16.msra.mxu0 %v6387_v37  ;;  %v6391_v57 = vld [vmem:[%s9171_s10 + $0x28] sm:$0xff]  }
 0x501   : > { %v6137_v15 = vpack.i.bf16 %v8448_v8, %v8445_v0  ;;  %v3693_v41 = vrot.slane %v8445_v0, 1  ;;  %v3694_v45 = vrot.slane %v3649_v53, 1  ;;  %v3696_v13 = vrot.slane %v8448_v8, 1  ;;  %4652 = vmatpush1.bf16.msra.mxu1 %v6388_v60  ;;  %4341 = vmatprep.subr.bf16.mxu0 %v6448_v32  ;;  %v6392_v44 = vld [vmem:[%s9174_s13 + $0x28] sm:$0xff]   ;;  %v6393_v36 = vld [vmem:[%s9171_s10 + $0x20] sm:$0xff]  }
 0x502   : > { %v3697_v22 = vrot.slane %v3650_v51, 1  ;;  %v3778_v33 = vrot.slane %v3649_v53, 2  ;;  %v3781_v35 = vrot.slane %v3650_v51, 2  ;;  %v3777_v9 = vrot.slane %v8445_v0, 2  ;;  %4653 = vmatprep.subr.bf16.mxu1 %v6448_v32  ;;  %v6394_v26 = vld [vmem:[%s9174_s13 + $0x20] sm:$0xff]  }
 0x503   : > { %6138 = vrot.lane.b32.xlu1 %v6137_v15, %s6449_s24  ;;  %v3695_v25 = vsel %vm1787_vm15, %v3693_v41, %v3694_v45  ;;  %v3780_v55 = vrot.slane %v8448_v8, 2  ;;  %v8461_v40 = vsel %vm1722_vm14, 0.0, %v3603_v59  ;;  %v8464_v1 = vsel %vm1722_vm14, 0.0, %v3604_v6 }
 0x504   : > { %v8470_v2 = vsel %vm1787_vm15, %v3696_v13, %v3697_v22  ;;  %v3779_v28 = vsel %vm1878_vm0, %v3777_v9, %v3778_v33  ;;  %v3651_v20 = vsel %vm1722_vm14, %v3603_v59, 0.0  ;;  %v3652_v18 = vsel %vm1722_vm14, %v3604_v6, 0.0  ;;  %4342 = vmatpush1.bf16.msra.mxu0 %v6389_v54  ;;  %v6395_v59 = vld [vmem:[%s9171_s10 + $0x18] sm:$0xff]   ;;  %v3575_v22 = vld [vmem:[#allocation2 + $0x30] sm:$0xff]  ;;  %v3577_v33 = vld [vmem:[#allocation2 + $0x40] sm:$0xff] }
 0x505   : > { %v6152_v39 = vpack.i.bf16 %v8470_v2, %v3695_v25  ;;  %v8479_v47 = vsel %vm1878_vm0, %v3780_v55, %v3781_v35  ;;  %v3699_v5 = vrot.slane %v8461_v40, 1  ;;  %v3700_v62 = vrot.slane %v3651_v20, 1  ;;  %4654 = vmatpush1.bf16.msra.mxu1 %v6390_v29  ;;  %4343 = vmatprep.subr.bf16.mxu0 %v6448_v32  ;;  %v6396_v6 = vld [vmem:[%s9174_s13 + $0x18] sm:$0xff]   ;;  %v6397_v35 = vld [vmem:[%s9171_s10 + $0x10] sm:$0xff]   ;;  %v6401_v54 = vld [vmem:[%s9171_s10] sm:$0xff]  }
 0x506   : > { %v6147_v14 = vpack.i.bf16 %v8479_v47, %v3779_v28  ;;  %v6162_v46 = vpack.i.bf16 %v8461_v40, %v8448_v8  ;;  %v3702_v16 = vrot.slane %v8464_v1, 1  ;;  %v3703_v23 = vrot.slane %v3652_v18, 1  ;;  %4655 = vmatprep.subr.bf16.mxu1 %v6448_v32  ;;  %v6398_v9 = vld [vmem:[%s9174_s13 + $0x10] sm:$0xff]  }
 0x507   : > { %6143 = vrot.lane.b32.xlu0 %v6152_v39, %s6450_s27  ;;  %6153 = vrot.lane.b32.xlu1 %v6152_v39, %s6451_s30  ;;  %v3701_v24 = vsel %vm1787_vm15, %v3699_v5, %v3700_v62  ;;  %v3783_v50 = vrot.slane %v8461_v40, 2  ;;  %v3784_v11 = vrot.slane %v3651_v20, 2  ;;  %v3786_v56 = vrot.slane %v8464_v1, 2  ;;  %v6399_v39 = vld [vmem:[%s9171_s10 + $0x8] sm:$0xff]  }
 0x508   : > { %v8499_v34 = vsel %vm1787_vm15, %v3702_v16, %v3703_v23  ;;  %v3787_v63 = vrot.slane %v3652_v18, 2  ;;  %v3606_v30 = vrot.slane %v3574_v10, 7  ;;  %v8517_v3 = vsel %vm1722_vm14, 0.0, %v3605_v42  ;;  %4344 = vmatpush1.bf16.msra.mxu0 %v6391_v57  ;;  %v6400_v18 = vld [vmem:[%s9174_s13 + $0x8] sm:$0xff]  }
 0x509   : > { %v8507_v19 = vpack.i.bf16 %v8499_v34, %v3701_v24  ;;  %v3653_v4 = vsel %vm1722_vm14, %v3605_v42, 0.0  ;;  %4656 = vmatpush1.bf16.msra.mxu1 %v6392_v44  ;;  %4345 = vmatprep.subr.bf16.mxu0 %v6448_v32  ;;  %v6167_v38 = vpack.i.bf16 %v3701_v24, %v8470_v2  ;;  %v6182_v61 = vpack.i.bf16 %v8464_v1, %v8461_v40  ;;  %v6402_v24 = vld [vmem:[%s9174_s13] sm:$0xff]   ;;  %v3578_v44 = vld [vmem:[#allocation2 + $0x48] sm:$0xff] }
 0x50a   : > { %v8534_v52 = vsel %vm1878_vm0, %v3783_v50, %v3784_v11  ;;  %v8537_v7 = vsel %vm1878_vm0, %v3786_v56, %v3787_v63  ;;  %v3705_v12 = vrot.slane %v8517_v3, 1  ;;  %v3706_v17 = vrot.slane %v3653_v4, 1  ;;  %4657 = vmatprep.subr.bf16.mxu1 %v6448_v32  ;;  %v6403_v50 = vld [vmem:[%s9171_s10 + $0x40] sm:$0xff]  }
 0x50b   : > { %6148 = vrot.lane.b32.xlu0 %v6147_v14, %s6452_s23  ;;  %6163 = vrot.lane.b32.xlu1 %v6162_v46, %s6453_s25  ;;  %v8541_v49 = vsel %vm1722_vm14, 0.0, %v3606_v30  ;;  %v3654_v43 = vsel %vm1722_vm14, %v3606_v30, 0.0  ;;  %v6177_v53 = vpack.i.bf16 %v8537_v7, %v8534_v52  ;;  %v3789_v51 = vrot.slane %v8517_v3, 2  ;;  %v6404_v56 = vld [vmem:[%s9174_s13 + $0x40] sm:$0xff]  }
 0x50c   : > { %4346 = vmatpush1.bf16.msra.mxu0 %v6393_v36  ;;  %v3707_v15 = vsel %vm1787_vm15, %v3705_v12, %v3706_v17  ;;  %v3790_v41 = vrot.slane %v3653_v4, 2  ;;  %v3792_v45 = vrot.slane %v8541_v49, 2  ;;  %v3793_v13 = vrot.slane %v3654_v43, 2 }
 0x50d   : > { %4658 = vmatpush1.bf16.msra.mxu1 %v6394_v26  ;;  %4347 = vmatprep.subr.bf16.mxu0 %v6448_v32  ;;  %v6202_v25 = vpack.i.bf16 %v3707_v15, %v8499_v34  ;;  %v3708_v2 = vrot.slane %v8541_v49, 1  ;;  %v3709_v28 = vrot.slane %v3654_v43, 1  ;;  %v3607_v20 = vrot.slane %v3575_v22, 7  ;;  %v3576_v34 = vld [vmem:[#allocation2 + $0x38] sm:$0xff] }
 0x50e   : > { %4659 = vmatprep.subr.bf16.mxu1 %v6448_v32  ;;  %v8571_v55 = vsel %vm1878_vm0, %v3789_v51, %v3790_v41  ;;  %v8574_v37 = vsel %vm1878_vm0, %v3792_v45, %v3793_v13  ;;  %v3609_v60 = vrot.slane %v3577_v33, 7  ;;  %v6197_v21 = vpack.i.bf16 %v8517_v3, %v8464_v1 }
 0x50f   : > { %6158 = vrot.lane.b32.xlu0 %v6147_v14, %s6454_s22  ;;  %6173 = vrot.lane.b32.xlu1 %v8507_v19, %s6450_s27  ;;  %v6212_v5 = vpack.i.bf16 %v8574_v37, %v8571_v55  ;;  %v8593_v62 = vsel %vm1787_vm15, %v3708_v2, %v3709_v28  ;;  %v8597_v14 = vsel %vm1722_vm14, 0.0, %v3607_v20  ;;  %v3655_v16 = vsel %vm1722_vm14, %v3607_v20, 0.0  ;;  %v3579_v28 = vld [vmem:[#allocation2 + $0x50] sm:$0xff] }
 0x510   : > { %4348 = vmatpush1.bf16.msra.mxu0 %v6395_v59  ;;  %v8600_v46 = vsel %vm1722_vm14, 0.0, %v3609_v60  ;;  %v3657_v23 = vsel %vm1722_vm14, %v3609_v60, 0.0  ;;  %v6207_v29 = vpack.i.bf16 %v8593_v62, %v3707_v15  ;;  %v3711_v42 = vrot.slane %v8597_v14, 1 }
 0x511   : > { %4660 = vmatpush1.bf16.msra.mxu1 %v6396_v6  ;;  %4349 = vmatprep.subr.bf16.mxu0 %v6448_v32  ;;  %v3712_v10 = vrot.slane %v3655_v16, 1  ;;  %v3714_v57 = vrot.slane %v8600_v46, 1  ;;  %v3608_v11 = vrot.slane %v3576_v34, 7  ;;  %v6217_v63 = vpack.i.bf16 %v8541_v49, %v8517_v3 }
 0x512   : > { %4661 = vmatprep.subr.bf16.mxu1 %v6448_v32  ;;  %v6232_v30 = vpack.i.bf16 %v8597_v14, %v8541_v49  ;;  %v3795_v12 = vrot.slane %v8597_v14, 2  ;;  %v3796_v43 = vrot.slane %v3655_v16, 2  ;;  %v3798_v59 = vrot.slane %v8600_v46, 2 }
 0x513   : > { %6168 = vrot.lane.b32.xlu0 %v6167_v38, %s6455_s16  ;;  %6183 = vrot.lane.b32.xlu1 %v6182_v61, %s6449_s24  ;;  %v3713_v4 = vsel %vm1787_vm15, %v3711_v42, %v3712_v10  ;;  %v3656_v26 = vsel %vm1722_vm14, %v3608_v11, 0.0  ;;  %v3610_v38 = vrot.slane %v3578_v44, 7  ;;  %v3640_v61 = vsel %vm1722_vm14, 0.0, %v3608_v11  ;;  %v3581_v44 = vld [vmem:[#allocation2 + $0x60] sm:$0xff] }
 0x514   : > { %4350 = vmatpush1.bf16.msra.mxu0 %v6397_v35  ;;  %v3799_v6 = vrot.slane %v3657_v23, 2  ;;  %v6252_v41 = vpack.i.bf16 %v3640_v61, %v8597_v14  ;;  %v6237_v45 = vpack.i.bf16 %v3713_v4, %v8593_v62  ;;  %v3797_v13 = vsel %vm1878_vm0, %v3795_v12, %v3796_v43 }
 0x515   : > { %4662 = vmatpush1.bf16.msra.mxu1 %v6398_v9  ;;  %4351 = vmatprep.subr.bf16.mxu0 %v6448_v32  ;;  %v8643_v51 = vsel %vm1722_vm14, 0.0, %v3610_v38  ;;  %v3658_v15 = vsel %vm1722_vm14, %v3610_v38, 0.0  ;;  %v3913_v33 = vrot.slane %v3640_v61, 1  ;;  %v3914_v35 = vrot.slane %v3656_v26, 1 }
 0x516   : > { %4663 = vmatprep.subr.bf16.mxu1 %v6448_v32  ;;  %v8652_v22 = vsel %vm1878_vm0, %v3798_v59, %v3799_v6  ;;  %v3718_v2 = vrot.slane %v3658_v15, 1  ;;  %v4228_v20 = vpack.c.bf16 %v8534_v52, %v8479_v47  ;;  %v8662_v60 = vpack.c.bf16 %v8571_v55, %v8537_v7  ;;  %v3580_v47 = vld [vmem:[#allocation2 + $0x58] sm:$0xff] }
 0x517   : > { %6178 = vrot.lane.b32.xlu0 %v6177_v53, %s6452_s23  ;;  %6193 = vrot.lane.b32.xlu1 %v6177_v53, %s6454_s22  ;;  %v3968_v53 = vrot.slane %v3656_v26, 2  ;;  %v3611_v52 = vrot.slane %v3579_v28, 7  ;;  %v3612_v16 = vrot.slane %v3580_v47, 7  ;;  %v3802_v34 = vrot.slane %v3658_v15, 2 }
 0x518   : > { %4352 = vmatpush1.bf16.msra.mxu0 %v6399_v39  ;;  %v6247_v39 = vpack.i.bf16 %v8652_v22, %v3797_v13  ;;  %5113 = vmatprep.mubr.msk.bf16.mxu0 %vm2234_vm1, %v4228_v20  ;;  %v3613_v12 = vrot.slane %v3581_v44, 7  ;;  %v3584_v44 = vld [vmem:[#allocation2 + $0x78] sm:$0xff] }
 0x519   : > { %4664 = vmatpush1.bf16.msra.mxu1 %v6400_v18  ;;  %4353 = vmatprep.subr.bf16.mxu0 %v6448_v32  ;;  %v8687_v42 = vsel %vm1722_vm14, 0.0, %v3612_v16  ;;  %v3660_v11 = vsel %vm1722_vm14, %v3612_v16, 0.0 }
 0x51a   : > { %4665 = vmatprep.subr.bf16.mxu1 %v6448_v32  ;;  %5148 = vmatprep.mubr.msk.bf16.mxu1 %vm2234_vm1, %v4228_v20  ;;  %v3723_v26 = vrot.slane %v8687_v42, 1  ;;  %v3724_v38 = vrot.slane %v3660_v11, 1 }
 0x51b   : > { %6188 = vrot.lane.b32.xlu0 %v8507_v19, %s6451_s30  ;;  %6203 = vrot.lane.b32.xlu1 %v6202_v25, %s6455_s16  ;;  %v3715_v19 = vrot.slane %v3657_v23, 1  ;;  %v3717_v25 = vrot.slane %v8643_v51, 1  ;;  %v3659_v23 = vsel %vm1722_vm14, %v3611_v52, 0.0 }
 0x51c   : > { %4354 = vmatpush1.bf16.msra.mxu0 %v6401_v54  ;;  %v6267_v54 = vpack.i.bf16 %v8643_v51, %v3640_v61  ;;  %v3725_v15 = vsel %vm1787_vm15, %v3723_v26, %v3724_v38 }
 0x51d   : > { %4666 = vmatpush1.bf16.msra.mxu1 %v6402_v24  ;;  %4369 = vmatprep.subr.bf16.mxu0 %v6448_v32  ;;  %v8632_v36 = vsel %vm1787_vm15, %v3714_v57, %v3715_v19  ;;  %v3719_v62 = vsel %vm1787_vm15, %v3717_v25, %v3718_v2  ;;  %v3721_v57 = vrot.slane %v3659_v23, 1 }
 0x51e   : > { %4681 = vmatprep.subr.bf16.mxu1 %v6448_v32  ;;  %v6242_v17 = vpack.i.bf16 %v8632_v36, %v3713_v4  ;;  %v3967_v32 = vrot.slane %v3640_v61, 2  ;;  %v6282_v24 = vpack.i.bf16 %v3719_v62, %v8632_v36 }
 0x51f   : > { %6198 = vrot.lane.b32.xlu0 %v6197_v21, %s6453_s25  ;;  %6213 = vrot.lane.b32.xlu1 %v6212_v5, %s6452_s23  ;;  %v8669_v21 = vpack.c.bf16 %v3797_v13, %v8574_v37  ;;  %v8678_v37 = vsel %vm1722_vm14, 0.0, %v3611_v52 }
 0x520   : > { %4370 = vmatpush2.bf16.msra.mxu0 %v6403_v50  ;;  %v8655_v9 = vsel %vm1878_vm0, %v3967_v32, %v3968_v53  ;;  %v3720_v10 = vrot.slane %v8678_v37, 1  ;;  %v3804_v19 = vrot.slane %v8678_v37, 2  ;;  %v3805_v50 = vrot.slane %v3659_v23, 2 }
 0x521   : > { %4682 = vmatpush2.bf16.msra.mxu1 %v6404_v56  ;;  %v6262_v18 = vpack.i.bf16 %v8655_v9, %v3797_v13  ;;  %v3582_v56 = vld [vmem:[#allocation2 + $0x68] sm:$0xff]  ;;  %v3807_v32 = vrot.slane %v8687_v42, 2  ;;  %v3808_v53 = vrot.slane %v3660_v11, 2  ;;  %v3661_v13 = vsel %vm1722_vm14, %v3613_v12, 0.0 }
 0x522   : > { %v3722_v36 = vsel %vm1787_vm15, %v3720_v10, %v3721_v57  ;;  %v3806_v61 = vsel %vm1878_vm0, %v3804_v19, %v3805_v50  ;;  %v3727_v2 = vrot.slane %v3661_v13, 1 }
 0x523   : > { %6208 = vrot.lane.b32.xlu0 %v6207_v29, %s6450_s27  ;;  %6223 = vrot.lane.b32.xlu1 %v6207_v29, %s6451_s30  ;;  %v3801_v29 = vrot.slane %v8643_v51, 2  ;;  %v6302_v6 = vpack.i.bf16 %v3722_v36, %v3719_v62 }
 0x527   : > { %6218 = vrot.lane.b32.xlu0 %v6217_v63, %s6449_s24  ;;  %6233 = vrot.lane.b32.xlu1 %v6232_v30, %s6453_s25  ;;  %v6277_v63 = vpack.i.bf16 %v8643_v51, %v8600_v46  ;;  %v3803_v30 = vsel %vm1878_vm0, %v3801_v29, %v3802_v34 }
 0x528   : > { %v8702_v43 = vpack.c.bf16 %v3806_v61, %v3803_v30  ;;  %v6287_v59 = vpack.i.bf16 %v3803_v30, %v8652_v22  ;;  %v6297_v22 = vpack.i.bf16 %v3725_v15, %v3722_v36 }
 0x52b   : > { %6228 = vrot.lane.b32.xlu0 %v6212_v5, %s6454_s22  ;;  %6243 = vrot.lane.b32.xlu1 %v6242_v17, %s6450_s27  ;;  %v3915_v5 = vsel %vm1787_vm15, %v3913_v33, %v3914_v35  ;;  %v3614_v17 = vrot.slane %v3582_v56, 7  ;;  %v3809_v35 = vsel %vm1878_vm0, %v3807_v32, %v3808_v53 }
 0x52c   : > { %v6257_v7 = vpack.i.bf16 %v3915_v5, %v3713_v4  ;;  %v6272_v55 = vpack.i.bf16 %v3719_v62, %v3915_v5  ;;  %v6292_v4 = vpack.i.bf16 %v8687_v42, %v8678_v37  ;;  %v6307_v5 = vpack.i.bf16 %v3806_v61, %v3803_v30 }
 0x52d   : > { %v3662_v33 = vsel %vm1722_vm14, %v3614_v17, 0.0  ;;  %v6322_v62 = vpack.i.bf16 %v3809_v35, %v3806_v61 }
 0x52e   : > { %v3730_v20 = vrot.slane %v3662_v33, 1  ;;  %v3814_v19 = vrot.slane %v3662_v33, 2 }
 0x52f   : > { %6238 = vrot.lane.b32.xlu0 %v6237_v45, %s6455_s16  ;;  %6253 = vrot.lane.b32.xlu1 %v6252_v41, %s6449_s24  ;;  %v8710_v41 = vsel %vm1722_vm14, 0.0, %v3613_v12  ;;  %v8713_v45 = vsel %vm1722_vm14, 0.0, %v3614_v17 }
 0x530   : > { %v3726_v25 = vrot.slane %v8710_v41, 1  ;;  %v3729_v28 = vrot.slane %v8713_v45, 1  ;;  %v3813_v57 = vrot.slane %v8713_v45, 2 }
 0x532   : > { %v3728_v47 = vsel %vm1787_vm15, %v3726_v25, %v3727_v2  ;;  %v3731_v52 = vsel %vm1787_vm15, %v3729_v28, %v3730_v20  ;;  %v3815_v36 = vsel %vm1878_vm0, %v3813_v57, %v3814_v19 }
 0x533   : > { %6248 = vrot.lane.b32.xlu0 %v6247_v39, %s6452_s23  ;;  %6263 = vrot.lane.b32.xlu1 %v6262_v18, %s6454_s22  ;;  %v3810_v39 = vrot.slane %v8710_v41, 2  ;;  %v3811_v18 = vrot.slane %v3661_v13, 2  ;;  %v6332_v23 = vpack.i.bf16 %v3731_v52, %v3728_v47  ;;  %v6337_v56 = vpack.i.bf16 %v3728_v47, %v3725_v15 }
 0x537   : > { %6258 = vrot.lane.b32.xlu0 %v6257_v7, %s6451_s30  ;;  %6273 = vrot.lane.b32.xlu1 %v6272_v55, %s6455_s16  ;;  %v3812_v7 = vsel %vm1878_vm0, %v3810_v39, %v3811_v18  ;;  %v3583_v55 = vld [vmem:[#allocation2 + $0x70] sm:$0xff] }
 0x538   : > { %v8728_v16 = vpack.c.bf16 %v3812_v7, %v3809_v35  ;;  %v6342_v29 = vpack.i.bf16 %v3812_v7, %v3809_v35 }
 0x53b   : > { %6268 = vrot.lane.b32.xlu0 %v6267_v54, %s6453_s25  ;;  %6283 = vrot.lane.b32.xlu1 %v6282_v24, %s6451_s30  ;;  %v3615_v54 = vrot.slane %v3583_v55, 7  ;;  %v6327_v24 = vpack.i.bf16 %v8713_v45, %v8710_v41 }
 0x53d   : > { %v8737_v34 = vsel %vm1722_vm14, 0.0, %v3615_v54  ;;  %v3663_v10 = vsel %vm1722_vm14, %v3615_v54, 0.0 }
 0x53e   : > { %v3817_v50 = vrot.slane %v3663_v10, 2  ;;  %v3816_v11 = vrot.slane %v8737_v34, 2  ;;  %v3733_v30 = vrot.slane %v3663_v10, 1 }
 0x53f   : > { %6278 = vrot.lane.b32.xlu0 %v6277_v63, %s6449_s24  ;;  %6293 = vrot.lane.b32.xlu1 %v6292_v4, %s6453_s25  ;;  %v3732_v63 = vrot.slane %v8737_v34, 1 }
 0x540   : > { %v3818_v26 = vsel %vm1878_vm0, %v3816_v11, %v3817_v50 }
 0x541   : > { %v8749_v38 = vpack.c.bf16 %v3818_v26, %v3815_v36  ;;  %v3734_v61 = vsel %vm1787_vm15, %v3732_v63, %v3733_v30  ;;  %v6367_v35 = vpack.i.bf16 %v3818_v26, %v3815_v36 }
 0x543   : > { %6288 = vrot.lane.b32.xlu0 %v6287_v59, %s6454_s22  ;;  %6303 = vrot.lane.b32.xlu1 %v6302_v6, %s6450_s27  ;;  %v6357_v59 = vpack.i.bf16 %v3815_v36, %v3812_v7  ;;  %v6362_v6 = vpack.i.bf16 %v3734_v61, %v3731_v52 }
 0x547   : > { %6298 = vrot.lane.b32.xlu0 %v6297_v22, %s6455_s16  ;;  %6313 = vrot.lane.b32.xlu1 %v6292_v4, %s6449_s24  ;;  %v3616_v4 = vrot.slane %v3584_v44, 7 }
 0x549   : > { %v3648_v12 = vsel %vm1722_vm14, 0.0, %v3616_v4  ;;  %v3664_v17 = vsel %vm1722_vm14, %v3616_v4, 0.0 }
 0x54a   : > { %v3970_v32 = vrot.slane %v3648_v12, 2  ;;  %v3971_v53 = vrot.slane %v3664_v17, 2  ;;  %v6372_v15 = vpack.i.bf16 %v3648_v12, %v8737_v34  ;;  %v3916_v13 = vrot.slane %v3648_v12, 1 }
 0x54b   : > { %6308 = vrot.lane.b32.xlu0 %v6307_v5, %s6452_s23  ;;  %6323 = vrot.lane.b32.xlu1 %v6322_v62, %s6454_s22  ;;  %v3917_v33 = vrot.slane %v3664_v17, 1 }
 0x54d   : > { %v3918_v2 = vsel %vm1787_vm15, %v3916_v13, %v3917_v33 }
 0x54e   : > { %v6377_v28 = vpack.i.bf16 %v3918_v2, %v3734_v61 }
 0x54f   : > { %6318 = vrot.lane.b32.xlu0 %v6297_v22, %s6451_s30  ;;  %6333 = vrot.lane.b32.xlu1 %v6332_v23, %s6455_s16  ;;  %v8761_v22 = vsel %vm1878_vm0, %v3970_v32, %v3971_v53 }
 0x550   : > { %v6382_v25 = vpack.i.bf16 %v8761_v22, %v3818_v26 }
 0x553   : > { %6328 = vrot.lane.b32.xlu0 %v6327_v24, %s6453_s25  ;;  %6343 = vrot.lane.b32.xlu1 %v6342_v29, %s6452_s23 }
 0x557   : > { %6338 = vrot.lane.b32.xlu0 %v6337_v56, %s6450_s27  ;;  %6353 = vrot.lane.b32.xlu1 %v6332_v23, %s6451_s30 }
 0x55b   : > { %6348 = vrot.lane.b32.xlu0 %v6327_v24, %s6449_s24  ;;  %4045 = vrot.lane.b32.xlu1 %v8737_v34, %s6453_s25 }
 0x55f   : > { %6358 = vrot.lane.b32.xlu0 %v6357_v59, %s6454_s22  ;;  %6363 = vrot.lane.b32.xlu1 %v6362_v6, %s6450_s27 }
 0x563   : > { %4087 = vrot.lane.b32.xlu0 %v3734_v61, %s6455_s16  ;;  %6373 = vrot.lane.b32.xlu1 %v6372_v15, %s6449_s24 }
 0x567   : > { %6368 = vrot.lane.b32.xlu0 %v6367_v35, %s6452_s23  ;;  %6383 = vrot.lane.b32.xlu1 %v6382_v25, %s6454_s22 }
 0x56b   : > { %6378 = vrot.lane.b32.xlu0 %v6377_v28, %s6451_s30  ;;  %4089 = vrot.lane.b32.xlu1 %v3918_v2, %s6455_s16 }
 0x56f   : > { %4047 = vrot.lane.b32.xlu0 %v3648_v12, %s6453_s25 }
 0x575   : > { %v6139_v20 = vpop.permute.xlu1 %6138 }
 0x576   : > { %v6140_v62 = vunpack.i.l.bf16 %v6139_v20  ;;  %v6141_v23 = vunpack.i.h.bf16 %v6139_v20 }
 0x578   : > { %v4147_v29 = vsel %vm2266_vm3, %v7746_v48, %v6140_v62 }
 0x579   : > { %v6144_v39 = vpop.permute.xlu0 %6143  ;;  %v6154_v18 = vpop.permute.xlu1 %6153 }
 0x57a   : > { %v6145_v5 = vunpack.i.l.bf16 %v6144_v39  ;;  %v6156_v7 = vunpack.i.h.bf16 %v6154_v18  ;;  %v6155_v24 = vunpack.i.l.bf16 %v6154_v18  ;;  %v6146_v13 = vunpack.i.h.bf16 %v6144_v39 }
 0x57c   : > { %v4119_v54 = vsel %vm2234_vm1, %v8445_v0, %v6145_v5  ;;  %v4163_v63 = vsel %vm2283_vm4, %v4147_v29, %v6155_v24  ;;  %v4120_v39 = vsel %vm2234_vm1, %v8448_v8, %v6146_v13 }
 0x57d   : > { %v6149_v47 = vpop.permute.xlu0 %6148  ;;  %v6164_v52 = vpop.permute.xlu1 %6163 }
 0x57e   : > { %v6150_v55 = vunpack.i.l.bf16 %v6149_v47  ;;  %v6166_v30 = vunpack.i.h.bf16 %v6164_v52  ;;  %v6165_v4 = vunpack.i.l.bf16 %v6164_v52  ;;  %v6151_v2 = vunpack.i.h.bf16 %v6149_v47 }
 0x580   : > { %v4133_v10 = vsel %vm2250_vm2, %v4119_v54, %v6150_v55 }
 0x581   : > { %v4148_v57 = vsel %vm2266_vm3, %v4133_v10, %v6141_v23  ;;  %v6159_v19 = vpop.permute.xlu0 %6158  ;;  %v8778_v50 = vpop.permute.xlu1 %6173 }
 0x582   : > { %v6161_v11 = vunpack.i.h.bf16 %v6159_v19  ;;  %v6160_v44 = vunpack.i.l.bf16 %v6159_v19  ;;  %v4164_v56 = vsel %vm2283_vm4, %v4148_v57, %v6156_v7  ;;  %v6175_v59 = vunpack.i.l.bf16 %v8778_v50 }
 0x583   : > { %v4134_v7 = vsel %vm2250_vm2, %v4120_v39, %v6151_v2 }
 0x584   : > { %v4179_v0 = vsel %vm2300_vm5, %v4163_v63, %v6160_v44  ;;  %v4180_v36 = vsel %vm2300_vm5, %v4164_v56, %v6161_v11  ;;  %v4121_v20 = vsel %vm2234_vm1, %v8461_v40, %v6175_v59 }
 0x585   : > { %v6169_v26 = vpop.permute.xlu0 %6168  ;;  %v6184_v61 = vpop.permute.xlu1 %6183  ;;  %v4195_v6 = vsel %vm2317_vm6, %v4179_v0, %v6165_v4  ;;  %v4196_v32 = vsel %vm2317_vm6, %v4180_v36, %v6166_v30 }
 0x586   : > { %v6171_v12 = vunpack.i.h.bf16 %v6169_v26  ;;  %v6170_v17 = vunpack.i.l.bf16 %v6169_v26  ;;  %v6186_v18 = vunpack.i.h.bf16 %v6184_v61  ;;  %v6185_v5 = vunpack.i.l.bf16 %v6184_v61 }
 0x588   : > { %v4211_v53 = vsel %vm2334_vm7, %v4195_v6, %v6170_v17  ;;  %v4212_v15 = vsel %vm2334_vm7, %v4196_v32, %v6171_v12  ;;  %v4149_v23 = vsel %vm2266_vm3, %v4134_v7, %v6185_v5  ;;  %v6176_v17 = vunpack.i.h.bf16 %v8778_v50 }
 0x589   : > { %v6179_v33 = vpop.permute.xlu0 %6178  ;;  %v6194_v35 = vpop.permute.xlu1 %6193  ;;  %v4227_v25 = vpack.c.bf16 %v4212_v15, %v4211_v53 }
 0x58a   : > { %v6180_v28 = vunpack.i.l.bf16 %v6179_v33  ;;  %v6196_v54 = vunpack.i.h.bf16 %v6194_v35  ;;  %v6195_v24 = vunpack.i.l.bf16 %v6194_v35  ;;  %v6181_v6 = vunpack.i.h.bf16 %v6179_v33 }
 0x58b   : > { %4372 = vmatmul.mubr.bf16.vlgmr.msra.gmra.mxu0 %v4227_v25  ;;  %4684 = vmatmul.mubr.bf16.vlgmr.msra.gmra.mxu1 %v4227_v25  ;;  %v4122_v25 = vsel %vm2234_vm1, %v8464_v1, %v6176_v17 }
 0x58c   : > { %v4135_v62 = vsel %vm2250_vm2, %v4121_v20, %v6180_v28  ;;  %5114 = vmatprep.mubr.msk.bf16.mxu0 %vm2234_vm1, %v8662_v60  ;;  %5149 = vmatprep.mubr.msk.bf16.mxu1 %vm2234_vm1, %v8662_v60  ;;  %v4136_v50 = vsel %vm2250_vm2, %v4122_v25, %v6181_v6 }
 0x58d   : > { %v6189_v47 = vpop.permute.xlu0 %6188  ;;  %v6204_v52 = vpop.permute.xlu1 %6203  ;;  %v4150_v29 = vsel %vm2266_vm3, %v4135_v62, %v6186_v18 }
 0x58e   : > { %v6191_v40 = vunpack.i.h.bf16 %v6189_v47  ;;  %v6190_v55 = vunpack.i.l.bf16 %v6189_v47  ;;  %v6206_v60 = vunpack.i.h.bf16 %v6204_v52  ;;  %v6205_v19 = vunpack.i.l.bf16 %v6204_v52 }
 0x590   : > { %v4165_v10 = vsel %vm2283_vm4, %v4149_v23, %v6190_v55  ;;  %v4166_v57 = vsel %vm2283_vm4, %v4150_v29, %v6191_v40 }
 0x591   : > { %v6199_v11 = vpop.permute.xlu0 %6198  ;;  %v8803_v8 = vpop.permute.xlu1 %6213  ;;  %v4181_v63 = vsel %vm2300_vm5, %v4165_v10, %v6195_v24  ;;  %v4182_v30 = vsel %vm2300_vm5, %v4166_v57, %v6196_v54 }
 0x592   : > { %v6201_v44 = vunpack.i.h.bf16 %v6199_v11  ;;  %v6200_v56 = vunpack.i.l.bf16 %v6199_v11  ;;  %v6215_v32 = vunpack.i.l.bf16 %v8803_v8 }
 0x594   : > { %v4197_v4 = vsel %vm2317_vm6, %v4181_v63, %v6200_v56  ;;  %v4198_v0 = vsel %vm2317_vm6, %v4182_v30, %v6201_v44  ;;  %v4234_v63 = vpack.c.bf16 %v7452_v58, %v8655_v9 }
 0x595   : > { %v4213_v36 = vsel %vm2334_vm7, %v4197_v4, %v6205_v19  ;;  %v4214_v26 = vsel %vm2334_vm7, %v4198_v0, %v6206_v60  ;;  %v6209_v61 = vpop.permute.xlu0 %6208  ;;  %v6224_v12 = vpop.permute.xlu1 %6223 }
 0x596   : > { %v6210_v59 = vunpack.i.l.bf16 %v6209_v61  ;;  %v4229_v53 = vpack.c.bf16 %v4214_v26, %v4213_v36  ;;  %v6226_v33 = vunpack.i.h.bf16 %v6224_v12  ;;  %v6225_v20 = vunpack.i.l.bf16 %v6224_v12 }
 0x597   : > { %v6211_v57 = vunpack.i.h.bf16 %v6209_v61  ;;  %v6216_v36 = vunpack.i.h.bf16 %v8803_v8 }
 0x598   : > { %v4123_v15 = vsel %vm2234_vm1, %v8517_v3, %v6210_v59  ;;  %4380 = vmatmul.mubr.bf16.gmra.mxu0 %v4229_v53  ;;  %4692 = vmatmul.mubr.bf16.gmra.mxu1 %v4229_v53 }
 0x599   : > { %v6219_v13 = vpop.permute.xlu0 %6218  ;;  %v6234_v35 = vpop.permute.xlu1 %6233  ;;  %5115 = vmatprep.mubr.msk.bf16.mxu0 %vm2234_vm1, %v8669_v21  ;;  %5150 = vmatprep.mubr.msk.bf16.mxu1 %vm2234_vm1, %v8669_v21  ;;  %v4137_v3 = vsel %vm2250_vm2, %v4123_v15, %v6215_v32  ;;  %v4124_v61 = vsel %vm2234_vm1, %v8541_v49, %v6211_v57 }
 0x59a   : > { %v6221_v2 = vunpack.i.h.bf16 %v6219_v13  ;;  %v6220_v28 = vunpack.i.l.bf16 %v6219_v13  ;;  %v6236_v52 = vunpack.i.h.bf16 %v6234_v35  ;;  %v6235_v7 = vunpack.i.l.bf16 %v6234_v35 }
 0x59b   : > { %v4138_v53 = vsel %vm2250_vm2, %v4124_v61, %v6216_v36 }
 0x59c   : > { %v4151_v18 = vsel %vm2266_vm3, %v4136_v50, %v6220_v28  ;;  %v4152_v5 = vsel %vm2266_vm3, %v4137_v3, %v6221_v2 }
 0x59d   : > { %v6229_v62 = vpop.permute.xlu0 %6228  ;;  %v6244_v1 = vpop.permute.xlu1 %6243  ;;  %v4167_v40 = vsel %vm2283_vm4, %v4151_v18, %v6225_v20  ;;  %v4168_v21 = vsel %vm2283_vm4, %v4152_v5, %v6226_v33 }
 0x59e   : > { %v6231_v39 = vunpack.i.h.bf16 %v6229_v62  ;;  %v6230_v47 = vunpack.i.l.bf16 %v6229_v62  ;;  %v6245_v60 = vunpack.i.l.bf16 %v6244_v1  ;;  %v6246_v3 = vunpack.i.h.bf16 %v6244_v1 }
 0x5a0   : > { %v4183_v55 = vsel %vm2300_vm5, %v4167_v40, %v6230_v47  ;;  %v4184_v23 = vsel %vm2300_vm5, %v4168_v21, %v6231_v39  ;;  %v4125_v12 = vsel %vm2234_vm1, %v8597_v14, %v6245_v60  ;;  %v4126_v1 = vsel %vm2234_vm1, %v8600_v46, %v6246_v3 }
 0x5a1   : > { %v6239_v54 = vpop.permute.xlu0 %6238  ;;  %v6254_v24 = vpop.permute.xlu1 %6253  ;;  %v4199_v19 = vsel %vm2317_vm6, %v4183_v55, %v6235_v7  ;;  %v4200_v11 = vsel %vm2317_vm6, %v4184_v23, %v6236_v52 }
 0x5a2   : > { %v6241_v29 = vunpack.i.h.bf16 %v6239_v54  ;;  %v6240_v10 = vunpack.i.l.bf16 %v6239_v54  ;;  %v6256_v17 = vunpack.i.h.bf16 %v6254_v24  ;;  %v6255_v59 = vunpack.i.l.bf16 %v6254_v24 }
 0x5a4   : > { %v4215_v44 = vsel %vm2334_vm7, %v4199_v19, %v6240_v10  ;;  %v4216_v56 = vsel %vm2334_vm7, %v4200_v11, %v6241_v29  ;;  %v4153_v13 = vsel %vm2266_vm3, %v4138_v53, %v6255_v59 }
 0x5a5   : > { %v6249_v30 = vpop.permute.xlu0 %6248  ;;  %v4231_v4 = vpack.c.bf16 %v4216_v56, %v4215_v44  ;;  %v6264_v0 = vpop.permute.xlu1 %6263 }
 0x5a6   : > { %v6250_v26 = vunpack.i.l.bf16 %v6249_v30  ;;  %v6266_v32 = vunpack.i.h.bf16 %v6264_v0  ;;  %v6265_v35 = vunpack.i.l.bf16 %v6264_v0  ;;  %v6251_v62 = vunpack.i.h.bf16 %v6249_v30 }
 0x5a7   : > { %4388 = vmatmul.mubr.bf16.gmra.mxu0 %v4231_v4  ;;  %4700 = vmatmul.mubr.bf16.gmra.mxu1 %v4231_v4 }
 0x5a8   : > { %v4139_v6 = vsel %vm2250_vm2, %v4125_v12, %v6250_v26  ;;  %5116 = vmatprep.mubr.msk.bf16.mxu0 %vm2234_vm1, %v4234_v63  ;;  %5151 = vmatprep.mubr.msk.bf16.mxu1 %vm2234_vm1, %v4234_v63  ;;  %v4140_v24 = vsel %vm2250_vm2, %v4126_v1, %v6251_v62 }
 0x5a9   : > { %v6259_v9 = vpop.permute.xlu0 %6258  ;;  %v6274_v8 = vpop.permute.xlu1 %6273  ;;  %v4154_v14 = vsel %vm2266_vm3, %v4139_v6, %v6256_v17 }
 0x5aa   : > { %v6261_v15 = vunpack.i.h.bf16 %v6259_v9  ;;  %v6260_v49 = vunpack.i.l.bf16 %v6259_v9  ;;  %v6275_v33 = vunpack.i.l.bf16 %v6274_v8  ;;  %v6276_v12 = vunpack.i.h.bf16 %v6274_v8 }
 0x5ac   : > { %v4169_v25 = vsel %vm2283_vm4, %v4153_v13, %v6260_v49  ;;  %v4170_v2 = vsel %vm2283_vm4, %v4154_v14, %v6261_v15 }
 0x5ad   : > { %v4186_v28 = vsel %vm2300_vm5, %v4170_v2, %v6266_v32  ;;  %v6269_v50 = vpop.permute.xlu0 %6268  ;;  %v6284_v20 = vpop.permute.xlu1 %6283  ;;  %v4185_v39 = vsel %vm2300_vm5, %v4169_v25, %v6265_v35 }
 0x5ae   : > { %v4202_v18 = vsel %vm2317_vm6, %v4186_v28, %v7815_v27  ;;  %v6270_v5 = vunpack.i.l.bf16 %v6269_v50  ;;  %v6286_v29 = vunpack.i.h.bf16 %v6284_v20  ;;  %v6285_v10 = vunpack.i.l.bf16 %v6284_v20 }
 0x5af   : > { %v4218_v52 = vsel %vm2334_vm7, %v4202_v18, %v7813_v31  ;;  %v6271_v56 = vunpack.i.h.bf16 %v6269_v50 }
 0x5b0   : > { %v4201_v47 = vsel %vm2317_vm6, %v4185_v39, %v6270_v5 }
 0x5b1   : > { %v4217_v7 = vsel %vm2334_vm7, %v4201_v47, %v6275_v33  ;;  %v6279_v40 = vpop.permute.xlu0 %6278  ;;  %v8856_v21 = vpop.permute.xlu1 %6293 }
 0x5b2   : > { %v6281_v55 = vunpack.i.h.bf16 %v6279_v40  ;;  %v6280_v23 = vunpack.i.l.bf16 %v6279_v40  ;;  %v4233_v54 = vpack.c.bf16 %v4218_v52, %v4217_v7  ;;  %v6296_v39 = vunpack.i.h.bf16 %v8856_v21 }
 0x5b4   : > { %v4155_v57 = vsel %vm2266_vm3, %v7746_v48, %v6280_v23  ;;  %v4156_v60 = vsel %vm2266_vm3, %v4140_v24, %v6281_v55  ;;  %4396 = vmatmul.mubr.bf16.gmra.mxu0 %v4233_v54  ;;  %4708 = vmatmul.mubr.bf16.gmra.mxu1 %v4233_v54  ;;  %v6295_v48 = vunpack.i.l.bf16 %v8856_v21 }
 0x5b5   : > { %v6289_v19 = vpop.permute.xlu0 %6288  ;;  %v6304_v11 = vpop.permute.xlu1 %6303  ;;  %5117 = vmatprep.mubr.msk.bf16.mxu0 %vm2234_vm1, %v8702_v43  ;;  %5152 = vmatprep.mubr.msk.bf16.mxu1 %vm2234_vm1, %v8702_v43  ;;  %v4171_v63 = vsel %vm2283_vm4, %v4155_v57, %v6285_v10  ;;  %v4172_v30 = vsel %vm2283_vm4, %v4156_v60, %v6286_v29 }
 0x5b6   : > { %v6291_v46 = vunpack.i.h.bf16 %v6289_v19  ;;  %v6290_v44 = vunpack.i.l.bf16 %v6289_v19  ;;  %v6306_v59 = vunpack.i.h.bf16 %v6304_v11  ;;  %v6305_v6 = vunpack.i.l.bf16 %v6304_v11 }
 0x5b8   : > { %v4187_v4 = vsel %vm2300_vm5, %v4171_v63, %v6290_v44  ;;  %v4188_v0 = vsel %vm2300_vm5, %v4172_v30, %v6291_v46  ;;  %v4128_v35 = vsel %vm2234_vm1, %v8678_v37, %v6306_v59  ;;  %v4127_v8 = vsel %vm2234_vm1, %v8643_v51, %v6305_v6 }
 0x5b9   : > { %v4203_v36 = vsel %vm2317_vm6, %v4187_v4, %v6271_v56  ;;  %v6299_v26 = vpop.permute.xlu0 %6298  ;;  %v6314_v61 = vpop.permute.xlu1 %6313  ;;  %v4204_v43 = vsel %vm2317_vm6, %v4188_v0, %v6295_v48 }
 0x5ba   : > { %v6300_v17 = vunpack.i.l.bf16 %v6299_v26  ;;  %v4219_v32 = vsel %vm2334_vm7, %v4203_v36, %v6276_v12  ;;  %v6316_v25 = vunpack.i.h.bf16 %v6314_v61  ;;  %v6315_v2 = vunpack.i.l.bf16 %v6314_v61 }
 0x5bb   : > { %v6301_v54 = vunpack.i.h.bf16 %v6299_v26 }
 0x5bc   : > { %v4220_v9 = vsel %vm2334_vm7, %v4204_v43, %v6300_v17 }
 0x5bd   : > { %v6309_v53 = vpop.permute.xlu0 %6308  ;;  %v4235_v15 = vpack.c.bf16 %v4220_v9, %v4219_v32  ;;  %v6324_v49 = vpop.permute.xlu1 %6323 }
 0x5be   : > { %v6311_v13 = vunpack.i.h.bf16 %v6309_v53  ;;  %v6310_v14 = vunpack.i.l.bf16 %v6309_v53  ;;  %v6325_v20 = vunpack.i.l.bf16 %v6324_v49  ;;  %v6326_v62 = vunpack.i.h.bf16 %v6324_v49 }
 0x5bf   : > { %4404 = vmatmul.mubr.bf16.gmra.mxu0 %v4235_v15  ;;  %4716 = vmatmul.mubr.bf16.gmra.mxu1 %v4235_v15 }
 0x5c0   : > { %v4142_v28 = vsel %vm2250_vm2, %v4128_v35, %v6311_v13  ;;  %v4141_v50 = vsel %vm2250_vm2, %v4127_v8, %v6310_v14  ;;  %5118 = vmatprep.mubr.msk.bf16.mxu0 %vm2234_vm1, %v8728_v16  ;;  %5153 = vmatprep.mubr.msk.bf16.mxu1 %vm2234_vm1, %v8728_v16 }
 0x5c1   : > { %v6319_v33 = vpop.permute.xlu0 %6318  ;;  %v6334_v37 = vpop.permute.xlu1 %6333  ;;  %v4157_v51 = vsel %vm2266_vm3, %v4141_v50, %v6315_v2  ;;  %v4158_v5 = vsel %vm2266_vm3, %v4142_v28, %v6316_v25  ;;  %v4242_v50 = vpack.c.bf16 %v7452_v58, %v8761_v22 }
 0x5c2   : > { %v6321_v3 = vunpack.i.h.bf16 %v6319_v33  ;;  %v6320_v18 = vunpack.i.l.bf16 %v6319_v33  ;;  %v6335_v16 = vunpack.i.l.bf16 %v6334_v37  ;;  %v6336_v15 = vunpack.i.h.bf16 %v6334_v37 }
 0x5c4   : > { %v4173_v47 = vsel %vm2283_vm4, %v4157_v51, %v6320_v18  ;;  %v4174_v52 = vsel %vm2283_vm4, %v4158_v5, %v6321_v3 }
 0x5c5   : > { %v4189_v7 = vsel %vm2300_vm5, %v4173_v47, %v6325_v20  ;;  %v6329_v40 = vpop.permute.xlu0 %6328  ;;  %v6344_v1 = vpop.permute.xlu1 %6343  ;;  %v4190_v24 = vsel %vm2300_vm5, %v4174_v52, %v6326_v62 }
 0x5c6   : > { %v4205_v55 = vsel %vm2317_vm6, %v4189_v7, %v6296_v39  ;;  %v6330_v23 = vunpack.i.l.bf16 %v6329_v40  ;;  %v6346_v44 = vunpack.i.h.bf16 %v6344_v1  ;;  %v6345_v56 = vunpack.i.l.bf16 %v6344_v1 }
 0x5c7   : > { %v4221_v57 = vsel %vm2334_vm7, %v4205_v55, %v6301_v54  ;;  %v6331_v32 = vunpack.i.h.bf16 %v6329_v40 }
 0x5c8   : > { %v4206_v29 = vsel %vm2317_vm6, %v4190_v24, %v6330_v23 }
 0x5c9   : > { %v4222_v10 = vsel %vm2334_vm7, %v4206_v29, %v6335_v16  ;;  %v6339_v21 = vpop.permute.xlu0 %6338  ;;  %v6354_v60 = vpop.permute.xlu1 %6353 }
 0x5ca   : > { %v6341_v19 = vunpack.i.h.bf16 %v6339_v21  ;;  %v6340_v11 = vunpack.i.l.bf16 %v6339_v21  ;;  %v4237_v46 = vpack.c.bf16 %v4222_v10, %v4221_v57  ;;  %v6355_v12 = vunpack.i.l.bf16 %v6354_v60 }
 0x5cc   : > { %v4130_v63 = vsel %vm2234_vm1, %v8710_v41, %v6341_v19  ;;  %v4129_v30 = vsel %vm2234_vm1, %v8687_v42, %v6340_v11  ;;  %4412 = vmatmul.mubr.bf16.gmra.mxu0 %v4237_v46  ;;  %4724 = vmatmul.mubr.bf16.gmra.mxu1 %v4237_v46  ;;  %v6356_v41 = vunpack.i.h.bf16 %v6354_v60 }
 0x5cd   : > { %v6349_v48 = vpop.permute.xlu0 %6348  ;;  %v4046_v4 = vpop.permute.xlu1 %4045  ;;  %5119 = vmatprep.mubr.msk.bf16.mxu0 %vm2234_vm1, %v8749_v38  ;;  %5154 = vmatprep.mubr.msk.bf16.mxu1 %vm2234_vm1, %v8749_v38  ;;  %v4143_v26 = vsel %vm2250_vm2, %v4129_v30, %v6345_v56  ;;  %v4144_v61 = vsel %vm2250_vm2, %v4130_v63, %v6346_v44  ;;  %v8943_v44 = vld [vmem:[%s9172_s11] ss:$0 sm:$0xff] }
 0x5ce   : > { %v6351_v0 = vunpack.i.h.bf16 %v6349_v48  ;;  %v6350_v36 = vunpack.i.l.bf16 %v6349_v48  ;;  %v8948_v56 = vld [vmem:[%s9175_s14] ss:$0 sm:$0xff] }
 0x5cf   : > { %v8958_v30 = vld [vmem:[%s9205_s20] ss:$0 sm:$0xff] }
 0x5d0   : > { %v4159_v42 = vsel %vm2266_vm3, %v4143_v26, %v6350_v36  ;;  %v4160_v17 = vsel %vm2266_vm3, %v4144_v61, %v6351_v0 }
 0x5d1   : > { %v6359_v43 = vpop.permute.xlu0 %6358  ;;  %v6364_v59 = vpop.permute.xlu1 %6363  ;;  %v4175_v53 = vsel %vm2283_vm4, %v4159_v42, %v6355_v12  ;;  %v4176_v38 = vsel %vm2283_vm4, %v4160_v17, %v6356_v41 }
 0x5d2   : > { %v6361_v6 = vunpack.i.h.bf16 %v6359_v43  ;;  %v6360_v9 = vunpack.i.l.bf16 %v6359_v43  ;;  %v6366_v20 = vunpack.i.h.bf16 %v6364_v59  ;;  %v6365_v37 = vunpack.i.l.bf16 %v6364_v59 }
 0x5d4   : > { %v4191_v49 = vsel %vm2300_vm5, %v4175_v53, %v6360_v9  ;;  %v4192_v13 = vsel %vm2300_vm5, %v4176_v38, %v6361_v6  ;;  %v4132_v62 = vsel %vm2234_vm1, %v8737_v34, %v6366_v20  ;;  %v4131_v39 = vsel %vm2234_vm1, %v8713_v45, %v6365_v37 }
 0x5d5   : > { %v4208_v14 = vsel %vm2317_vm6, %v4192_v13, %v4046_v4  ;;  %v4088_v35 = vpop.permute.xlu0 %4087  ;;  %v4207_v8 = vsel %vm2317_vm6, %v4191_v49, %v6331_v32  ;;  %v6374_v25 = vpop.permute.xlu1 %6373 }
 0x5d6   : > { %v4223_v2 = vsel %vm2334_vm7, %v4207_v8, %v6336_v15  ;;  %v4224_v28 = vsel %vm2334_vm7, %v4208_v14, %v4088_v35  ;;  %v6376_v58 = vunpack.i.h.bf16 %v6374_v25  ;;  %v6375_v22 = vunpack.i.l.bf16 %v6374_v25 }
 0x5d7   : > { %v4239_v33 = vpack.c.bf16 %v4224_v28, %v4223_v2 }
 0x5d9   : > { %v6369_v3 = vpop.permute.xlu0 %6368  ;;  %4420 = vmatmul.mubr.bf16.gmra.mxu0 %v4239_v33  ;;  %4732 = vmatmul.mubr.bf16.gmra.mxu1 %v4239_v33  ;;  %v6384_v5 = vpop.permute.xlu1 %6383 }
 0x5da   : > { %v6371_v18 = vunpack.i.h.bf16 %v6369_v3  ;;  %v6370_v51 = vunpack.i.l.bf16 %v6369_v3  ;;  %5120 = vmatprep.mubr.msk.bf16.mxu0 %vm2234_vm1, %v4242_v50  ;;  %5155 = vmatprep.mubr.msk.bf16.mxu1 %vm2234_vm1, %v4242_v50  ;;  %v6386_v40 = vunpack.i.h.bf16 %v6384_v5  ;;  %v6385_v16 = vunpack.i.l.bf16 %v6384_v5 }
 0x5dc   : > { %v4146_v47 = vsel %vm2250_vm2, %v4132_v62, %v6371_v18  ;;  %v4145_v52 = vsel %vm2250_vm2, %v4131_v39, %v6370_v51 }
 0x5dd   : > { %v6379_v7 = vpop.permute.xlu0 %6378  ;;  %v4162_v23 = vsel %vm2266_vm3, %v4146_v47, %v6376_v58  ;;  %v4161_v54 = vsel %vm2266_vm3, %v4145_v52, %v6375_v22  ;;  %v4090_v45 = vpop.permute.xlu1 %4089 }
 0x5de   : > { %v6381_v1 = vunpack.i.h.bf16 %v6379_v7  ;;  %v6380_v55 = vunpack.i.l.bf16 %v6379_v7 }
 0x5e0   : > { %v4178_v34 = vsel %vm2283_vm4, %v4162_v23, %v6381_v1  ;;  %v4177_v24 = vsel %vm2283_vm4, %v4161_v54, %v6380_v55 }
 0x5e1   : > { %v4048_v29 = vpop.permute.xlu0 %4047  ;;  %v4193_v10 = vsel %vm2300_vm5, %v4177_v24, %v6385_v16  ;;  %v4194_v21 = vsel %vm2300_vm5, %v4178_v34, %v6386_v40 }
 0x5e2   : > { %v4209_v57 = vsel %vm2317_vm6, %v4193_v10, %v4048_v29  ;;  %v4210_v60 = vsel %vm2317_vm6, %v4194_v21, %v7815_v27  ;;  %v8953_v27 = vld [vmem:[%s9173_s12] ss:$0 sm:$0xff] }
 0x5e3   : > { %v4225_v19 = vsel %vm2334_vm7, %v4209_v57, %v4090_v45  ;;  %v4226_v11 = vsel %vm2334_vm7, %v4210_v60, %v7813_v31 }
 0x5e4   : > { %v4241_v46 = vpack.c.bf16 %v4226_v11, %v4225_v19 }
 0x5e6   : > { %4428 = vmatmul.mubr.bf16.gmra.mxu0 %v4241_v46  ;;  %4740 = vmatmul.mubr.bf16.gmra.mxu1 %v4241_v46 }
 0x64b   : > { %v4373_v63 = vpop.f32.mrf.mxu0  ;;  %v4685_v31 = vpop.f32.mrf.mxu1 }
 0x64c   : > { %v4443_v48 = vmul.f32 %v8943_v44, %v4373_v63  ;;  %v4755_v4 = vmul.f32 %v8948_v56, %v4685_v31 }
 0x64d   : > { %v4375_v0 = vpop.f32.mrf.mxu0  ;;  %v4687_v36 = vpop.f32.mrf.mxu1 }
 0x64e   : > { %v4466_v26 = vadd.f32 %v8953_v27, %v4443_v48  ;;  %v4778_v61 = vadd.f32 %v8958_v30, %v4755_v4 }
 0x64f   : > { %v4376_v41 = vpop.f32.mrf.mxu0  ;;  %v4688_v12 = vpop.f32.mrf.mxu1 }
 0x650   : > { %v4482_v42 = vmax.f32 %v4466_v26, 0.0  ;;  %v4794_v17 = vmax.f32 %v4778_v61, 0.0  ;;  %v4444_v43 = vmul.f32 %v8943_v44, %v4376_v41  ;;  %v4756_v59 = vmul.f32 %v8948_v56, %v4688_v12 }
 0x651   : > { %v4378_v6 = vpop.f32.mrf.mxu0  ;;  %v4690_v9 = vpop.f32.mrf.mxu1 }
 0x652   : > { %v5178_v32 = vpack.c.bf16 %v4482_v42, %v4482_v42  ;;  %v5194_v53 = vpack.c.bf16 %v4794_v17, %v4794_v17  ;;  %v4467_v38 = vadd.f32 %v8953_v27, %v4444_v43  ;;  %v4779_v15 = vadd.f32 %v8958_v30, %v4756_v59 }
 0x654   : > { %4563 = vst.msk [vmem:[%s9206_s29] sm:$0xf] %vm4562_vm8, %v5178_v32  ;;  %v4483_v49 = vmax.f32 %v4467_v38, 0.0  ;;  %v4795_v13 = vmax.f32 %v4779_v15, 0.0 }
 0x655   : > { %4875 = vst.msk [vmem:[%s9207_s1] sm:$0xf] %vm4874_vm9, %v5194_v53 }
 0x656   : > { %v5179_v14 = vpack.c.bf16 %v4483_v49, %v4483_v49  ;;  %v5195_v35 = vpack.c.bf16 %v4795_v13, %v4795_v13 }
 0x658   : > { %4564 = vst.msk [vmem:[%s9206_s29 + $0x4] sm:$0xf] %vm4562_vm8, %v5179_v14  ;;  %v4381_v8 = vpop.f32.mrf.mxu0  ;;  %v4693_v25 = vpop.f32.mrf.mxu1 }
 0x659   : > { %4876 = vst.msk [vmem:[%s9207_s1 + $0x4] sm:$0xf] %vm4874_vm9, %v5195_v35  ;;  %v4445_v2 = vmul.f32 %v8943_v44, %v4381_v8  ;;  %v4757_v28 = vmul.f32 %v8948_v56, %v4693_v25 }
 0x65a   : > { %v4383_v50 = vpop.f32.mrf.mxu0  ;;  %v4695_v33 = vpop.f32.mrf.mxu1 }
 0x65b   : > { %v4468_v20 = vadd.f32 %v8953_v27, %v4445_v2  ;;  %v4780_v37 = vadd.f32 %v8958_v30, %v4757_v28 }
 0x65c   : > { %v4384_v3 = vpop.f32.mrf.mxu0  ;;  %v4696_v18 = vpop.f32.mrf.mxu1 }
 0x65d   : > { %v4484_v51 = vmax.f32 %v4468_v20, 0.0  ;;  %v4796_v5 = vmax.f32 %v4780_v37, 0.0  ;;  %v4446_v62 = vmul.f32 %v8943_v44, %v4384_v3  ;;  %v4758_v39 = vmul.f32 %v8948_v56, %v4696_v18 }
 0x65e   : > { %v4386_v58 = vpop.f32.mrf.mxu0  ;;  %v4698_v22 = vpop.f32.mrf.mxu1 }
 0x65f   : > { %v5180_v47 = vpack.c.bf16 %v4484_v51, %v4484_v51  ;;  %v5196_v52 = vpack.c.bf16 %v4796_v5, %v4796_v5  ;;  %v4469_v7 = vadd.f32 %v8953_v27, %v4446_v62  ;;  %v4781_v40 = vadd.f32 %v8958_v30, %v4758_v39 }
 0x661   : > { %4565 = vst.msk [vmem:[%s9206_s29 + $0x8] sm:$0xf] %vm4562_vm8, %v5180_v47  ;;  %v4485_v16 = vmax.f32 %v4469_v7, 0.0  ;;  %v4797_v1 = vmax.f32 %v4781_v40, 0.0 }
 0x662   : > { %4877 = vst.msk [vmem:[%s9207_s1 + $0x8] sm:$0xf] %vm4874_vm9, %v5196_v52 }
 0x663   : > { %v5181_v55 = vpack.c.bf16 %v4485_v16, %v4485_v16  ;;  %v5197_v23 = vpack.c.bf16 %v4797_v1, %v4797_v1 }
 0x665   : > { %4566 = vst.msk [vmem:[%s9206_s29 + $0xc] sm:$0xf] %vm4562_vm8, %v5181_v55 }
 0x666   : > { %4878 = vst.msk [vmem:[%s9207_s1 + $0xc] sm:$0xf] %vm4874_vm9, %v5197_v23 }
 0x667   : > { %v4389_v54 = vpop.f32.mrf.mxu0  ;;  %v4701_v34 = vpop.f32.mrf.mxu1 }
 0x668   : > { %v4447_v24 = vmul.f32 %v8943_v44, %v4389_v54  ;;  %v4759_v45 = vmul.f32 %v8948_v56, %v4701_v34 }
 0x669   : > { %v4391_v29 = vpop.f32.mrf.mxu0  ;;  %v4703_v10 = vpop.f32.mrf.mxu1 }
 0x66a   : > { %v4470_v21 = vadd.f32 %v8953_v27, %v4447_v24  ;;  %v4782_v57 = vadd.f32 %v8958_v30, %v4759_v45 }
 0x66b   : > { %v4392_v60 = vpop.f32.mrf.mxu0  ;;  %v4704_v19 = vpop.f32.mrf.mxu1 }
 0x66c   : > { %v4486_v11 = vmax.f32 %v4470_v21, 0.0  ;;  %v4798_v46 = vmax.f32 %v4782_v57, 0.0  ;;  %v4448_v63 = vmul.f32 %v8943_v44, %v4392_v60  ;;  %v4760_v31 = vmul.f32 %v8948_v56, %v4704_v19 }
 0x66d   : > { %v4394_v48 = vpop.f32.mrf.mxu0  ;;  %v4706_v4 = vpop.f32.mrf.mxu1 }
 0x66e   : > { %v5182_v0 = vpack.c.bf16 %v4486_v11, %v4486_v11  ;;  %v5198_v36 = vpack.c.bf16 %v4798_v46, %v4798_v46  ;;  %v4471_v26 = vadd.f32 %v8953_v27, %v4448_v63  ;;  %v4783_v61 = vadd.f32 %v8958_v30, %v4760_v31 }
 0x670   : > { %4567 = vst.msk [vmem:[%s9206_s29 + $0x10] sm:$0xf] %vm4562_vm8, %v5182_v0  ;;  %v4487_v41 = vmax.f32 %v4471_v26, 0.0  ;;  %v4799_v12 = vmax.f32 %v4783_v61, 0.0 }
 0x671   : > { %4879 = vst.msk [vmem:[%s9207_s1 + $0x10] sm:$0xf] %vm4874_vm9, %v5198_v36 }
 0x672   : > { %v5183_v42 = vpack.c.bf16 %v4487_v41, %v4487_v41  ;;  %v5199_v17 = vpack.c.bf16 %v4799_v12, %v4799_v12 }
 0x674   : > { %4568 = vst.msk [vmem:[%s9206_s29 + $0x14] sm:$0xf] %vm4562_vm8, %v5183_v42  ;;  %v4397_v43 = vpop.f32.mrf.mxu0  ;;  %v4709_v59 = vpop.f32.mrf.mxu1 }
 0x675   : > { %4880 = vst.msk [vmem:[%s9207_s1 + $0x14] sm:$0xf] %vm4874_vm9, %v5199_v17  ;;  %v4449_v6 = vmul.f32 %v8943_v44, %v4397_v43  ;;  %v4761_v9 = vmul.f32 %v8948_v56, %v4709_v59 }
 0x676   : > { %v4399_v32 = vpop.f32.mrf.mxu0  ;;  %v4711_v53 = vpop.f32.mrf.mxu1 }
 0x677   : > { %v4472_v38 = vadd.f32 %v8953_v27, %v4449_v6  ;;  %v4784_v15 = vadd.f32 %v8958_v30, %v4761_v9 }
 0x678   : > { %v4400_v49 = vpop.f32.mrf.mxu0  ;;  %v4712_v13 = vpop.f32.mrf.mxu1 }
 0x679   : > { %v4488_v14 = vmax.f32 %v4472_v38, 0.0  ;;  %v4800_v35 = vmax.f32 %v4784_v15, 0.0  ;;  %v4450_v8 = vmul.f32 %v8943_v44, %v4400_v49  ;;  %v4762_v25 = vmul.f32 %v8948_v56, %v4712_v13 }
 0x67a   : > { %v4402_v2 = vpop.f32.mrf.mxu0  ;;  %v4714_v28 = vpop.f32.mrf.mxu1 }
 0x67b   : > { %v5184_v50 = vpack.c.bf16 %v4488_v14, %v4488_v14  ;;  %v5200_v33 = vpack.c.bf16 %v4800_v35, %v4800_v35  ;;  %v4473_v20 = vadd.f32 %v8953_v27, %v4450_v8  ;;  %v4785_v37 = vadd.f32 %v8958_v30, %v4762_v25 }
 0x67d   : > { %4569 = vst.msk [vmem:[%s9206_s29 + $0x18] sm:$0xf] %vm4562_vm8, %v5184_v50  ;;  %v4489_v3 = vmax.f32 %v4473_v20, 0.0  ;;  %v4801_v18 = vmax.f32 %v4785_v37, 0.0 }
 0x67e   : > { %4881 = vst.msk [vmem:[%s9207_s1 + $0x18] sm:$0xf] %vm4874_vm9, %v5200_v33 }
 0x67f   : > { %v5185_v51 = vpack.c.bf16 %v4489_v3, %v4489_v3  ;;  %v5201_v5 = vpack.c.bf16 %v4801_v18, %v4801_v18  ;;  %v4405_v62 = vpop.f32.mrf.mxu0  ;;  %v4717_v39 = vpop.f32.mrf.mxu1 }
 0x680   : > { %v4451_v58 = vmul.f32 %v8943_v44, %v4405_v62  ;;  %v4763_v22 = vmul.f32 %v8948_v56, %v4717_v39 }
 0x681   : > { %4570 = vst.msk [vmem:[%s9206_s29 + $0x1c] sm:$0xf] %vm4562_vm8, %v5185_v51  ;;  %v4407_v47 = vpop.f32.mrf.mxu0  ;;  %v4719_v52 = vpop.f32.mrf.mxu1 }
 0x682   : > { %4882 = vst.msk [vmem:[%s9207_s1 + $0x1c] sm:$0xf] %vm4874_vm9, %v5201_v5  ;;  %v4474_v7 = vadd.f32 %v8953_v27, %v4451_v58  ;;  %v4786_v40 = vadd.f32 %v8958_v30, %v4763_v22 }
 0x683   : > { %v4408_v16 = vpop.f32.mrf.mxu0  ;;  %v4720_v1 = vpop.f32.mrf.mxu1 }
 0x684   : > { %v4490_v55 = vmax.f32 %v4474_v7, 0.0  ;;  %v4802_v23 = vmax.f32 %v4786_v40, 0.0  ;;  %v4452_v54 = vmul.f32 %v8943_v44, %v4408_v16  ;;  %v4764_v34 = vmul.f32 %v8948_v56, %v4720_v1 }
 0x685   : > { %v4410_v24 = vpop.f32.mrf.mxu0  ;;  %v4722_v45 = vpop.f32.mrf.mxu1 }
 0x686   : > { %v5186_v29 = vpack.c.bf16 %v4490_v55, %v4490_v55  ;;  %v5202_v10 = vpack.c.bf16 %v4802_v23, %v4802_v23  ;;  %v4475_v21 = vadd.f32 %v8953_v27, %v4452_v54  ;;  %v4787_v57 = vadd.f32 %v8958_v30, %v4764_v34 }
 0x688   : > { %4571 = vst.msk [vmem:[%s9206_s29 + $0x20] sm:$0xf] %vm4562_vm8, %v5186_v29  ;;  %v4491_v60 = vmax.f32 %v4475_v21, 0.0  ;;  %v4803_v19 = vmax.f32 %v4787_v57, 0.0 }
 0x689   : > { %4883 = vst.msk [vmem:[%s9207_s1 + $0x20] sm:$0xf] %vm4874_vm9, %v5202_v10 }
 0x68a   : > { %v5187_v11 = vpack.c.bf16 %v4491_v60, %v4491_v60  ;;  %v5203_v46 = vpack.c.bf16 %v4803_v19, %v4803_v19 }
 0x68c   : > { %4572 = vst.msk [vmem:[%s9206_s29 + $0x24] sm:$0xf] %vm4562_vm8, %v5187_v11  ;;  %v4413_v63 = vpop.f32.mrf.mxu0  ;;  %v4725_v31 = vpop.f32.mrf.mxu1 }
 0x68d   : > { %4884 = vst.msk [vmem:[%s9207_s1 + $0x24] sm:$0xf] %vm4874_vm9, %v5203_v46  ;;  %v4453_v48 = vmul.f32 %v8943_v44, %v4413_v63  ;;  %v4765_v4 = vmul.f32 %v8948_v56, %v4725_v31 }
 0x68e   : > { %v4415_v0 = vpop.f32.mrf.mxu0  ;;  %v4727_v36 = vpop.f32.mrf.mxu1 }
 0x68f   : > { %v4476_v26 = vadd.f32 %v8953_v27, %v4453_v48  ;;  %v4788_v61 = vadd.f32 %v8958_v30, %v4765_v4 }
 0x690   : > { %v4416_v41 = vpop.f32.mrf.mxu0  ;;  %v4728_v12 = vpop.f32.mrf.mxu1 }
 0x691   : > { %v4492_v42 = vmax.f32 %v4476_v26, 0.0  ;;  %v4804_v17 = vmax.f32 %v4788_v61, 0.0  ;;  %v4454_v43 = vmul.f32 %v8943_v44, %v4416_v41  ;;  %v4766_v59 = vmul.f32 %v8948_v56, %v4728_v12 }
 0x692   : > { %v4418_v6 = vpop.f32.mrf.mxu0  ;;  %v4730_v9 = vpop.f32.mrf.mxu1 }
 0x693   : > { %v5188_v32 = vpack.c.bf16 %v4492_v42, %v4492_v42  ;;  %v5204_v53 = vpack.c.bf16 %v4804_v17, %v4804_v17  ;;  %v4477_v38 = vadd.f32 %v8953_v27, %v4454_v43  ;;  %v4789_v15 = vadd.f32 %v8958_v30, %v4766_v59 }
 0x695   : > { %4573 = vst.msk [vmem:[%s9206_s29 + $0x28] sm:$0xf] %vm4562_vm8, %v5188_v32  ;;  %v4493_v49 = vmax.f32 %v4477_v38, 0.0  ;;  %v4805_v13 = vmax.f32 %v4789_v15, 0.0 }
 0x696   : > { %4885 = vst.msk [vmem:[%s9207_s1 + $0x28] sm:$0xf] %vm4874_vm9, %v5204_v53 }
 0x697   : > { %v5189_v14 = vpack.c.bf16 %v4493_v49, %v4493_v49  ;;  %v5205_v35 = vpack.c.bf16 %v4805_v13, %v4805_v13 }
 0x699   : > { %4574 = vst.msk [vmem:[%s9206_s29 + $0x2c] sm:$0xf] %vm4562_vm8, %v5189_v14  ;;  %v4421_v8 = vpop.f32.mrf.mxu0  ;;  %v4733_v25 = vpop.f32.mrf.mxu1 }
 0x69a   : > { %4886 = vst.msk [vmem:[%s9207_s1 + $0x2c] sm:$0xf] %vm4874_vm9, %v5205_v35  ;;  %v4455_v2 = vmul.f32 %v8943_v44, %v4421_v8  ;;  %v4767_v28 = vmul.f32 %v8948_v56, %v4733_v25 }
 0x69b   : > { %v4423_v50 = vpop.f32.mrf.mxu0  ;;  %v4735_v33 = vpop.f32.mrf.mxu1 }
 0x69c   : > { %v4478_v20 = vadd.f32 %v8953_v27, %v4455_v2  ;;  %v4790_v37 = vadd.f32 %v8958_v30, %v4767_v28 }
 0x69d   : > { %v4424_v3 = vpop.f32.mrf.mxu0  ;;  %v4736_v18 = vpop.f32.mrf.mxu1 }
 0x69e   : > { %v4494_v51 = vmax.f32 %v4478_v20, 0.0  ;;  %v4806_v5 = vmax.f32 %v4790_v37, 0.0  ;;  %v4456_v62 = vmul.f32 %v8943_v44, %v4424_v3  ;;  %v4768_v39 = vmul.f32 %v8948_v56, %v4736_v18 }
 0x69f   : > { %v4426_v58 = vpop.f32.mrf.mxu0  ;;  %v4738_v22 = vpop.f32.mrf.mxu1 }
 0x6a0   : > { %v5190_v47 = vpack.c.bf16 %v4494_v51, %v4494_v51  ;;  %v5206_v52 = vpack.c.bf16 %v4806_v5, %v4806_v5  ;;  %v4479_v7 = vadd.f32 %v8953_v27, %v4456_v62  ;;  %v4791_v40 = vadd.f32 %v8958_v30, %v4768_v39 }
 0x6a2   : > { %4575 = vst.msk [vmem:[%s9206_s29 + $0x30] sm:$0xf] %vm4562_vm8, %v5190_v47  ;;  %v4495_v16 = vmax.f32 %v4479_v7, 0.0  ;;  %v4807_v1 = vmax.f32 %v4791_v40, 0.0 }
 0x6a3   : > { %4887 = vst.msk [vmem:[%s9207_s1 + $0x30] sm:$0xf] %vm4874_vm9, %v5206_v52 }
 0x6a4   : > { %v5191_v55 = vpack.c.bf16 %v4495_v16, %v4495_v16  ;;  %v5207_v23 = vpack.c.bf16 %v4807_v1, %v4807_v1 }
 0x6a6   : > { %4576 = vst.msk [vmem:[%s9206_s29 + $0x34] sm:$0xf] %vm4562_vm8, %v5191_v55  ;;  %v4429_v54 = vpop.f32.mrf.mxu0  ;;  %v4741_v34 = vpop.f32.mrf.mxu1 }
 0x6a7   : > { %4888 = vst.msk [vmem:[%s9207_s1 + $0x34] sm:$0xf] %vm4874_vm9, %v5207_v23  ;;  %v4457_v24 = vmul.f32 %v8943_v44, %v4429_v54  ;;  %v4769_v45 = vmul.f32 %v8948_v56, %v4741_v34 }
 0x6a8   : > { %v4431_v29 = vpop.f32.mrf.mxu0  ;;  %v4743_v10 = vpop.f32.mrf.mxu1 }
 0x6a9   : > { %v4480_v21 = vadd.f32 %v8953_v27, %v4457_v24  ;;  %v4792_v57 = vadd.f32 %v8958_v30, %v4769_v45 }
 0x6aa   : > { %v4432_v60 = vpop.f32.mrf.mxu0  ;;  %v4744_v19 = vpop.f32.mrf.mxu1 }
 0x6ab   : > { %v4496_v11 = vmax.f32 %v4480_v21, 0.0  ;;  %v4808_v46 = vmax.f32 %v4792_v57, 0.0  ;;  %v4458_v63 = vmul.f32 %v8943_v44, %v4432_v60  ;;  %v4770_v31 = vmul.f32 %v8948_v56, %v4744_v19 }
 0x6ac   : > { %v4434_v48 = vpop.f32.mrf.mxu0  ;;  %v4746_v4 = vpop.f32.mrf.mxu1 }
 0x6ad   : > { %v5192_v0 = vpack.c.bf16 %v4496_v11, %v4496_v11  ;;  %v5208_v36 = vpack.c.bf16 %v4808_v46, %v4808_v46  ;;  %v4481_v26 = vadd.f32 %v8953_v27, %v4458_v63  ;;  %v4793_v61 = vadd.f32 %v8958_v30, %v4770_v31 }
 0x6af   : > { %4577 = vst.msk [vmem:[%s9206_s29 + $0x38] sm:$0xf] %vm4562_vm8, %v5192_v0  ;;  %v4497_v44 = vmax.f32 %v4481_v26, 0.0  ;;  %v4809_v56 = vmax.f32 %v4793_v61, 0.0 }
 0x6b0   : > { %4889 = vst.msk [vmem:[%s9207_s1 + $0x38] sm:$0xf] %vm4874_vm9, %v5208_v36 }
 0x6b1   : > { %v5193_v41 = vpack.c.bf16 %v4497_v44, %v4497_v44  ;;  %v5209_v12 = vpack.c.bf16 %v4809_v56, %v4809_v56 }
 0x6b3   : > { %4578 = vst.msk [vmem:[%s9206_s29 + $0x3c] sm:$0xf] %vm4562_vm8, %v5193_v41 }
 0x6b4   : > { %4890 = vst.msk [vmem:[%s9207_s1 + $0x3c] sm:$0xf] %vm4874_vm9, %v5209_v12 }
 0x6b5 PF: > { %s9208_s23 = sld [smem:[#allocation4_spill]] }
 0x6b6   : > { %s9209_s24 = sld [smem:[#allocation3_spill]] }
 0x6b7   : > { %s9210_s25 = sld [smem:[#allocation5_spill]] }
 0x6bb   : > { %s28_s26 = sadd.s32 1, %s9208_s23  }
 0x6bc   : > { %p25_p7 = scmp.ge.s32.totalorder %s28_s26, 4  }
 0x6be   :  { %27 = sbr.rel (!%p25_p7) target bundleno = 6 (0x6), region = 152 }

</bundles_post_ra>
